<compile_context>
chip_gen: v5e
topology: v5e:2x2
jax: 0.10.0
libtpu: 0.0.40
codegen_flags: <defaults>
</compile_context>

<pallas_src>
import functools

import jax
import jax.numpy as jnp
from jax import lax
from jax.experimental import pallas as pl
from jax.experimental.pallas import tpu as pltpu


# -----------------------------------------------------------------------------
# Kernel: one (image, output-row-tile) grid step of conv + folded BN + relu6.
# -----------------------------------------------------------------------------
def _conv_block_kernel(x_ref, w_ref, b_ref, o_ref, *scratch, k, stride, groups,
                       Cin, Wo, TH):
    t = pl.program_id(1)
    row0 = pl.multiple_of(t * (TH * stride), TH * stride)

    def tap(dy, dx):
        # (TH, Wo, Cin) input window feeding output rows [t*TH, t*TH + TH).
        if stride == 1:
            return x_ref[0, pl.ds(row0 + dy, TH), pl.ds(dx, Wo), :]
        # TODO(synk): stride > 1 path untested (never traced by the demo).
        return x_ref[0, pl.ds(row0 + dy, TH, stride), pl.ds(dx, Wo, stride), :]

    Cob = o_ref.shape[-1]

    if groups == 1:
        # --- single im2col matmul on the MXU (bf16 operands, f32 accumulation) ---
        if k == 1:
            slab = tap(0, 0).reshape(TH * Wo, Cin)
        else:
            slab_ref = scratch[0]                       # (TH*Wo, k*k*Cin) VMEM
            for dy in range(k):
                for dx in range(k):
                    ti = dy * k + dx
                    slab_ref[:, ti * Cin:(ti + 1) * Cin] = (
                        tap(dy, dx).reshape(TH * Wo, Cin))
            slab = slab_ref[...]
        acc = jnp.dot(slab, w_ref[...], preferred_element_type=jnp.float32)
        y = jnp.clip(acc + b_ref[...], 0.0, 6.0)        # BN scale folded into weights
        y = y.reshape(TH, Wo, Cob)
    else:
        # --- depthwise (groups == Cin == Cout): per-tap MACs on the VPU, f32 acc ---
        w = w_ref[...].astype(jnp.float32)              # (k*k, C), scale pre-folded
        acc = jnp.zeros((TH, Wo, Cob), jnp.float32)
        for dy in range(k):
            for dx in range(k):
                ti = dy * k + dx
                acc = acc + tap(dy, dx).astype(jnp.float32) * w[ti:ti + 1, :]
        y = jnp.clip(acc + b_ref[...], 0.0, 6.0)

    o_ref[0] = y.astype(o_ref.dtype)


# -----------------------------------------------------------------------------
# Wrapper: NCHW in / NCHW out, PyTorch-layout weight, BN folded into weights/bias.
# -----------------------------------------------------------------------------
def _fold_bn(gamma, beta, mean, var, eps):
    scale = gamma * lax.rsqrt(var + eps)
    bias = beta - mean * scale
    return scale.astype(jnp.float32), bias.astype(jnp.float32)


def _pick_row_tile(Ho, Wo, *, target_elems=256, max_rows=64):
    """Largest divisor of Ho such that TH*Wo ~ target (fills a 256-wide MXU pass)."""
    target = max(1, min(Ho, max_rows, -(-target_elems // Wo)))
    for t in range(target, 0, -1):
        if Ho % t == 0:
            return t
    return 1


def conv_block_pallas(x_nchw, weight, gamma, beta, mean, var, *,
                      stride=1, padding=0, groups=1, eps=1e-5,
                      comp_dtype=jnp.bfloat16, out_dtype=jnp.float32):
    """relu6(batch_norm(conv2d(x, weight, stride, padding, groups, bias=False)))."""
    N, Cin, H, W = x_nchw.shape
    Cout, cin_g, k, k2 = weight.shape
    assert k == k2, "square kernels only"   # TODO(synk): tuple k/s/p not supported.
    Ho = (H + 2 * padding - k) // stride + 1
    Wo = (W + 2 * padding - k) // stride + 1

    scale, bias = _fold_bn(gamma, beta, mean, var, eps)

    if groups == 1:
        # fold BN scale into the conv weights (f32) before the MXU-dtype cast.
        w = jnp.transpose(weight, (2, 3, 1, 0)).reshape(k * k * Cin, Cout)
        w = w.astype(jnp.float32) * scale[None, :]
        # lane-pad Cout only when overhead is small (<= 25%); masked stores beat
        # 16x writeback inflation for tiny Cout.
        cpad128 = ((Cout + 127) // 128) * 128
        cpad = cpad128 if 4 * cpad128 <= 5 * Cout else Cout
        if cpad != Cout:
            w = jnp.zeros((k * k * Cin, cpad), jnp.float32).at[:, :Cout].set(w)
            bias = jnp.zeros((cpad,), jnp.float32).at[:Cout].set(bias)
        w = w.astype(comp_dtype)
    elif groups == Cin and Cout == Cin and cin_g == 1:
        cpad = Cout
        w = jnp.transpose(weight.reshape(Cout, k, k), (1, 2, 0)).reshape(k * k, Cout)
        w = (w.astype(jnp.float32) * scale[None, :]).astype(comp_dtype)
    else:
        raise NotImplementedError("groups must be 1 or in_channels (depthwise)")

    bias2 = bias.reshape(1, cpad).astype(jnp.float32)

    # NHWC + HBM-side zero padding (no in-kernel staging copy / scratch image).
    x = jnp.transpose(x_nchw, (0, 2, 3, 1)).astype(comp_dtype)
    if padding > 0:
        x = jnp.pad(x, ((0, 0), (padding, padding), (padding, padding), (0, 0)))
    Hp, Wp = H + 2 * padding, W + 2 * padding

    TH = _pick_row_tile(Ho, Wo)

    kernel = functools.partial(_conv_block_kernel, k=k, stride=stride,
                               groups=groups, Cin=Cin, Wo=Wo, TH=TH)

    scratch = []
    if groups == 1 and k > 1:
        scratch = [pltpu.VMEM((TH * Wo, k * k * Cin), comp_dtype)]  # im2col slab

    out = pl.pallas_call(
        kernel,
        out_shape=jax.ShapeDtypeStruct((N, Ho, Wo, cpad), out_dtype),
        grid_spec=pltpu.PrefetchScalarGridSpec(
            num_scalar_prefetch=0,
            grid=(N, Ho // TH),
            in_specs=[
                pl.BlockSpec((1, Hp, Wp, Cin), lambda n, t: (n, 0, 0, 0)),  # padded x
                pl.BlockSpec(w.shape, lambda n, t: (0, 0)),                 # weights
                pl.BlockSpec((1, cpad), lambda n, t: (0, 0)),               # BN bias
            ],
            out_specs=pl.BlockSpec((1, TH, Wo, cpad), lambda n, t: (n, t, 0, 0)),
            scratch_shapes=scratch,
        ),
        compiler_params=pltpu.CompilerParams(
            dimension_semantics=("parallel", "parallel")),
    )(x, w, bias2)

    if cpad != Cout:
        out = out[..., :Cout]                      # strip lane padding
    return jnp.transpose(out, (0, 3, 1, 2))        # -> NCHW


# -----------------------------------------------------------------------------
# Plain-JAX reference (mirrors the kernel's precision model: scale folded into
# weights before the low-precision cast, f32 accumulation).
# -----------------------------------------------------------------------------
def conv_block_ref(x_nchw, weight, gamma, beta, mean, var, *,
                   stride, padding, groups, eps=1e-5, cast_dtype=jnp.bfloat16):
    scale, bias = _fold_bn(gamma, beta, mean, var, eps)
    x = jnp.transpose(x_nchw, (0, 2, 3, 1)).astype(cast_dtype).astype(jnp.float32)
    w = jnp.transpose(weight, (2, 3, 1, 0)).astype(jnp.float32) * scale
    w = w.astype(cast_dtype).astype(jnp.float32)
    y = lax.conv_general_dilated(
        x, w, window_strides=(stride, stride),
        padding=((padding, padding), (padding, padding)),
        dimension_numbers=('NHWC', 'HWIO', 'NHWC'),
        feature_group_count=groups, precision=lax.Precision.HIGHEST)
    y = jnp.clip(y + bias, 0.0, 6.0)
    return jnp.transpose(y, (0, 3, 1, 2))


# -----------------------------------------------------------------------------
def _run_case(name, key, *, N, Cin, Cout, H, W, k, stride, padding, groups):
    ks = jax.random.split(key, 6)
    x = jax.random.normal(ks[0], (N, Cin, H, W), jnp.float32)
    w = 0.3 * jax.random.normal(ks[1], (Cout, Cin // groups, k, k), jnp.float32)
    gamma = 1.0 + 0.1 * jax.random.normal(ks[2], (Cout,), jnp.float32)
    beta = 0.1 * jax.random.normal(ks[3], (Cout,), jnp.float32)
    mean = 0.05 * jax.random.normal(ks[4], (Cout,), jnp.float32)
    var = jax.random.uniform(ks[5], (Cout,), jnp.float32, minval=0.5, maxval=1.5)

    out = conv_block_pallas(x, w, gamma, beta, mean, var,
                            stride=stride, padding=padding, groups=groups)
    out = jax.block_until_ready(out)

    ref = conv_block_ref(x, w, gamma, beta, mean, var,
                         stride=stride, padding=padding, groups=groups)
    assert out.shape == ref.shape, (name, out.shape, ref.shape)
    err = float(jnp.max(jnp.abs(out - ref)))
    assert err < 2e-3, (name, err)
    return err


if __name__ == "__main__":
    key = jax.random.PRNGKey(0)
    k1, k2, k3 = jax.random.split(key, 3)
    # ConvBlock(in_c=4, out_c=8, k=3, s=1, p=1)           -- standard 3x3 conv
    _run_case("conv3x3", k1, N=2, Cin=4, Cout=8, H=16, W=16,
              k=3, stride=1, padding=1, groups=1)
    # ConvBlock(in_c=4, out_c=32, k=1)                    -- pointwise conv
    _run_case("conv1x1", k2, N=2, Cin=4, Cout=32, H=16, W=16,
              k=1, stride=1, padding=0, groups=1)
    # ConvBlock(in_c=8, out_c=8, k=3, s=1, p=1, g=8)      -- depthwise conv
    _run_case("conv3x3_dw", k3, N=2, Cin=8, Cout=8, H=16, W=16,
              k=3, stride=1, padding=1, groups=8)
    print("KERNEL_OK")
</pallas_src>

<mosaic_0001>
module attributes {stable_mosaic.version = 11 : i64} {
  func.func @_conv_block_kernel(%arg0: i32, %arg1: i32, %arg2: memref<1x18x18x4xbf16, #tpu.memory_space<vmem>>, %arg3: memref<36x8xbf16, #tpu.memory_space<vmem>>, %arg4: memref<1x8xf32, #tpu.memory_space<vmem>>, %arg5: memref<1x16x16x8xf32, #tpu.memory_space<vmem>>, %arg6: memref<256x36xbf16, #tpu.memory_space<vmem>>) attributes {dimension_semantics = [#tpu.dimension_semantics<parallel>, #tpu.dimension_semantics<parallel>], iteration_bounds = array<i64: 2, 1>, scalar_prefetch = 0 : i64, scratch_operands = 1 : i64, tpu.core_type = #tpu.core_type<tc>, window_params = [{transform_indices = @transform_0, window_bounds = array<i64: 1, 18, 18, 4>}, {pipeline_mode = #tpu.pipeline_mode<synchronous>, transform_indices = @transform_1, window_bounds = array<i64: 36, 8>}, {pipeline_mode = #tpu.pipeline_mode<synchronous>, transform_indices = @transform_2, window_bounds = array<i64: 1, 8>}, {transform_indices = @transform_3, window_bounds = array<i64: 1, 16, 16, 8>}]} {
    %c16_i32 = arith.constant 16 : i32
    %0 = arith.muli %arg1, %c16_i32 : i32
    %1 = tpu.assume_multiple %0, 16 : i32
    %c0_i32 = arith.constant 0 : i32
    %2 = arith.addi %1, %c0_i32 : i32
    %c0 = arith.constant 0 : index
    %3 = arith.index_cast %2 : i32 to index
    %c0_0 = arith.constant 0 : index
    %c0_1 = arith.constant 0 : index
    %4 = vector.load %arg2[%c0, %3, %c0_0, %c0_1] : memref<1x18x18x4xbf16, #tpu.memory_space<vmem>>, vector<1x16x16x4xbf16>
    %5 = vector.shape_cast %4 : vector<1x16x16x4xbf16> to vector<16x16x4xbf16>
    %6 = vector.shape_cast %5 : vector<16x16x4xbf16> to vector<256x4xbf16>
    %c0_2 = arith.constant 0 : index
    %c0_3 = arith.constant 0 : index
    %7 = vector.load %arg6[%c0_2, %c0_3] : memref<256x36xbf16, #tpu.memory_space<vmem>>, vector<256x4xbf16>
    tpu.vector_store %arg6[%c0_2, %c0_3], %6 {strides = array<i32>} : memref<256x36xbf16, #tpu.memory_space<vmem>>, vector<256x4xbf16>,
    %c0_i32_4 = arith.constant 0 : i32
    %8 = arith.addi %1, %c0_i32_4 : i32
    %c0_5 = arith.constant 0 : index
    %9 = arith.index_cast %8 : i32 to index
    %c1 = arith.constant 1 : index
    %c0_6 = arith.constant 0 : index
    %10 = vector.load %arg2[%c0_5, %9, %c1, %c0_6] : memref<1x18x18x4xbf16, #tpu.memory_space<vmem>>, vector<1x16x16x4xbf16>
    %11 = vector.shape_cast %10 : vector<1x16x16x4xbf16> to vector<16x16x4xbf16>
    %12 = vector.shape_cast %11 : vector<16x16x4xbf16> to vector<256x4xbf16>
    %c0_7 = arith.constant 0 : index
    %c4 = arith.constant 4 : index
    %13 = vector.load %arg6[%c0_7, %c4] : memref<256x36xbf16, #tpu.memory_space<vmem>>, vector<256x4xbf16>
    tpu.vector_store %arg6[%c0_7, %c4], %12 {strides = array<i32>} : memref<256x36xbf16, #tpu.memory_space<vmem>>, vector<256x4xbf16>,
    %c0_i32_8 = arith.constant 0 : i32
    %14 = arith.addi %1, %c0_i32_8 : i32
    %c0_9 = arith.constant 0 : index
    %15 = arith.index_cast %14 : i32 to index
    %c2 = arith.constant 2 : index
    %c0_10 = arith.constant 0 : index
    %16 = vector.load %arg2[%c0_9, %15, %c2, %c0_10] : memref<1x18x18x4xbf16, #tpu.memory_space<vmem>>, vector<1x16x16x4xbf16>
    %17 = vector.shape_cast %16 : vector<1x16x16x4xbf16> to vector<16x16x4xbf16>
    %18 = vector.shape_cast %17 : vector<16x16x4xbf16> to vector<256x4xbf16>
    %c0_11 = arith.constant 0 : index
    %c8 = arith.constant 8 : index
    %19 = vector.load %arg6[%c0_11, %c8] : memref<256x36xbf16, #tpu.memory_space<vmem>>, vector<256x4xbf16>
    tpu.vector_store %arg6[%c0_11, %c8], %18 {strides = array<i32>} : memref<256x36xbf16, #tpu.memory_space<vmem>>, vector<256x4xbf16>,
    %c1_i32 = arith.constant 1 : i32
    %20 = arith.addi %1, %c1_i32 : i32
    %c0_12 = arith.constant 0 : index
    %21 = arith.index_cast %20 : i32 to index
    %c0_13 = arith.constant 0 : index
    %c0_14 = arith.constant 0 : index
    %22 = vector.load %arg2[%c0_12, %21, %c0_13, %c0_14] : memref<1x18x18x4xbf16, #tpu.memory_space<vmem>>, vector<1x16x16x4xbf16>
    %23 = vector.shape_cast %22 : vector<1x16x16x4xbf16> to vector<16x16x4xbf16>
    %24 = vector.shape_cast %23 : vector<16x16x4xbf16> to vector<256x4xbf16>
    %c0_15 = arith.constant 0 : index
    %c12 = arith.constant 12 : index
    %25 = vector.load %arg6[%c0_15, %c12] : memref<256x36xbf16, #tpu.memory_space<vmem>>, vector<256x4xbf16>
    tpu.vector_store %arg6[%c0_15, %c12], %24 {strides = array<i32>} : memref<256x36xbf16, #tpu.memory_space<vmem>>, vector<256x4xbf16>,
    %c1_i32_16 = arith.constant 1 : i32
    %26 = arith.addi %1, %c1_i32_16 : i32
    %c0_17 = arith.constant 0 : index
    %27 = arith.index_cast %26 : i32 to index
    %c1_18 = arith.constant 1 : index
    %c0_19 = arith.constant 0 : index
    %28 = vector.load %arg2[%c0_17, %27, %c1_18, %c0_19] : memref<1x18x18x4xbf16, #tpu.memory_space<vmem>>, vector<1x16x16x4xbf16>
    %29 = vector.shape_cast %28 : vector<1x16x16x4xbf16> to vector<16x16x4xbf16>
    %30 = vector.shape_cast %29 : vector<16x16x4xbf16> to vector<256x4xbf16>
    %c0_20 = arith.constant 0 : index
    %c16 = arith.constant 16 : index
    %31 = vector.load %arg6[%c0_20, %c16] : memref<256x36xbf16, #tpu.memory_space<vmem>>, vector<256x4xbf16>
    tpu.vector_store %arg6[%c0_20, %c16], %30 {strides = array<i32>} : memref<256x36xbf16, #tpu.memory_space<vmem>>, vector<256x4xbf16>,
    %c1_i32_21 = arith.constant 1 : i32
    %32 = arith.addi %1, %c1_i32_21 : i32
    %c0_22 = arith.constant 0 : index
    %33 = arith.index_cast %32 : i32 to index
    %c2_23 = arith.constant 2 : index
    %c0_24 = arith.constant 0 : index
    %34 = vector.load %arg2[%c0_22, %33, %c2_23, %c0_24] : memref<1x18x18x4xbf16, #tpu.memory_space<vmem>>, vector<1x16x16x4xbf16>
    %35 = vector.shape_cast %34 : vector<1x16x16x4xbf16> to vector<16x16x4xbf16>
    %36 = vector.shape_cast %35 : vector<16x16x4xbf16> to vector<256x4xbf16>
    %c0_25 = arith.constant 0 : index
    %c20 = arith.constant 20 : index
    %37 = vector.load %arg6[%c0_25, %c20] : memref<256x36xbf16, #tpu.memory_space<vmem>>, vector<256x4xbf16>
    tpu.vector_store %arg6[%c0_25, %c20], %36 {strides = array<i32>} : memref<256x36xbf16, #tpu.memory_space<vmem>>, vector<256x4xbf16>,
    %c2_i32 = arith.constant 2 : i32
    %38 = arith.addi %1, %c2_i32 : i32
    %c0_26 = arith.constant 0 : index
    %39 = arith.index_cast %38 : i32 to index
    %c0_27 = arith.constant 0 : index
    %c0_28 = arith.constant 0 : index
    %40 = vector.load %arg2[%c0_26, %39, %c0_27, %c0_28] : memref<1x18x18x4xbf16, #tpu.memory_space<vmem>>, vector<1x16x16x4xbf16>
    %41 = vector.shape_cast %40 : vector<1x16x16x4xbf16> to vector<16x16x4xbf16>
    %42 = vector.shape_cast %41 : vector<16x16x4xbf16> to vector<256x4xbf16>
    %c0_29 = arith.constant 0 : index
    %c24 = arith.constant 24 : index
    %43 = vector.load %arg6[%c0_29, %c24] : memref<256x36xbf16, #tpu.memory_space<vmem>>, vector<256x4xbf16>
    tpu.vector_store %arg6[%c0_29, %c24], %42 {strides = array<i32>} : memref<256x36xbf16, #tpu.memory_space<vmem>>, vector<256x4xbf16>,
    %c2_i32_30 = arith.constant 2 : i32
    %44 = arith.addi %1, %c2_i32_30 : i32
    %c0_31 = arith.constant 0 : index
    %45 = arith.index_cast %44 : i32 to index
    %c1_32 = arith.constant 1 : index
    %c0_33 = arith.constant 0 : index
    %46 = vector.load %arg2[%c0_31, %45, %c1_32, %c0_33] : memref<1x18x18x4xbf16, #tpu.memory_space<vmem>>, vector<1x16x16x4xbf16>
    %47 = vector.shape_cast %46 : vector<1x16x16x4xbf16> to vector<16x16x4xbf16>
    %48 = vector.shape_cast %47 : vector<16x16x4xbf16> to vector<256x4xbf16>
    %c0_34 = arith.constant 0 : index
    %c28 = arith.constant 28 : index
    %49 = vector.load %arg6[%c0_34, %c28] : memref<256x36xbf16, #tpu.memory_space<vmem>>, vector<256x4xbf16>
    tpu.vector_store %arg6[%c0_34, %c28], %48 {strides = array<i32>} : memref<256x36xbf16, #tpu.memory_space<vmem>>, vector<256x4xbf16>,
    %c2_i32_35 = arith.constant 2 : i32
    %50 = arith.addi %1, %c2_i32_35 : i32
    %c0_36 = arith.constant 0 : index
    %51 = arith.index_cast %50 : i32 to index
    %c2_37 = arith.constant 2 : index
    %c0_38 = arith.constant 0 : index
    %52 = vector.load %arg2[%c0_36, %51, %c2_37, %c0_38] : memref<1x18x18x4xbf16, #tpu.memory_space<vmem>>, vector<1x16x16x4xbf16>
    %53 = vector.shape_cast %52 : vector<1x16x16x4xbf16> to vector<16x16x4xbf16>
    %54 = vector.shape_cast %53 : vector<16x16x4xbf16> to vector<256x4xbf16>
    %c0_39 = arith.constant 0 : index
    %c32 = arith.constant 32 : index
    %55 = vector.load %arg6[%c0_39, %c32] : memref<256x36xbf16, #tpu.memory_space<vmem>>, vector<256x4xbf16>
    tpu.vector_store %arg6[%c0_39, %c32], %54 {strides = array<i32>} : memref<256x36xbf16, #tpu.memory_space<vmem>>, vector<256x4xbf16>,
    %c0_40 = arith.constant 0 : index
    %c0_41 = arith.constant 0 : index
    %56 = vector.load %arg6[%c0_40, %c0_41] : memref<256x36xbf16, #tpu.memory_space<vmem>>, vector<256x36xbf16>
    %c0_42 = arith.constant 0 : index
    %c0_43 = arith.constant 0 : index
    %57 = vector.load %arg3[%c0_42, %c0_43] : memref<36x8xbf16, #tpu.memory_space<vmem>>, vector<36x8xbf16>
    %cst = arith.constant dense<0.000000e+00> : vector<256x8xf32>
    %58 = tpu.matmul %56, %57, %cst {dimension_numbers = #tpu.dot_dimension_numbers<[1], [0], [0], [1], [0, 0, 1, 1], [], []>} : vector<256x36xbf16>, vector<36x8xbf16>, vector<256x8xf32> -> vector<256x8xf32>
    %c0_44 = arith.constant 0 : index
    %c0_45 = arith.constant 0 : index
    %59 = vector.load %arg4[%c0_44, %c0_45] : memref<1x8xf32, #tpu.memory_space<vmem>>, vector<1x8xf32>
    %60 = vector.broadcast %59 : vector<1x8xf32> to vector<256x8xf32>
    %61 = arith.addf %58, %60 : vector<256x8xf32>
    %cst_46 = arith.constant 0.000000e+00 : f32
    %cst_47 = arith.constant 6.000000e+00 : f32
    %62 = vector.broadcast %cst_46 : f32 to vector<256x8xf32>
    %63 = arith.maximumf %62, %61 : vector<256x8xf32>
    %64 = vector.broadcast %cst_47 : f32 to vector<256x8xf32>
    %65 = arith.minimumf %64, %63 : vector<256x8xf32>
    %66 = vector.shape_cast %65 : vector<256x8xf32> to vector<16x16x8xf32>
    %c0_48 = arith.constant 0 : index
    %c0_49 = arith.constant 0 : index
    %c0_50 = arith.constant 0 : index
    %c0_51 = arith.constant 0 : index
    %67 = vector.load %arg5[%c0_48, %c0_49, %c0_50, %c0_51] : memref<1x16x16x8xf32, #tpu.memory_space<vmem>>, vector<1x16x16x8xf32>
    %68 = vector.shape_cast %67 : vector<1x16x16x8xf32> to vector<16x16x8xf32>
    %69 = vector.shape_cast %66 : vector<16x16x8xf32> to vector<1x16x16x8xf32>
    tpu.vector_store %arg5[%c0_48, %c0_49, %c0_50, %c0_51], %69 {strides = array<i32>} : memref<1x16x16x8xf32, #tpu.memory_space<vmem>>, vector<1x16x16x8xf32>,
    return
  }
  func.func @transform_0(%arg0: i32, %arg1: i32) -> (i32, i32, i32, i32) {
    %c0_i32 = arith.constant 0 : i32
    %c0_i32_0 = arith.constant 0 : i32
    %c0_i32_1 = arith.constant 0 : i32
    %c0_i32_2 = arith.constant 0 : i32
    return %arg0, %c0_i32, %c0_i32_0, %c0_i32_1 : i32, i32, i32, i32
  }
  func.func @transform_1(%arg0: i32, %arg1: i32) -> (i32, i32) {
    %c0_i32 = arith.constant 0 : i32
    %c0_i32_0 = arith.constant 0 : i32
    %c0_i32_1 = arith.constant 0 : i32
    return %c0_i32, %c0_i32_0 : i32, i32
  }
  func.func @transform_2(%arg0: i32, %arg1: i32) -> (i32, i32) {
    %c0_i32 = arith.constant 0 : i32
    %c0_i32_0 = arith.constant 0 : i32
    %c0_i32_1 = arith.constant 0 : i32
    return %c0_i32, %c0_i32_0 : i32, i32
  }
  func.func @transform_3(%arg0: i32, %arg1: i32) -> (i32, i32, i32, i32) {
    %c0_i32 = arith.constant 0 : i32
    %c0_i32_0 = arith.constant 0 : i32
    %c0_i32_1 = arith.constant 0 : i32
    return %arg0, %arg1, %c0_i32, %c0_i32_0 : i32, i32, i32, i32
  }
}

</mosaic_0001>

<bundles_post_ra>
// kernel: tpu_custom_call.1
= control target key start
LH: loop header
LB: loop body
LE: loop exit
PB: predicated region body
PF: predicated region fallthrough
CT: control target
= control target key end

     0   :  { %s4348_s12 = smov 0   ;;  %s4350_s13 = smov 0   ;;  %s5909_s0 = inlined_call_operand.vmem [shape: bf16[2,18,18,4], index: 0, kind: input, shape index: {}]   ;;  %s5910_s1 = inlined_call_operand.vmem [shape: bf16[36,8], index: 1, kind: input, shape index: {}]   ;;  %s5911_s2 = inlined_call_operand.vmem [shape: f32[1,8], index: 2, kind: input, shape index: {}]   ;;  %s5912_s3 = inlined_call_operand.vmem [shape: f32[2,16,16,8], index: 3, kind: output, shape index: {}]  }
   0x1   :  { %s4352_s14 = smov 0  }
   0x2 LB: > { %s25_s15 = sadd.s32 1, %s4314_s13  ;;  %p3836_p0 = scmp.ge.s32.totalorder %s4318_s14, 1  ;;  %s4318_s14 = sphi %s4352_s14, %s13_s14   ;;  %s4314_s13 = sphi %s4350_s13, %s5918_s13   ;;  %s4310_s12 = sphi %s4348_s12, %s5917_s12  }
   0x3   : > { %p27_p1 = scmp.ge.s32.totalorder %s25_s15, 2  ;;  %p151_p2 = scmp.lt.s32.totalorder %s4318_s14, 3 }
   0x5   : > { %s5920_s15 = smov (%p27_p1, %s25_s15), 0  ;;  %p152_p3 = pnand %p3836_p0, %p151_p2 }
   0x6   : > { %p180_p4 = scmp.lt.s32.totalorder (!%p152_p3), %s4310_s12, 1  ;;  %s4320_s20 = smov (!%p152_p3), 4  }
   0x7   : > { %155 = sbr.rel (%p152_p3) target bundleno = 971 (0x3cb), region = 32  ;;  %s4321_s21 = smov (!%p152_p3), 8  }
   0x8   : > { %s4322_s22 = smov (!%p152_p3), 12   ;;  %s4323_s23 = smov (!%p152_p3), 16  }
   0x9   : > { %s4324_s24 = smov (!%p152_p3), 20   ;;  %s4325_s25 = smov (!%p152_p3), 24  }
   0xa   : > { %s4326_s26 = smov (!%p152_p3), 28   ;;  %s4327_s27 = smov (!%p152_p3), 32  }
   0xc   : > { %s5922_s12 = smov (!%p180_p4, %s4310_s12), 1  ;;  %vm314_vm0 = vsmask.f32 3328  ;;  %vm315_vm1 = vsmask.f32 7440  ;;  %vm926_vm3 = vcmask 1042432  }
   0xd   : > { %s4262_s16 = smul.u32 216, %s5922_s12  ;;  %vm4383_vm2 = vmor %vm314_vm0, %vm315_vm1  ;;  %vm927_vm4 = vcmask 1046532   ;;  %vm233_vm5 = vcmask 27648   ;;  %vm797_vm7 = vcmask 60448   ;;  %vm1137_vm8 = vcmask 93248   ;;  %s4234_s9 = sshll.u32 %s5922_s12, 8 }
   0xe   : > { %vm4558_vm6 = vmor %vm926_vm3, %vm927_vm4  ;;  %vm1334_vm9 = vcmask 126048   ;;  %vm1895_vm10 = vcmask 158848   ;;  %vm2232_vm11 = vcmask 191648   ;;  %vm2429_vm12 = vcmask 224448  }
   0xf   : > { %s4372_s19 = scalar_lea.vmem %s5909_s0, %s4262_s16  ;;  %vm3545_vm13 = vcmask 1041408   ;;  %vm2990_vm14 = vcmask 257248   ;;  %vm3327_vm15 = vcmask 290048   ;;  %vm3496_vm0 = vcmask 293888   ;;  %s5781_s16 = scalar_lea.vmem %s5912_s3, %s4234_s9 }
  0x10   : > { %v269_v0 = vld [vmem:[%s4372_s19 + $0xc] sm:$0xf]  ;;  %v270_v1 = vld [vmem:[%s4372_s19 + $0x10] sm:$0xf]  ;;  %v266_v2 = vld [vmem:[%s4372_s19] sm:$0xf] }
  0x11   : > { %v342_v3 = vshrl.u32 %v269_v0, 16  ;;  %v345_v4 = vshll.u32 %v269_v0, 16  ;;  %v351_v5 = vshll.u32 %v270_v1, 16  ;;  %v355_v6 = vshrl.u32 %v270_v1, 16  ;;  %v267_v7 = vld [vmem:[%s4372_s19 + $0x4] sm:$0xf] }
  0x12   : > { %v318_v8 = vshrl.u32 %v266_v2, 16  ;;  %v321_v9 = vshll.u32 %v266_v2, 16  ;;  %v327_v10 = vshll.u32 %v267_v7, 16  ;;  %v331_v11 = vshrl.u32 %v267_v7, 16  ;;  %v271_v12 = vld [vmem:[%s4372_s19 + $0x14] sm:$0x1] }
  0x13   : > { %v344_v13 = vrot.slane %v342_v3, 4  ;;  %v347_v14 = vrot.slane %v345_v4, 5  ;;  %v353_v15 = vrot.slane %v351_v5, 5  ;;  %v357_v16 = vrot.slane %v355_v6, 4  ;;  %v268_v17 = vld [vmem:[%s4372_s19 + $0x8] sm:$0x1] }
  0x14   : > { %v320_v18 = vrot.slane %v318_v8, 4  ;;  %v323_v19 = vrot.slane %v321_v9, 5  ;;  %v333_v20 = vrot.slane %v331_v11, 4  ;;  %v276_v21 = vld [vmem:[%s4372_s19 + $0x28] sm:$0xf]  ;;  %v361_v24 = vshll.u32 %v271_v12, 16 }
  0x15   : > { %v348_v22 = vor.u32 %v347_v14, %v344_v13  ;;  %v358_v23 = vor.u32 %v357_v16, %v353_v15  ;;  %v329_v27 = vrot.slane %v327_v10, 5  ;;  %v399_v28 = vshll.u32 %v276_v21, 16  ;;  %v275_v30 = vld [vmem:[%s4372_s19 + $0x24] sm:$0xf]  ;;  %v272_v35 = vld [vmem:[%s4372_s19 + $0x18] sm:$0xf] }
  0x16   : > { %v324_v26 = vor.u32 %v323_v19, %v320_v18  ;;  %v403_v29 = vshrl.u32 %v276_v21, 16  ;;  %v337_v32 = vshll.u32 %v268_v17, 16  ;;  %v363_v38 = vrot.slane %v361_v24, 5  ;;  %v273_v40 = vld [vmem:[%s4372_s19 + $0x1c] sm:$0xf] }
  0x17   : > { %v349_v31 = vrot.slane %v348_v22, 4  ;;  %v334_v34 = vor.u32 %v333_v20, %v329_v27  ;;  %v359_v37 = vrot.slane %v358_v23, 4  ;;  %v390_v39 = vshrl.u32 %v275_v30, 16  ;;  %v277_v42 = vld [vmem:[%s4372_s19 + $0x2c] sm:$0x1] }
  0x18   : > { %v325_v33 = vrot.slane %v324_v26, 4  ;;  %v4396_v43 = vrot.slane %v399_v28, 5  ;;  %v405_v44 = vrot.slane %v403_v29, 4  ;;  %v393_v45 = vshll.u32 %v275_v30, 16  ;;  %v281_v50 = vld [vmem:[%s4372_s19 + $0x3c] sm:$0xf] }
  0x19   : > { %v354_v36 = vsel %vm4383_vm2, %v349_v31, %v353_v15  ;;  %v339_v46 = vrot.slane %v337_v32, 5  ;;  %v392_v47 = vrot.slane %v390_v39, 4  ;;  %v366_v48 = vshrl.u32 %v272_v35, 16  ;;  %v279_v58 = vld [vmem:[%s4372_s19 + $0x34] sm:$0xf] }
  0x1a   : > { %705 = vrot.lane.b32.xlu1 %v354_v36, %s4320_s20  ;;  %v330_v41 = vsel %vm4383_vm2, %v325_v33, %v329_v27  ;;  %v369_v49 = vshll.u32 %v272_v35, 16  ;;  %v335_v51 = vrot.slane %v334_v34, 4  ;;  %v395_v52 = vrot.slane %v393_v45, 5  ;;  %v274_v6 = vld [vmem:[%s4372_s19 + $0x20] sm:$0x1] }
  0x1b   : > { %701 = vrot.lane.b32.xlu0 %v330_v41, %s4320_s20  ;;  %v375_v53 = vshll.u32 %v273_v40, 16  ;;  %v379_v54 = vshrl.u32 %v273_v40, 16  ;;  %v409_v55 = vshll.u32 %v277_v42, 16  ;;  %v368_v56 = vrot.slane %v366_v48, 4  ;;  %v282_v15 = vld [vmem:[%s4372_s19 + $0x40] sm:$0xf] }
  0x1c   : > { %v371_v57 = vrot.slane %v369_v49, 5  ;;  %v406_v59 = vor.u32 %v405_v44, %v4396_v43  ;;  %v438_v61 = vshrl.u32 %v281_v50, 16  ;;  %v441_v62 = vshll.u32 %v281_v50, 16  ;;  %v280_v16 = vld [vmem:[%s4372_s19 + $0x38] sm:$0x1] }
  0x1d   : > { %v381_v60 = vrot.slane %v379_v54, 4  ;;  %v364_v63 = vsel %vm4383_vm2, %v359_v37, %v363_v38  ;;  %v396_v0 = vor.u32 %v395_v52, %v392_v47  ;;  %v377_v2 = vrot.slane %v375_v53, 5  ;;  %v285_v20 = vld [vmem:[%s4372_s19 + $0x4c] sm:$0xf]  ;;  %v278_v21 = vld [vmem:[%s4372_s19 + $0x30] sm:$0xf] }
  0x1e   : > { %v372_v1 = vor.u32 %v371_v57, %v368_v56  ;;  %v340_v3 = vsel %vm4383_vm2, %v335_v51, %v339_v46  ;;  %v423_v4 = vshll.u32 %v279_v58, 16  ;;  %v427_v5 = vshrl.u32 %v279_v58, 16  ;;  %v284_v24 = vld [vmem:[%s4372_s19 + $0x48] sm:$0xf]  ;;  %v290_v47 = vld [vmem:[%s4372_s19 + $0x60] sm:$0xf] }
  0x1f   : > { %v411_v7 = vrot.slane %v409_v55, 5  ;;  %v407_v9 = vrot.slane %v406_v59, 4  ;;  %v440_v10 = vrot.slane %v438_v61, 4  ;;  %v443_v11 = vrot.slane %v441_v62, 5  ;;  %v286_v49 = vld [vmem:[%s4372_s19 + $0x50] sm:$0x1] }
  0x20   : > { %v373_v8 = vrot.slane %v372_v1, 4  ;;  %v382_v12 = vor.u32 %v381_v60, %v377_v2  ;;  %v397_v13 = vrot.slane %v396_v0, 4  ;;  %v385_v17 = vshll.u32 %v274_v6, 16  ;;  %v288_v53 = vld [vmem:[%s4372_s19 + $0x58] sm:$0xf] }
  0x21   : > { %v4414_v18 = vrot.slane %v423_v4, 5  ;;  %v429_v19 = vrot.slane %v427_v5, 4  ;;  %v412_v26 = vsel %vm4383_vm2, %v407_v9, %v411_v7  ;;  %v444_v27 = vor.u32 %v443_v11, %v440_v10  ;;  %v283_v58 = vld [vmem:[%s4372_s19 + $0x44] sm:$0x1]  ;;  %v294_v11 = vld [vmem:[%s4372_s19 + $0x70] sm:$0xf] }
  0x22   : > { %707 = vrot.lane.b32.xlu1 %v364_v63, %s4320_s20  ;;  %v378_v14 = vsel %vm4383_vm2, %v373_v8, %v377_v2  ;;  %v383_v22 = vrot.slane %v382_v12, 4  ;;  %v387_v23 = vrot.slane %v385_v17, 5  ;;  %v447_v28 = vshll.u32 %v282_v15, 16  ;;  %v287_v2 = vld [vmem:[%s4372_s19 + $0x54] sm:$0xf] }
  0x23   : > { %703 = vrot.lane.b32.xlu0 %v340_v3, %s4320_s20  ;;  %709 = vrot.lane.b32.xlu2 %v378_v14, %s4320_s20  ;;  %v433_v29 = vshll.u32 %v280_v16, 16  ;;  %v402_v30 = vsel %vm4383_vm2, %v397_v13, %v4396_v43  ;;  %v471_v31 = vshll.u32 %v285_v20, 16  ;;  %v475_v32 = vshrl.u32 %v285_v20, 16  ;;  %v291_v6 = vld [vmem:[%s4372_s19 + $0x64] sm:$0xf] }
  0x24   : > { %v414_v33 = vshrl.u32 %v278_v21, 16  ;;  %v430_v34 = vor.u32 %v429_v19, %v4414_v18  ;;  %v462_v35 = vshrl.u32 %v284_v24, 16  ;;  %v465_v36 = vshll.u32 %v284_v24, 16  ;;  %v293_v20 = vld [vmem:[%s4372_s19 + $0x6c] sm:$0xf] }
  0x25   : > { %v417_v37 = vshll.u32 %v278_v21, 16  ;;  %v451_v38 = vshrl.u32 %v282_v15, 16  ;;  %v388_v39 = vsel %vm4383_vm2, %v383_v22, %v387_v23  ;;  %v449_v41 = vrot.slane %v447_v28, 5  ;;  %v289_v15 = vld [vmem:[%s4372_s19 + $0x5c] sm:$0x1] }
  0x26   : > { %v416_v40 = vrot.slane %v414_v33, 4  ;;  %v445_v43 = vrot.slane %v444_v27, 4  ;;  %v435_v44 = vrot.slane %v433_v29, 5  ;;  %v4429_v45 = vrot.slane %v471_v31, 5 }
  0x27   : > { %v419_v42 = vrot.slane %v417_v37, 5  ;;  %v477_v46 = vrot.slane %v475_v32, 4  ;;  %v431_v48 = vrot.slane %v430_v34, 4  ;;  %v464_v50 = vrot.slane %v462_v35, 4 }
  0x28   : > { %v467_v51 = vrot.slane %v465_v36, 5  ;;  %v453_v54 = vrot.slane %v451_v38, 4  ;;  %v510_v56 = vshrl.u32 %v290_v47, 16  ;;  %v513_v57 = vshll.u32 %v290_v47, 16  ;;  %v297_v47 = vld [vmem:[%s4372_s19 + $0x7c] sm:$0xf] }
  0x29   : > { %v420_v52 = vor.u32 %v419_v42, %v416_v40  ;;  %v450_v59 = vsel %vm4383_vm2, %v445_v43, %v449_v41  ;;  %v478_v60 = vor.u32 %v477_v46, %v4429_v45  ;;  %v481_v61 = vshll.u32 %v286_v49, 16  ;;  %v299_v42 = vld [vmem:[%s4372_s19 + $0x84] sm:$0xf]  ;;  %v292_v49 = vld [vmem:[%s4372_s19 + $0x68] sm:$0x1] }
  0x2a   : > { %715 = vrot.lane.b32.xlu1 %v412_v26, %s4320_s20  ;;  %v436_v62 = vsel %vm4383_vm2, %v431_v48, %v435_v44  ;;  %v468_v63 = vor.u32 %v467_v51, %v464_v50  ;;  %v495_v0 = vshll.u32 %v288_v53, 16  ;;  %v499_v1 = vshrl.u32 %v288_v53, 16 }
  0x2b   : > { %713 = vrot.lane.b32.xlu0 %v402_v30, %s4320_s20  ;;  %711 = vrot.lane.b32.xlu2 %v388_v39, %s4320_s20  ;;  %v421_v55 = vrot.slane %v420_v52, 4  ;;  %v454_v4 = vor.u32 %v453_v54, %v449_v41  ;;  %v457_v5 = vshll.u32 %v283_v58, 16  ;;  %v512_v7 = vrot.slane %v510_v56, 4  ;;  %v295_v41 = vld [vmem:[%s4372_s19 + $0x74] sm:$0x1] }
  0x2c   : > { %v515_v8 = vrot.slane %v513_v57, 5  ;;  %v479_v9 = vrot.slane %v478_v60, 4  ;;  %v483_v10 = vrot.slane %v481_v61, 5  ;;  %v486_v12 = vshrl.u32 %v287_v2, 16  ;;  %v296_v54 = vld [vmem:[%s4372_s19 + $0x78] sm:$0xf] }
  0x2d   : > { %v426_v3 = vsel %vm4383_vm2, %v421_v55, %v4414_v18  ;;  %v489_v13 = vshll.u32 %v287_v2, 16  ;;  %v469_v14 = vrot.slane %v468_v63, 4  ;;  %v4451_v16 = vrot.slane %v495_v0, 5 }
  0x2e   : > { %v501_v17 = vrot.slane %v499_v1, 4  ;;  %v455_v18 = vrot.slane %v454_v4, 4  ;;  %v459_v19 = vrot.slane %v457_v5, 5  ;;  %v488_v21 = vrot.slane %v486_v12, 4  ;;  %v300_v4 = vld [vmem:[%s4372_s19 + $0x88] sm:$0xf] }
  0x2f   : > { %v491_v22 = vrot.slane %v489_v13, 5  ;;  %v516_v23 = vor.u32 %v515_v8, %v512_v7  ;;  %v519_v24 = vshll.u32 %v291_v6, 16  ;;  %v543_v26 = vshll.u32 %v294_v11, 16 }
  0x30   : > { %v547_v27 = vshrl.u32 %v294_v11, 16  ;;  %v484_v28 = vsel %vm4383_vm2, %v479_v9, %v483_v10  ;;  %v505_v29 = vshll.u32 %v289_v15, 16  ;;  %v474_v30 = vsel %vm4383_vm2, %v469_v14, %v4429_v45  ;;  %v303_v9 = vld [vmem:[%s4372_s19 + $0x94] sm:$0xf]  ;;  %v298_v11 = vld [vmem:[%s4372_s19 + $0x80] sm:$0x1] }
  0x31   : > { %v502_v31 = vor.u32 %v501_v17, %v4451_v16  ;;  %v534_v32 = vshrl.u32 %v293_v20, 16  ;;  %v537_v33 = vshll.u32 %v293_v20, 16  ;;  %v523_v34 = vshrl.u32 %v291_v6, 16  ;;  %v302_v14 = vld [vmem:[%s4372_s19 + $0x90] sm:$0xf] }
  0x32   : > { %721 = vrot.lane.b32.xlu1 %v450_v59, %s4320_s20  ;;  %v460_v35 = vsel %vm4383_vm2, %v455_v18, %v459_v19  ;;  %v492_v36 = vor.u32 %v491_v22, %v488_v21  ;;  %v517_v37 = vrot.slane %v516_v23, 4  ;;  %v521_v38 = vrot.slane %v519_v24, 5 }
  0x33   : > { %719 = vrot.lane.b32.xlu0 %v436_v62, %s4320_s20  ;;  %717 = vrot.lane.b32.xlu2 %v426_v3, %s4320_s20  ;;  %v4463_v39 = vrot.slane %v543_v26, 5  ;;  %v549_v40 = vrot.slane %v547_v27, 4  ;;  %v503_v43 = vrot.slane %v502_v31, 4  ;;  %v507_v44 = vrot.slane %v505_v29, 5 }
  0x34   : > { %v536_v45 = vrot.slane %v534_v32, 4  ;;  %v539_v46 = vrot.slane %v537_v33, 5  ;;  %v493_v48 = vrot.slane %v492_v36, 4  ;;  %v525_v50 = vrot.slane %v523_v34, 4 }
  0x35   : > { %v522_v51 = vsel %vm4383_vm2, %v517_v37, %v521_v38  ;;  %v550_v52 = vor.u32 %v549_v40, %v4463_v39  ;;  %v553_v53 = vshll.u32 %v295_v41, 16  ;;  %v582_v55 = vshrl.u32 %v299_v42, 16  ;;  %v304_v37 = vld [vmem:[%s4372_s19 + $0x98] sm:$0x1]  ;;  %v308_v40 = vld [vmem:[%s4372_s19 + $0xa8] sm:$0xf] }
  0x36   : > { %v585_v56 = vshll.u32 %v299_v42, 16  ;;  %v567_v57 = vshll.u32 %v297_v47, 16  ;;  %v571_v58 = vshrl.u32 %v297_v47, 16  ;;  %v508_v59 = vsel %vm4383_vm2, %v503_v43, %v507_v44  ;;  %v306_v42 = vld [vmem:[%s4372_s19 + $0xa0] sm:$0xf] }
  0x37   : > { %v540_v60 = vor.u32 %v539_v46, %v536_v45  ;;  %v529_v61 = vshll.u32 %v292_v49, 16  ;;  %v498_v62 = vsel %vm4383_vm2, %v493_v48, %v4451_v16  ;;  %v526_v63 = vor.u32 %v525_v50, %v521_v38  ;;  %v301_v43 = vld [vmem:[%s4372_s19 + $0x8c] sm:$0x1]  ;;  %v305_v47 = vld [vmem:[%s4372_s19 + $0x9c] sm:$0xf] }
  0x38   : > { %v558_v0 = vshrl.u32 %v296_v54, 16  ;;  %v561_v1 = vshll.u32 %v296_v54, 16  ;;  %v551_v2 = vrot.slane %v550_v52, 4  ;;  %v555_v3 = vrot.slane %v553_v53, 5 }
  0x39   : > { %v584_v5 = vrot.slane %v582_v55, 4  ;;  %v587_v6 = vrot.slane %v585_v56, 5  ;;  %v4483_v7 = vrot.slane %v567_v57, 5  ;;  %v573_v8 = vrot.slane %v571_v58, 4 }
  0x3a   : > { %727 = vrot.lane.b32.xlu1 %v484_v28, %s4320_s20  ;;  %v541_v10 = vrot.slane %v540_v60, 4  ;;  %v527_v12 = vrot.slane %v526_v63, 4  ;;  %v531_v13 = vrot.slane %v529_v61, 5  ;;  %v560_v15 = vrot.slane %v558_v0, 4 }
  0x3b   : > { %725 = vrot.lane.b32.xlu0 %v474_v30, %s4320_s20  ;;  %723 = vrot.lane.b32.xlu2 %v460_v35, %s4320_s20  ;;  %v563_v16 = vrot.slane %v561_v1, 5  ;;  %v591_v17 = vshll.u32 %v300_v4, 16  ;;  %v615_v18 = vshll.u32 %v303_v9, 16  ;;  %v619_v19 = vshrl.u32 %v303_v9, 16  ;;  %v307_v1 = vld [vmem:[%s4372_s19 + $0xa4] sm:$0x1] }
  0x3c   : > { %v556_v20 = vsel %vm4383_vm2, %v551_v2, %v555_v3  ;;  %v588_v21 = vor.u32 %v587_v6, %v584_v5  ;;  %v574_v22 = vor.u32 %v573_v8, %v4483_v7  ;;  %v577_v23 = vshll.u32 %v298_v11, 16  ;;  %v312_v5 = vld [vmem:[%s4372_s19 + $0xb8] sm:$0xf]  ;;  %v311_v8 = vld [vmem:[%s4372_s19 + $0xb4] sm:$0xf] }
  0x3d   : > { %v546_v24 = vsel %vm4383_vm2, %v541_v10, %v4463_v39  ;;  %v606_v26 = vshrl.u32 %v302_v14, 16  ;;  %v609_v27 = vshll.u32 %v302_v14, 16  ;;  %v595_v28 = vshrl.u32 %v300_v4, 16 }
  0x3e   : > { %v532_v29 = vsel %vm4383_vm2, %v527_v12, %v531_v13  ;;  %v564_v30 = vor.u32 %v563_v16, %v560_v15  ;;  %v4498_v31 = vrot.slane %v615_v18, 5  ;;  %v621_v32 = vrot.slane %v619_v19, 4 }
  0x3f   : > { %v589_v33 = vrot.slane %v588_v21, 4  ;;  %v593_v34 = vrot.slane %v591_v17, 5  ;;  %v575_v35 = vrot.slane %v574_v22, 4  ;;  %v579_v36 = vrot.slane %v577_v23, 5 }
  0x40   : > { %v608_v38 = vrot.slane %v606_v26, 4  ;;  %v611_v39 = vrot.slane %v609_v27, 5  ;;  %v565_v41 = vrot.slane %v564_v30, 4  ;;  %v597_v44 = vrot.slane %v595_v28, 4 }
  0x41   : > { %v622_v45 = vor.u32 %v621_v32, %v4498_v31  ;;  %v625_v46 = vshll.u32 %v304_v37, 16  ;;  %v594_v48 = vsel %vm4383_vm2, %v589_v33, %v593_v34  ;;  %v580_v49 = vsel %vm4383_vm2, %v575_v35, %v579_v36  ;;  %v310_v36 = vld [vmem:[%s4372_s19 + $0xb0] sm:$0x1] }
  0x42   : > { %733 = vrot.lane.b32.xlu1 %v522_v51, %s4320_s20  ;;  %v654_v50 = vshrl.u32 %v308_v40, 16  ;;  %v657_v51 = vshll.u32 %v308_v40, 16  ;;  %v612_v52 = vor.u32 %v611_v39, %v608_v38  ;;  %v639_v53 = vshll.u32 %v306_v42, 16 }
  0x43   : > { %731 = vrot.lane.b32.xlu0 %v508_v59, %s4320_s20  ;;  %729 = vrot.lane.b32.xlu2 %v498_v62, %s4320_s20  ;;  %v643_v54 = vshrl.u32 %v306_v42, 16  ;;  %v601_v55 = vshll.u32 %v301_v43, 16  ;;  %v570_v56 = vsel %vm4383_vm2, %v565_v41, %v4483_v7  ;;  %v598_v57 = vor.u32 %v597_v44, %v593_v34  ;;  %v309_v62 = vld [vmem:[%s4372_s19 + $0xac] sm:$0xf] }
  0x44   : > { %v630_v58 = vshrl.u32 %v305_v47, 16  ;;  %v633_v59 = vshll.u32 %v305_v47, 16  ;;  %v623_v60 = vrot.slane %v622_v45, 4  ;;  %v627_v61 = vrot.slane %v625_v46, 5 }
  0x45   : > { %v656_v63 = vrot.slane %v654_v50, 4  ;;  %v659_v0 = vrot.slane %v657_v51, 5  ;;  %v613_v2 = vrot.slane %v612_v52, 4  ;;  %v641_v3 = vrot.slane %v639_v53, 5  ;;  %v833_v51 = vld [vmem:[%s4372_s19 + $0xc] sm:$0xe] }
  0x46   : > { %v645_v4 = vrot.slane %v643_v54, 4  ;;  %v599_v6 = vrot.slane %v598_v57, 4  ;;  %v603_v7 = vrot.slane %v601_v55, 5  ;;  %v632_v9 = vrot.slane %v630_v58, 4  ;;  %v834_v53 = vld [vmem:[%s4372_s19 + $0x10] sm:$0xf] }
  0x47   : > { %v635_v10 = vrot.slane %v633_v59, 5  ;;  %v628_v11 = vsel %vm4383_vm2, %v623_v60, %v627_v61  ;;  %v663_v12 = vshll.u32 %v309_v62, 16  ;;  %v660_v13 = vor.u32 %v659_v0, %v656_v63  ;;  %v832_v54 = vld [vmem:[%s4372_s19 + $0x8] sm:$0x1]  ;;  %v830_v61 = vld [vmem:[%s4372_s19] sm:$0xe] }
  0x48   : > { %v649_v14 = vshll.u32 %v307_v1, 16  ;;  %v687_v15 = vshll.u32 %v312_v5, 16  ;;  %v691_v16 = vshrl.u32 %v312_v5, 16  ;;  %v618_v17 = vsel %vm4383_vm2, %v613_v2, %v4498_v31  ;;  %v313_v31 = vld [vmem:[%s4372_s19 + $0xbc] sm:$0x1] }
  0x49   : > { %v646_v18 = vor.u32 %v645_v4, %v641_v3  ;;  %v678_v19 = vshrl.u32 %v311_v8, 16  ;;  %v667_v21 = vshrl.u32 %v309_v62, 16  ;;  %v604_v22 = vsel %vm4383_vm2, %v599_v6, %v603_v7  ;;  %v837_v63 = vld [vmem:[%s4372_s19 + $0x1c] sm:$0xf]  ;;  %v205_v0 = vld [vmem:[%s4372_s19 + $0x18] sm:$0xf] }
  0x4a   : > { %739 = vrot.lane.b32.xlu1 %v556_v20, %s4320_s20  ;;  %v681_v20 = vshll.u32 %v311_v8, 16  ;;  %v636_v23 = vor.u32 %v635_v10, %v632_v9  ;;  %v665_v26 = vrot.slane %v663_v12, 5  ;;  %v689_v27 = vrot.slane %v687_v15, 5  ;;  %238 = vst.msk [vmem:[#allocation2 + $0x10] sm:$0xf] %vm233_vm5, %v205_v0 }
  0x4b   : > { %737 = vrot.lane.b32.xlu0 %v546_v24, %s4320_s20  ;;  %735 = vrot.lane.b32.xlu2 %v532_v29, %s4320_s20  ;;  %v661_v24 = vrot.slane %v660_v13, 4  ;;  %v693_v28 = vrot.slane %v691_v16, 4  ;;  %v647_v29 = vrot.slane %v646_v18, 4  ;;  %v651_v30 = vrot.slane %v649_v14, 5  ;;  %v203_v2 = vld [vmem:[%s4372_s19 + $0xc] sm:$0xf] }
  0x4c   : > { %v680_v32 = vrot.slane %v678_v19, 4  ;;  %v683_v33 = vrot.slane %v681_v20, 5  ;;  %v637_v34 = vrot.slane %v636_v23, 4  ;;  %v669_v35 = vrot.slane %v667_v21, 4  ;;  %236 = vst.msk [vmem:[#allocation2 + $0x8] sm:$0xf] %vm233_vm5, %v203_v2 }
  0x4d   : > { %v666_v37 = vsel %vm4383_vm2, %v661_v24, %v665_v26  ;;  %v694_v38 = vor.u32 %v693_v28, %v689_v27  ;;  %v697_v39 = vshll.u32 %v313_v31, 16  ;;  %v652_v40 = vsel %vm4383_vm2, %v647_v29, %v651_v30  ;;  %v838_v6 = vld [vmem:[%s4372_s19 + $0x20] sm:$0x1]  ;;  %v836_v9 = vld [vmem:[%s4372_s19 + $0x18] sm:$0xe] }
  0x4e   : > { %v684_v41 = vor.u32 %v683_v33, %v680_v32  ;;  %v642_v42 = vsel %vm4383_vm2, %v637_v34, %v641_v3  ;;  %v670_v43 = vor.u32 %v669_v35, %v665_v26  ;;  %v673_v44 = vshll.u32 %v310_v36, 16  ;;  %v201_v3 = vld [vmem:[%s4372_s19] sm:$0xf]  ;;  %v835_v12 = vld [vmem:[%s4372_s19 + $0x14] sm:$0x1] }
  0x4f   : > { %v695_v45 = vrot.slane %v694_v38, 4  ;;  %v699_v46 = vrot.slane %v697_v39, 5  ;;  %v3841_v58 = vrot.slane %v833_v51, 9  ;;  %v938_v59 = vrot.slane %v834_v53, 5  ;;  %234 = vst.msk [vmem:[#allocation2] sm:$0xf] %vm233_vm5, %v201_v3 }
  0x50   : > { %v685_v47 = vrot.slane %v684_v41, 4  ;;  %v675_v50 = vrot.slane %v673_v44, 5  ;;  %v934_v60 = vrot.slane %v832_v54, 5  ;;  %v3840_v4 = vrot.slane %v830_v61, 9  ;;  %v840_v15 = vld [vmem:[%s4372_s19 + $0x28] sm:$0xf] }
  0x51   : > { %v700_v52 = vsel %vm4383_vm2, %v695_v45, %v699_v46  ;;  %v939_v5 = vsel %vm4558_vm6, %v3841_v58, %v938_v59  ;;  %v945_v7 = vrot.slane %v837_v63, 5  ;;  %v3842_v14 = vrot.slane %v836_v9, 9  ;;  %v206_v16 = vld [vmem:[%s4372_s19 + $0x1c] sm:$0xf]  ;;  %v202_v18 = vld [vmem:[%s4372_s19 + $0x4] sm:$0xf] }
  0x52   : > { %745 = vrot.lane.b32.xlu1 %v594_v48, %s4320_s20  ;;  %v831_v48 = vld [vmem:[%s4372_s19 + $0x4] sm:$0xf]  ;;  %239 = vst.msk [vmem:[#allocation2 + $0x14] sm:$0xf] %vm233_vm5, %v206_v16  ;;  %v940_v19 = vrot.slane %v938_v59, 4  ;;  %v941_v20 = vrot.slane %v835_v12, 5 }
  0x53   : > { %743 = vrot.lane.b32.xlu0 %v580_v49, %s4320_s20  ;;  %741 = vrot.lane.b32.xlu2 %v570_v56, %s4320_s20  ;;  %v671_v49 = vrot.slane %v670_v43, 4  ;;  %v931_v55 = vrot.slane %v831_v48, 5  ;;  %v690_v56 = vsel %vm4383_vm2, %v685_v47, %v689_v27  ;;  %v947_v13 = vrot.slane %v945_v7, 4  ;;  %235 = vst.msk [vmem:[#allocation2 + $0x4] sm:$0xf] %vm233_vm5, %v202_v18 }
  0x54   : > { %v843_v23 = vld [vmem:[%s4372_s19 + $0x34] sm:$0xf]  ;;  %v952_v24 = vrot.slane %v840_v15, 5  ;;  %v946_v26 = vsel %vm4558_vm6, %v3842_v14, %v945_v7  ;;  %v841_v27 = vld [vmem:[%s4372_s19 + $0x2c] sm:$0x1]  ;;  %v942_v28 = vsel %vm4558_vm6, %v940_v19, %v941_v20  ;;  %vm3702_vm1 = vcmask 64512  }
  0x55   : > { %v676_v57 = vsel %vm4383_vm2, %v671_v49, %v675_v50  ;;  %v933_v62 = vrot.slane %v931_v55, 4  ;;  %v932_v10 = vsel %vm4558_vm6, %v3840_v4, %v931_v55  ;;  %v959_v30 = vrot.slane %v843_v23, 5  ;;  %v839_v31 = vld [vmem:[%s4372_s19 + $0x24] sm:$0xe]  ;;  %v846_v34 = vld [vmem:[%s4372_s19 + $0x40] sm:$0xf] }
  0x56   : > { %v954_v32 = vrot.slane %v952_v24, 4  ;;  %v955_v33 = vrot.slane %v841_v27, 5  ;;  %v209_v35 = vld [vmem:[%s4372_s19 + $0x30] sm:$0xf]  ;;  %v208_v36 = vld [vmem:[%s4372_s19 + $0x28] sm:$0xf] }
  0x57   : > { %v935_v8 = vsel %vm4558_vm6, %v933_v62, %v934_v60  ;;  %242 = vst.msk [vmem:[#allocation2 + $0x20] sm:$0xf] %vm233_vm5, %v209_v35  ;;  %v3843_v38 = vrot.slane %v839_v31, 9  ;;  %v966_v41 = vrot.slane %v846_v34, 5  ;;  %v847_v43 = vld [vmem:[%s4372_s19 + $0x44] sm:$0x1] }
  0x58   : > { %241 = vst.msk [vmem:[#allocation2 + $0x1c] sm:$0xf] %vm233_vm5, %v208_v36  ;;  %v845_v44 = vld [vmem:[%s4372_s19 + $0x3c] sm:$0xe]  ;;  %v844_v46 = vld [vmem:[%s4372_s19 + $0x38] sm:$0x1] }
  0x59   : > { %v953_v45 = vsel %vm4558_vm6, %v3843_v38, %v952_v24  ;;  %v968_v47 = vrot.slane %v966_v41, 4  ;;  %v969_v48 = vrot.slane %v847_v43, 5  ;;  %v3845_v49 = vrot.slane %v845_v44, 9  ;;  %v212_v50 = vld [vmem:[%s4372_s19 + $0x40] sm:$0xf] }
  0x5a   : > { %751 = vrot.lane.b32.xlu1 %v628_v11, %s4320_s20  ;;  %v948_v11 = vrot.slane %v838_v6, 5  ;;  %245 = vst.msk [vmem:[#allocation2 + $0x2c] sm:$0xf] %vm233_vm5, %v212_v50  ;;  %v211_v51 = vld [vmem:[%s4372_s19 + $0x3c] sm:$0xf]  ;;  %v961_v54 = vrot.slane %v959_v30, 4 }
  0x5b   : > { %749 = vrot.lane.b32.xlu0 %v618_v17, %s4320_s20  ;;  %747 = vrot.lane.b32.xlu2 %v604_v22, %s4320_s20  ;;  %v204_v17 = vld [vmem:[%s4372_s19 + $0x10] sm:$0xf]  ;;  %v849_v53 = vld [vmem:[%s4372_s19 + $0x4c] sm:$0xf]  ;;  %v962_v55 = vrot.slane %v844_v46, 5  ;;  %v967_v58 = vsel %vm4558_vm6, %v3845_v49, %v966_v41 }
  0x5c   : > { %237 = vst.msk [vmem:[#allocation2 + $0xc] sm:$0xf] %vm233_vm5, %v204_v17  ;;  %v949_v21 = vsel %vm4558_vm6, %v947_v13, %v948_v11  ;;  %v842_v22 = vld [vmem:[%s4372_s19 + $0x30] sm:$0xe]  ;;  %v851_v59 = vld [vmem:[%s4372_s19 + $0x54] sm:$0xe] }
  0x5d   : > { %v3844_v29 = vrot.slane %v842_v22, 9  ;;  %244 = vst.msk [vmem:[#allocation2 + $0x28] sm:$0xf] %vm233_vm5, %v211_v51  ;;  %v852_v60 = vld [vmem:[%s4372_s19 + $0x58] sm:$0xf]  ;;  %v973_v61 = vrot.slane %v849_v53, 5  ;;  %v963_v63 = vsel %vm4558_vm6, %v961_v54, %v962_v55 }
  0x5e   : > { %v850_v62 = vld [vmem:[%s4372_s19 + $0x50] sm:$0x1]  ;;  %v848_v0 = vld [vmem:[%s4372_s19 + $0x48] sm:$0xe]  ;;  %v3847_v2 = vrot.slane %v851_v59, 9  ;;  %v980_v3 = vrot.slane %v852_v60, 5 }
  0x5f   : > { %v215_v4 = vld [vmem:[%s4372_s19 + $0x54] sm:$0xf]  ;;  %v975_v6 = vrot.slane %v973_v61, 4  ;;  %v976_v7 = vrot.slane %v850_v62, 5  ;;  %v214_v11 = vld [vmem:[%s4372_s19 + $0x4c] sm:$0xf] }
  0x60   : > { %248 = vst.msk [vmem:[#allocation2 + $0x38] sm:$0xf] %vm233_vm5, %v215_v4  ;;  %v213_v13 = vld [vmem:[%s4372_s19 + $0x48] sm:$0xf]  ;;  %v981_v14 = vsel %vm4558_vm6, %v3847_v2, %v980_v3  ;;  %v854_v18 = vld [vmem:[%s4372_s19 + $0x60] sm:$0xe] }
  0x61   : > { %v977_v16 = vsel %vm4558_vm6, %v975_v6, %v976_v7  ;;  %v856_v17 = vld [vmem:[%s4372_s19 + $0x68] sm:$0x1]  ;;  %247 = vst.msk [vmem:[#allocation2 + $0x34] sm:$0xf] %vm233_vm5, %v214_v11  ;;  %v853_v20 = vld [vmem:[%s4372_s19 + $0x5c] sm:$0x1] }
  0x62   : > { %757 = vrot.lane.b32.xlu1 %v666_v37, %s4320_s20  ;;  %v207_v37 = vld [vmem:[%s4372_s19 + $0x24] sm:$0xf]  ;;  %246 = vst.msk [vmem:[#allocation2 + $0x30] sm:$0xf] %vm233_vm5, %v213_v13  ;;  %v990_v22 = vrot.slane %v856_v17, 5 }
  0x63   : > { %755 = vrot.lane.b32.xlu0 %v652_v40, %s4320_s20  ;;  %753 = vrot.lane.b32.xlu2 %v642_v42, %s4320_s20  ;;  %240 = vst.msk [vmem:[#allocation2 + $0x18] sm:$0xf] %vm233_vm5, %v207_v37  ;;  %v960_v40 = vsel %vm4558_vm6, %v3844_v29, %v959_v30  ;;  %v956_v42 = vsel %vm4558_vm6, %v954_v32, %v955_v33  ;;  %v218_v23 = vld [vmem:[%s4372_s19 + $0x64] sm:$0xf]  ;;  %v858_v27 = vld [vmem:[%s4372_s19 + $0x70] sm:$0xf] }
  0x64   : > { %251 = vst.msk [vmem:[#allocation2 + $0x44] sm:$0xf] %vm233_vm5, %v218_v23  ;;  %v982_v29 = vrot.slane %v980_v3, 4  ;;  %v983_v30 = vrot.slane %v853_v20, 5  ;;  %v217_v31 = vld [vmem:[%s4372_s19 + $0x60] sm:$0xf] }
  0x65   : > { %v216_v33 = vld [vmem:[%s4372_s19 + $0x58] sm:$0xf]  ;;  %v861_v37 = vld [vmem:[%s4372_s19 + $0x7c] sm:$0xf]  ;;  %v994_v38 = vrot.slane %v858_v27, 5 }
  0x66   : > { %v860_v35 = vld [vmem:[%s4372_s19 + $0x78] sm:$0xe]  ;;  %250 = vst.msk [vmem:[#allocation2 + $0x40] sm:$0xf] %vm233_vm5, %v217_v31  ;;  %v857_v41 = vld [vmem:[%s4372_s19 + $0x6c] sm:$0xe] }
  0x67   : > { %249 = vst.msk [vmem:[#allocation2 + $0x3c] sm:$0xf] %vm233_vm5, %v216_v33  ;;  %v1001_v43 = vrot.slane %v861_v37, 5  ;;  %v221_v44 = vld [vmem:[%s4372_s19 + $0x78] sm:$0xf]  ;;  %v996_v46 = vrot.slane %v994_v38, 4 }
  0x68   : > { %254 = vst.msk [vmem:[#allocation2 + $0x50] sm:$0xf] %vm233_vm5, %v221_v44  ;;  %v3849_v50 = vrot.slane %v857_v41, 9  ;;  %v220_v51 = vld [vmem:[%s4372_s19 + $0x70] sm:$0xf] }
  0x69   : > { %v219_v53 = vld [vmem:[%s4372_s19 + $0x6c] sm:$0xf]  ;;  %253 = vst.msk [vmem:[#allocation2 + $0x4c] sm:$0xf] %vm233_vm5, %v220_v51  ;;  %v862_v60 = vld [vmem:[%s4372_s19 + $0x80] sm:$0x1] }
  0x6a   : > { %763 = vrot.lane.b32.xlu1 %v700_v52, %s4320_s20  ;;  %v210_v52 = vld [vmem:[%s4372_s19 + $0x34] sm:$0xf]  ;;  %v995_v59 = vsel %vm4558_vm6, %v3849_v50, %v994_v38  ;;  %252 = vst.msk [vmem:[#allocation2 + $0x48] sm:$0xf] %vm233_vm5, %v219_v53  ;;  %v1004_v6 = vrot.slane %v862_v60, 5 }
  0x6b   : > { %761 = vrot.lane.b32.xlu0 %v690_v56, %s4320_s20  ;;  %759 = vrot.lane.b32.xlu2 %v676_v57, %s4320_s20  ;;  %243 = vst.msk [vmem:[#allocation2 + $0x24] sm:$0xf] %vm233_vm5, %v210_v52  ;;  %v970_v57 = vsel %vm4558_vm6, %v968_v47, %v969_v48  ;;  %v864_v48 = vld [vmem:[%s4372_s19 + $0x88] sm:$0xf]  ;;  %v867_v3 = vld [vmem:[%s4372_s19 + $0x94] sm:$0xf] }
  0x6c   : > { %v1008_v55 = vrot.slane %v864_v48, 5  ;;  %v223_v7 = vld [vmem:[%s4372_s19 + $0x84] sm:$0xf]  ;;  %v869_v11 = vld [vmem:[%s4372_s19 + $0x9c] sm:$0xe] }
  0x6d   : > { %v870_v13 = vld [vmem:[%s4372_s19 + $0xa0] sm:$0xf]  ;;  %256 = vst.msk [vmem:[#allocation2 + $0x58] sm:$0xf] %vm233_vm5, %v223_v7  ;;  %v866_v17 = vld [vmem:[%s4372_s19 + $0x90] sm:$0xe] }
  0x6e   : > { %v227_v20 = vld [vmem:[%s4372_s19 + $0x9c] sm:$0xf]  ;;  %v3852_v27 = vrot.slane %v866_v17, 9  ;;  %v871_v37 = vld [vmem:[%s4372_s19 + $0xa4] sm:$0x1] }
  0x6f   : > { %260 = vst.msk [vmem:[#allocation2 + $0x68] sm:$0xf] %vm233_vm5, %v227_v20  ;;  %v877_v53 = vld [vmem:[%s4372_s19 + $0xbc] sm:$0x1] }
  0x70   : > { %v3859_v7 = vld [vmem:[%s4372_s19 + $0x1c] sm:$0xf] }
  0x71   : > { %v3864_v20 = vld [vmem:[%s4372_s19 + $0x3c] sm:$0xf] }
  0x72   : > { %1045 = vrot.lane.b32.xlu1 %v939_v5, %s4321_s21 }
  0x73   : > { %1043 = vrot.lane.b32.xlu0 %v935_v8, %s4321_s21  ;;  %1041 = vrot.lane.b32.xlu2 %v932_v10, %s4321_s21  ;;  %v855_v8 = vld [vmem:[%s4372_s19 + $0x64] sm:$0xf]  ;;  %v3846_v10 = vrot.slane %v848_v0, 9 }
  0x74   : > { %v987_v15 = vrot.slane %v855_v8, 5 }
  0x75   : > { %v974_v19 = vsel %vm4558_vm6, %v3846_v10, %v973_v61  ;;  %v1010_v61 = vrot.slane %v1008_v55, 4 }
  0x7a   : > { %1051 = vrot.lane.b32.xlu1 %v949_v21, %s4321_s21  ;;  %v989_v21 = vrot.slane %v987_v15, 4 }
  0x7b   : > { %1049 = vrot.lane.b32.xlu0 %v946_v26, %s4321_s21  ;;  %1047 = vrot.lane.b32.xlu2 %v942_v28, %s4321_s21  ;;  %v3848_v26 = vrot.slane %v854_v18, 9  ;;  %v3853_v18 = vrot.slane %v869_v11, 9 }
  0x7c   : > { %v991_v34 = vsel %vm4558_vm6, %v989_v21, %v990_v22 }
  0x7d   : > { %v710_v39 = vpop.permute.xlu2 %709  ;;  %v988_v36 = vsel %vm4558_vm6, %v3848_v26, %v987_v15  ;;  %v868_v15 = vld [vmem:[%s4372_s19 + $0x98] sm:$0x1] }
  0x7e   : > { %802 = vst.msk [vmem:[#allocation2 + $0x10] sm:$0xf] %vm797_vm7, %v710_v39  ;;  %v859_v39 = vld [vmem:[%s4372_s19 + $0x74] sm:$0x1]  ;;  %v1018_v23 = vrot.slane %v868_v15, 5 }
  0x7f   : > { %v997_v47 = vrot.slane %v859_v39, 5  ;;  %v3860_v15 = vld [vmem:[%s4372_s19 + $0x24] sm:$0xf] }
  0x82   : > { %1057 = vrot.lane.b32.xlu1 %v960_v40, %s4321_s21  ;;  %v984_v40 = vsel %vm4558_vm6, %v982_v29, %v983_v30  ;;  %v225_v30 = vld [vmem:[%s4372_s19 + $0x90] sm:$0xf] }
  0x83   : > { %1055 = vrot.lane.b32.xlu0 %v956_v42, %s4321_s21  ;;  %1053 = vrot.lane.b32.xlu2 %v953_v45, %s4321_s21  ;;  %v3850_v42 = vrot.slane %v860_v35, 9  ;;  %v872_v35 = vld [vmem:[%s4372_s19 + $0xa8] sm:$0xe]  ;;  %258 = vst.msk [vmem:[#allocation2 + $0x60] sm:$0xf] %vm233_vm5, %v225_v30 }
  0x85   : > { %v712_v56 = vpop.permute.xlu2 %711  ;;  %v1002_v54 = vsel %vm4558_vm6, %v3850_v42, %v1001_v43  ;;  %v3854_v42 = vrot.slane %v872_v35, 9 }
  0x86   : > { %803 = vst.msk [vmem:[#allocation2 + $0x14] sm:$0xf] %vm797_vm7, %v712_v56  ;;  %v998_v56 = vsel %vm4558_vm6, %v996_v46, %v997_v47  ;;  %v1025_v46 = vrot.slane %v871_v37, 5  ;;  %v229_v47 = vld [vmem:[%s4372_s19 + $0xa8] sm:$0xf] }
  0x87   : > { %262 = vst.msk [vmem:[#allocation2 + $0x70] sm:$0xf] %vm233_vm5, %v229_v47 }
  0x8a   : > { %1063 = vrot.lane.b32.xlu1 %v970_v57, %s4321_s21  ;;  %v865_v57 = vld [vmem:[%s4372_s19 + $0x8c] sm:$0x1] }
  0x8b   : > { %1061 = vrot.lane.b32.xlu0 %v967_v58, %s4321_s21  ;;  %1059 = vrot.lane.b32.xlu2 %v963_v63, %s4321_s21  ;;  %v863_v58 = vld [vmem:[%s4372_s19 + $0x84] sm:$0xe]  ;;  %v1011_v62 = vrot.slane %v865_v57, 5  ;;  %v224_v63 = vld [vmem:[%s4372_s19 + $0x88] sm:$0xf] }
  0x8c   : > { %v706_v5 = vpop.permute.xlu1 %705  ;;  %v3851_v2 = vrot.slane %v863_v58, 9  ;;  %257 = vst.msk [vmem:[#allocation2 + $0x5c] sm:$0xf] %vm233_vm5, %v224_v63  ;;  %v1039_v58 = vrot.slane %v877_v53, 5  ;;  %v231_v63 = vld [vmem:[%s4372_s19 + $0xb4] sm:$0xf] }
  0x8d   : > { %800 = vst.msk [vmem:[#allocation2 + $0x8] sm:$0xf] %vm797_vm7, %v706_v5  ;;  %v702_v9 = vpop.permute.xlu0 %701  ;;  %v718_v12 = vpop.permute.xlu2 %717  ;;  %v1003_v5 = vrot.slane %v1001_v43, 4  ;;  %v1012_v10 = vsel %vm4558_vm6, %v1010_v61, %v1011_v62  ;;  %v876_v43 = vld [vmem:[%s4372_s19 + $0xb8] sm:$0xf] }
  0x8e   : > { %798 = vst.msk [vmem:[#allocation2] sm:$0xf] %vm797_vm7, %v702_v9  ;;  %v222_v9 = vld [vmem:[%s4372_s19 + $0x7c] sm:$0xf]  ;;  %v232_v61 = vld [vmem:[%s4372_s19 + $0xb8] sm:$0xf] }
  0x8f   : > { %806 = vst.msk [vmem:[#allocation2 + $0x20] sm:$0xf] %vm797_vm7, %v718_v12  ;;  %v1009_v12 = vsel %vm4558_vm6, %v3851_v2, %v1008_v55  ;;  %v875_v55 = vld [vmem:[%s4372_s19 + $0xb4] sm:$0xe]  ;;  %v3889_v53 = vld [vmem:[%s4372_s19 + $0x10] sm:$0xf] }
  0x90   : > { %255 = vst.msk [vmem:[#allocation2 + $0x54] sm:$0xf] %vm233_vm5, %v222_v9  ;;  %v3855_v60 = vrot.slane %v875_v55, 9  ;;  %v3857_v9 = vld [vmem:[%s4372_s19 + $0x10] sm:$0xf] }
  0x91   : > { %265 = vst.msk [vmem:[#allocation2 + $0x7c] sm:$0xf] %vm233_vm5, %v232_v61  ;;  %v3882_v61 = vld [vmem:[%s4372_s19 + $0xa8] sm:$0xf] }
  0x92   : > { %1069 = vrot.lane.b32.xlu1 %v981_v14, %s4321_s21  ;;  %v1015_v14 = vrot.slane %v867_v3, 5  ;;  %264 = vst.msk [vmem:[#allocation2 + $0x78] sm:$0xf] %vm233_vm5, %v231_v63 }
  0x93   : > { %1067 = vrot.lane.b32.xlu0 %v977_v16, %s4321_s21  ;;  %1065 = vrot.lane.b32.xlu2 %v974_v19, %s4321_s21  ;;  %v1005_v16 = vsel %vm4558_vm6, %v1003_v5, %v1004_v6  ;;  %v1022_v19 = vrot.slane %v870_v13, 5  ;;  %v3862_v13 = vld [vmem:[%s4372_s19 + $0x30] sm:$0xf] }
  0x94   : > { %v708_v24 = vpop.permute.xlu1 %707  ;;  %v1017_v22 = vrot.slane %v1015_v14, 4 }
  0x95   : > { %801 = vst.msk [vmem:[#allocation2 + $0xc] sm:$0xf] %vm797_vm7, %v708_v24  ;;  %v704_v28 = vpop.permute.xlu0 %703  ;;  %v724_v32 = vpop.permute.xlu2 %723  ;;  %v873_v24 = vld [vmem:[%s4372_s19 + $0xac] sm:$0xf]  ;;  %v1023_v31 = vsel %vm4558_vm6, %v3853_v18, %v1022_v19 }
  0x96   : > { %799 = vst.msk [vmem:[#allocation2 + $0x4] sm:$0xf] %vm797_vm7, %v704_v28  ;;  %v226_v28 = vld [vmem:[%s4372_s19 + $0x94] sm:$0xf]  ;;  %v1019_v33 = vsel %vm4558_vm6, %v1017_v22, %v1018_v23 }
  0x97   : > { %809 = vst.msk [vmem:[#allocation2 + $0x2c] sm:$0xf] %vm797_vm7, %v724_v32  ;;  %v1029_v32 = vrot.slane %v873_v24, 5 }
  0x98   : > { %259 = vst.msk [vmem:[#allocation2 + $0x64] sm:$0xf] %vm233_vm5, %v226_v28  ;;  %v3866_v28 = vld [vmem:[%s4372_s19 + $0x48] sm:$0xf] }
  0x99   : > { %v1031_v38 = vrot.slane %v1029_v32, 4  ;;  %v1030_v51 = vsel %vm4558_vm6, %v3854_v42, %v1029_v32  ;;  %v3871_v32 = vld [vmem:[%s4372_s19 + $0x64] sm:$0xf] }
  0x9a   : > { %1075 = vrot.lane.b32.xlu1 %v991_v34, %s4321_s21  ;;  %v874_v34 = vld [vmem:[%s4372_s19 + $0xb0] sm:$0x1] }
  0x9b   : > { %1073 = vrot.lane.b32.xlu0 %v988_v36, %s4321_s21  ;;  %1071 = vrot.lane.b32.xlu2 %v984_v40, %s4321_s21  ;;  %v1016_v36 = vsel %vm4558_vm6, %v3852_v27, %v1015_v14  ;;  %v1032_v39 = vrot.slane %v874_v34, 5  ;;  %v230_v40 = vld [vmem:[%s4372_s19 + $0xac] sm:$0xf]  ;;  %v3861_v14 = vld [vmem:[%s4372_s19 + $0x28] sm:$0xf] }
  0x9c   : > { %v716_v45 = vpop.permute.xlu1 %715  ;;  %263 = vst.msk [vmem:[#allocation2 + $0x74] sm:$0xf] %vm233_vm5, %v230_v40  ;;  %v3867_v27 = vld [vmem:[%s4372_s19 + $0x4c] sm:$0xf]  ;;  %v3869_v34 = vld [vmem:[%s4372_s19 + $0x58] sm:$0xf] }
  0x9d   : > { %805 = vst.msk [vmem:[#allocation2 + $0x1c] sm:$0xf] %vm797_vm7, %v716_v45  ;;  %v714_v49 = vpop.permute.xlu0 %713  ;;  %v730_v52 = vpop.permute.xlu2 %729  ;;  %v1024_v45 = vrot.slane %v1022_v19, 4  ;;  %v1033_v50 = vsel %vm4558_vm6, %v1031_v38, %v1032_v39  ;;  %v3865_v19 = vld [vmem:[%s4372_s19 + $0x40] sm:$0xf] }
  0x9e   : > { %804 = vst.msk [vmem:[#allocation2 + $0x18] sm:$0xf] %vm797_vm7, %v714_v49  ;;  %v228_v49 = vld [vmem:[%s4372_s19 + $0xa0] sm:$0xf]  ;;  %v3874_v38 = vld [vmem:[%s4372_s19 + $0x78] sm:$0xf] }
  0x9f   : > { %812 = vst.msk [vmem:[#allocation2 + $0x38] sm:$0xf] %vm797_vm7, %v730_v52  ;;  %v1036_v52 = vrot.slane %v876_v43, 5  ;;  %v3873_v39 = vld [vmem:[%s4372_s19 + $0x70] sm:$0xf] }
  0xa0   : > { %261 = vst.msk [vmem:[#allocation2 + $0x6c] sm:$0xf] %vm233_vm5, %v228_v49  ;;  %v3872_v40 = vld [vmem:[%s4372_s19 + $0x6c] sm:$0xf] }
  0xa1   : > { %v1038_v57 = vrot.slane %v1036_v52, 4  ;;  %v1037_v3 = vsel %vm4558_vm6, %v3855_v60, %v1036_v52  ;;  %v3878_v52 = vld [vmem:[%s4372_s19 + $0x90] sm:$0xf]  ;;  %v3883_v60 = vld [vmem:[%s4372_s19 + $0xac] sm:$0xf] }
  0xa2   : > { %1081 = vrot.lane.b32.xlu1 %v1002_v54, %s4321_s21  ;;  %v1026_v54 = vsel %vm4558_vm6, %v1024_v45, %v1025_v46  ;;  %v3876_v45 = vld [vmem:[%s4372_s19 + $0x84] sm:$0xf]  ;;  %v3875_v46 = vld [vmem:[%s4372_s19 + $0x7c] sm:$0xf] }
  0xa3   : > { %1079 = vrot.lane.b32.xlu0 %v998_v56, %s4321_s21  ;;  %1077 = vrot.lane.b32.xlu2 %v995_v59, %s4321_s21  ;;  %v1040_v2 = vsel %vm4558_vm6, %v1038_v57, %v1039_v58  ;;  %v1425_v58 = vshll.u32 %v3889_v53, 16 }
  0xa4   : > { %v722_v0 = vpop.permute.xlu1 %721 }
  0xa5   : > { %808 = vst.msk [vmem:[#allocation2 + $0x28] sm:$0xf] %vm797_vm7, %v722_v0  ;;  %v720_v4 = vpop.permute.xlu0 %719  ;;  %v736_v8 = vpop.permute.xlu2 %735  ;;  %v3856_v0 = vld [vmem:[%s4372_s19 + $0xc] sm:$0xf] }
  0xa6   : > { %807 = vst.msk [vmem:[#allocation2 + $0x24] sm:$0xf] %vm797_vm7, %v720_v4 }
  0xa7   : > { %815 = vst.msk [vmem:[#allocation2 + $0x44] sm:$0xf] %vm797_vm7, %v736_v8  ;;  %v3858_v8 = vld [vmem:[%s4372_s19 + $0x18] sm:$0xf] }
  0xaa   : > { %1087 = vrot.lane.b32.xlu1 %v1012_v10, %s4321_s21 }
  0xab   : > { %1085 = vrot.lane.b32.xlu0 %v1009_v12, %s4321_s21  ;;  %1083 = vrot.lane.b32.xlu2 %v1005_v16, %s4321_s21 }
  0xac   : > { %v728_v21 = vpop.permute.xlu1 %727 }
  0xad   : > { %811 = vst.msk [vmem:[#allocation2 + $0x34] sm:$0xf] %vm797_vm7, %v728_v21  ;;  %v726_v26 = vpop.permute.xlu0 %725  ;;  %v742_v29 = vpop.permute.xlu2 %741  ;;  %v3863_v21 = vld [vmem:[%s4372_s19 + $0x34] sm:$0xf] }
  0xae   : > { %810 = vst.msk [vmem:[#allocation2 + $0x30] sm:$0xf] %vm797_vm7, %v726_v26  ;;  %v3868_v26 = vld [vmem:[%s4372_s19 + $0x54] sm:$0xf] }
  0xaf   : > { %818 = vst.msk [vmem:[#allocation2 + $0x50] sm:$0xf] %vm797_vm7, %v742_v29 }
  0xb2   : > { %1093 = vrot.lane.b32.xlu1 %v1023_v31, %s4321_s21 }
  0xb3   : > { %1091 = vrot.lane.b32.xlu0 %v1019_v33, %s4321_s21  ;;  %1089 = vrot.lane.b32.xlu2 %v1016_v36, %s4321_s21  ;;  %v3870_v33 = vld [vmem:[%s4372_s19 + $0x60] sm:$0xf] }
  0xb4   : > { %v734_v41 = vpop.permute.xlu1 %733 }
  0xb5   : > { %814 = vst.msk [vmem:[#allocation2 + $0x40] sm:$0xf] %vm797_vm7, %v734_v41  ;;  %v732_v44 = vpop.permute.xlu0 %731  ;;  %v748_v48 = vpop.permute.xlu2 %747 }
  0xb6   : > { %813 = vst.msk [vmem:[#allocation2 + $0x3c] sm:$0xf] %vm797_vm7, %v732_v44  ;;  %v3877_v44 = vld [vmem:[%s4372_s19 + $0x88] sm:$0xf] }
  0xb7   : > { %821 = vst.msk [vmem:[#allocation2 + $0x5c] sm:$0xf] %vm797_vm7, %v748_v48 }
  0xba   : > { %1099 = vrot.lane.b32.xlu1 %v1033_v50, %s4321_s21  ;;  %v3880_v50 = vld [vmem:[%s4372_s19 + $0x9c] sm:$0xf] }
  0xbb   : > { %1097 = vrot.lane.b32.xlu0 %v1030_v51, %s4321_s21  ;;  %1095 = vrot.lane.b32.xlu2 %v1026_v54, %s4321_s21  ;;  %v3879_v51 = vld [vmem:[%s4372_s19 + $0x94] sm:$0xf] }
  0xbc   : > { %v740_v56 = vpop.permute.xlu1 %739 }
  0xbd   : > { %817 = vst.msk [vmem:[#allocation2 + $0x4c] sm:$0xf] %vm797_vm7, %v740_v56  ;;  %v738_v59 = vpop.permute.xlu0 %737  ;;  %v754_v62 = vpop.permute.xlu2 %753  ;;  %v3888_v56 = vld [vmem:[%s4372_s19 + $0xc] sm:$0xf] }
  0xbe   : > { %816 = vst.msk [vmem:[#allocation2 + $0x48] sm:$0xf] %vm797_vm7, %v738_v59  ;;  %v1429_v59 = vshrl.u32 %v3889_v53, 16  ;;  %v1419_v63 = vshll.u32 %v3888_v56, 16  ;;  %v3887_v53 = vld [vmem:[%s4372_s19 + $0xc4] sm:$0xf] }
  0xbf   : > { %824 = vst.msk [vmem:[#allocation2 + $0x68] sm:$0xf] %vm797_vm7, %v754_v62  ;;  %v1416_v62 = vshrl.u32 %v3888_v56, 16 }
  0xc2   : > { %1238 = vrot.lane.b32.xlu1 %v3856_v0, %s4322_s22  ;;  %v3881_v0 = vld [vmem:[%s4372_s19 + $0xa0] sm:$0xf] }
  0xc3   : > { %1103 = vrot.lane.b32.xlu0 %v1040_v2, %s4321_s21  ;;  %1101 = vrot.lane.b32.xlu2 %v1037_v3, %s4321_s21  ;;  %v4870_v2 = vrot.slane %v1425_v58, 5  ;;  %v1431_v3 = vrot.slane %v1429_v59, 4 }
  0xc4   : > { %v746_v4 = vpop.permute.xlu1 %745 }
  0xc5   : > { %820 = vst.msk [vmem:[#allocation2 + $0x58] sm:$0xf] %vm797_vm7, %v746_v4  ;;  %v744_v5 = vpop.permute.xlu0 %743  ;;  %v760_v6 = vpop.permute.xlu2 %759  ;;  %v3890_v4 = vld [vmem:[%s4372_s19 + $0x14] sm:$0x1] }
  0xc6   : > { %819 = vst.msk [vmem:[#allocation2 + $0x54] sm:$0xf] %vm797_vm7, %v744_v5 }
  0xc7   : > { %827 = vst.msk [vmem:[#allocation2 + $0x74] sm:$0xf] %vm797_vm7, %v760_v6  ;;  %v1418_v6 = vrot.slane %v1416_v62, 4  ;;  %v3903_v62 = vld [vmem:[%s4372_s19 + $0x48] sm:$0xf] }
  0xca   : > { %1244 = vrot.lane.b32.xlu1 %v3859_v7, %s4322_s22  ;;  %v1421_v7 = vrot.slane %v1419_v63, 5 }
  0xcb   : > { %1242 = vrot.lane.b32.xlu0 %v3858_v8, %s4322_s22  ;;  %1240 = vrot.lane.b32.xlu2 %v3857_v9, %s4322_s22  ;;  %v3894_v8 = vld [vmem:[%s4372_s19 + $0x24] sm:$0xf] }
  0xcc   : > { %v752_v10 = vpop.permute.xlu1 %751 }
  0xcd   : > { %823 = vst.msk [vmem:[#allocation2 + $0x64] sm:$0xf] %vm797_vm7, %v752_v10  ;;  %v750_v11 = vpop.permute.xlu0 %749  ;;  %v1042_v12 = vpop.permute.xlu2 %1041  ;;  %v3892_v10 = vld [vmem:[%s4372_s19 + $0x1c] sm:$0xf] }
  0xce   : > { %822 = vst.msk [vmem:[#allocation2 + $0x60] sm:$0xf] %vm797_vm7, %v750_v11  ;;  %v1432_v11 = vor.u32 %v1431_v3, %v4870_v2  ;;  %v3901_v3 = vld [vmem:[%s4372_s19 + $0x40] sm:$0xf] }
  0xcf   : > { %1138 = vst.msk [vmem:[#allocation2] sm:$0xf] %vm1137_vm8, %v1042_v12  ;;  %v1435_v12 = vshll.u32 %v3890_v4, 16 }
  0xd2   : > { %1250 = vrot.lane.b32.xlu1 %v3862_v13, %s4322_s22 }
  0xd3   : > { %1248 = vrot.lane.b32.xlu0 %v3861_v14, %s4322_s22  ;;  %1246 = vrot.lane.b32.xlu2 %v3860_v15, %s4322_s22  ;;  %v3891_v14 = vld [vmem:[%s4372_s19 + $0x18] sm:$0xf]  ;;  %v3886_v15 = vld [vmem:[%s4372_s19 + $0xc0] sm:$0xf] }
  0xd4   : > { %v758_v16 = vpop.permute.xlu1 %757 }
  0xd5   : > { %826 = vst.msk [vmem:[#allocation2 + $0x70] sm:$0xf] %vm797_vm7, %v758_v16  ;;  %v756_v17 = vpop.permute.xlu0 %755  ;;  %v1048_v18 = vpop.permute.xlu2 %1047  ;;  %v1464_v16 = vshrl.u32 %v3894_v8, 16 }
  0xd6   : > { %825 = vst.msk [vmem:[#allocation2 + $0x6c] sm:$0xf] %vm797_vm7, %v756_v17  ;;  %v1467_v17 = vshll.u32 %v3894_v8, 16 }
  0xd7   : > { %1141 = vst.msk [vmem:[#allocation2 + $0xc] sm:$0xf] %vm1137_vm8, %v1048_v18  ;;  %v3885_v18 = vld [vmem:[%s4372_s19 + $0xb8] sm:$0xf] }
  0xda   : > { %1256 = vrot.lane.b32.xlu1 %v3865_v19, %s4322_s22  ;;  %v1422_v19 = vor.u32 %v1421_v7, %v1418_v6  ;;  %v3900_v7 = vld [vmem:[%s4372_s19 + $0x3c] sm:$0xf] }
  0xdb   : > { %1254 = vrot.lane.b32.xlu0 %v3864_v20, %s4322_s22  ;;  %1252 = vrot.lane.b32.xlu2 %v3863_v21, %s4322_s22  ;;  %v1449_v20 = vshll.u32 %v3892_v10, 16  ;;  %v1453_v21 = vshrl.u32 %v3892_v10, 16 }
  0xdc   : > { %v764_v22 = vpop.permute.xlu1 %763 }
  0xdd   : > { %829 = vst.msk [vmem:[#allocation2 + $0x7c] sm:$0xf] %vm797_vm7, %v764_v22  ;;  %v762_v23 = vpop.permute.xlu0 %761  ;;  %v1054_v24 = vpop.permute.xlu2 %1053  ;;  %v3884_v22 = vld [vmem:[%s4372_s19 + $0xb4] sm:$0xf] }
  0xde   : > { %828 = vst.msk [vmem:[#allocation2 + $0x78] sm:$0xf] %vm797_vm7, %v762_v23  ;;  %v1440_v23 = vshrl.u32 %v3891_v14, 16 }
  0xdf   : > { %1144 = vst.msk [vmem:[#allocation2 + $0x18] sm:$0xf] %vm1137_vm8, %v1054_v24  ;;  %v1443_v24 = vshll.u32 %v3891_v14, 16 }
  0xe2   : > { %1262 = vrot.lane.b32.xlu1 %v3868_v26, %s4322_s22  ;;  %v1433_v26 = vrot.slane %v1432_v11, 4 }
  0xe3   : > { %1260 = vrot.lane.b32.xlu0 %v3867_v27, %s4322_s22  ;;  %1258 = vrot.lane.b32.xlu2 %v3866_v28, %s4322_s22  ;;  %v1437_v27 = vrot.slane %v1435_v12, 5  ;;  %v1466_v28 = vrot.slane %v1464_v16, 4  ;;  %v1536_v12 = vshrl.u32 %v3903_v62, 16  ;;  %v1521_v16 = vshll.u32 %v3901_v3, 16 }
  0xe4   : > { %v1046_v29 = vpop.permute.xlu1 %1045 }
  0xe5   : > { %1140 = vst.msk [vmem:[#allocation2 + $0x8] sm:$0xf] %vm1137_vm8, %v1046_v29  ;;  %v1044_v30 = vpop.permute.xlu0 %1043  ;;  %v1060_v31 = vpop.permute.xlu2 %1059  ;;  %v1469_v29 = vrot.slane %v1467_v17, 5  ;;  %v1525_v17 = vshrl.u32 %v3901_v3, 16 }
  0xe6   : > { %1139 = vst.msk [vmem:[#allocation2 + $0x4] sm:$0xf] %vm1137_vm8, %v1044_v30  ;;  %v3898_v30 = vld [vmem:[%s4372_s19 + $0x34] sm:$0xf] }
  0xe7   : > { %1147 = vst.msk [vmem:[#allocation2 + $0x24] sm:$0xf] %vm1137_vm8, %v1060_v31  ;;  %v3897_v31 = vld [vmem:[%s4372_s19 + $0x30] sm:$0xf] }
  0xea   : > { %1268 = vrot.lane.b32.xlu1 %v3871_v32, %s4322_s22 }
  0xeb   : > { %1266 = vrot.lane.b32.xlu0 %v3870_v33, %s4322_s22  ;;  %1264 = vrot.lane.b32.xlu2 %v3869_v34, %s4322_s22  ;;  %v1423_v33 = vrot.slane %v1422_v19, 4  ;;  %v3895_v34 = vld [vmem:[%s4372_s19 + $0x28] sm:$0xf]  ;;  %v3907_v19 = vld [vmem:[%s4372_s19 + $0x58] sm:$0xf] }
  0xec   : > { %v1052_v35 = vpop.permute.xlu1 %1051 }
  0xed   : > { %1143 = vst.msk [vmem:[#allocation2 + $0x14] sm:$0xf] %vm1137_vm8, %v1052_v35  ;;  %v1050_v36 = vpop.permute.xlu0 %1049  ;;  %v1066_v37 = vpop.permute.xlu2 %1065  ;;  %v4891_v35 = vrot.slane %v1449_v20, 5  ;;  %v1512_v20 = vshrl.u32 %v3900_v7, 16 }
  0xee   : > { %1142 = vst.msk [vmem:[#allocation2 + $0x10] sm:$0xf] %vm1137_vm8, %v1050_v36  ;;  %v1455_v36 = vrot.slane %v1453_v21, 4  ;;  %v1515_v21 = vshll.u32 %v3900_v7, 16  ;;  %v3910_v7 = vld [vmem:[%s4372_s19 + $0x64] sm:$0xf] }
  0xef   : > { %1150 = vst.msk [vmem:[#allocation2 + $0x30] sm:$0xf] %vm1137_vm8, %v1066_v37 }
  0xf2   : > { %1274 = vrot.lane.b32.xlu1 %v3874_v38, %s4322_s22  ;;  %v3893_v38 = vld [vmem:[%s4372_s19 + $0x20] sm:$0x1] }
  0xf3   : > { %1272 = vrot.lane.b32.xlu0 %v3873_v39, %s4322_s22  ;;  %1270 = vrot.lane.b32.xlu2 %v3872_v40, %s4322_s22  ;;  %v1442_v39 = vrot.slane %v1440_v23, 4  ;;  %v1445_v40 = vrot.slane %v1443_v24, 5 }
  0xf4   : > { %v1058_v41 = vpop.permute.xlu1 %1057 }
  0xf5   : > { %1146 = vst.msk [vmem:[#allocation2 + $0x20] sm:$0xf] %vm1137_vm8, %v1058_v41  ;;  %v1056_v42 = vpop.permute.xlu0 %1055  ;;  %v1072_v43 = vpop.permute.xlu2 %1071 }
  0xf6   : > { %1145 = vst.msk [vmem:[#allocation2 + $0x1c] sm:$0xf] %vm1137_vm8, %v1056_v42  ;;  %v1497_v42 = vshll.u32 %v3898_v30, 16 }
  0xf7   : > { %1153 = vst.msk [vmem:[#allocation2 + $0x3c] sm:$0xf] %vm1137_vm8, %v1072_v43  ;;  %v1501_v43 = vshrl.u32 %v3898_v30, 16  ;;  %v1538_v30 = vrot.slane %v1536_v12, 4 }
  0xf9   : > { %v1503_v56 = vrot.slane %v1501_v43, 4 }
  0xfa   : > { %1280 = vrot.lane.b32.xlu1 %v3877_v44, %s4322_s22  ;;  %v1488_v44 = vshrl.u32 %v3897_v31, 16 }
  0xfb   : > { %1278 = vrot.lane.b32.xlu0 %v3876_v45, %s4322_s22  ;;  %1276 = vrot.lane.b32.xlu2 %v3875_v46, %s4322_s22  ;;  %v1491_v45 = vshll.u32 %v3897_v31, 16  ;;  %v1438_v46 = vsel %vm4383_vm2, %v1433_v26, %v1437_v27 }
  0xfc   : > { %v1064_v47 = vpop.permute.xlu1 %1063 }
  0xfd   : > { %1149 = vst.msk [vmem:[#allocation2 + $0x2c] sm:$0xf] %vm1137_vm8, %v1064_v47  ;;  %v1062_v48 = vpop.permute.xlu0 %1061  ;;  %v1078_v49 = vpop.permute.xlu2 %1077  ;;  %v1470_v47 = vor.u32 %v1469_v29, %v1466_v28  ;;  %v1493_v58 = vrot.slane %v1491_v45, 5  ;;  %v3904_v29 = vld [vmem:[%s4372_s19 + $0x4c] sm:$0xf] }
  0xfe   : > { %1148 = vst.msk [vmem:[#allocation2 + $0x28] sm:$0xf] %vm1137_vm8, %v1062_v48  ;;  %v1473_v48 = vshll.u32 %v3895_v34, 16 }
  0xff   : > { %1156 = vst.msk [vmem:[#allocation2 + $0x48] sm:$0xf] %vm1137_vm8, %v1078_v49  ;;  %v1428_v49 = vsel %vm4383_vm2, %v1423_v33, %v4870_v2  ;;  %v1471_v59 = vrot.slane %v1470_v47, 4  ;;  %v4930_v33 = vrot.slane %v1521_v16, 5 }
 0x102   : > { %1286 = vrot.lane.b32.xlu1 %v3880_v50, %s4322_s22  ;;  %v1456_v50 = vor.u32 %v1455_v36, %v4891_v35  ;;  %v1569_v36 = vshll.u32 %v3907_v19, 16 }
 0x103   : > { %1284 = vrot.lane.b32.xlu0 %v3879_v51, %s4322_s22  ;;  %1282 = vrot.lane.b32.xlu2 %v3878_v52, %s4322_s22  ;;  %v1459_v51 = vshll.u32 %v3893_v38, 16  ;;  %v1477_v52 = vshrl.u32 %v3895_v34, 16  ;;  %v1527_v34 = vrot.slane %v1525_v17, 4  ;;  %v3906_v38 = vld [vmem:[%s4372_s19 + $0x54] sm:$0xf]  ;;  %v1593_v17 = vshll.u32 %v3910_v7, 16 }
 0x104   : > { %v1070_v54 = vpop.permute.xlu1 %1069 }
 0x105   : > { %1152 = vst.msk [vmem:[#allocation2 + $0x38] sm:$0xf] %vm1137_vm8, %v1070_v54  ;;  %v1068_v55 = vpop.permute.xlu0 %1067  ;;  %v1084_v57 = vpop.permute.xlu2 %1083  ;;  %v1446_v54 = vor.u32 %v1445_v40, %v1442_v39  ;;  %v1461_v2 = vrot.slane %v1459_v51, 5  ;;  %v1479_v6 = vrot.slane %v1477_v52, 4  ;;  %v1514_v39 = vrot.slane %v1512_v20, 4 }
 0x106   : > { %1151 = vst.msk [vmem:[#allocation2 + $0x34] sm:$0xf] %vm1137_vm8, %v1068_v55  ;;  %v4905_v55 = vrot.slane %v1497_v42, 5  ;;  %v1517_v40 = vrot.slane %v1515_v21, 5  ;;  %v1560_v51 = vshrl.u32 %v3906_v38, 16  ;;  %v4943_v52 = vrot.slane %v1569_v36, 5 }
 0x107   : > { %1159 = vst.msk [vmem:[#allocation2 + $0x54] sm:$0xf] %vm1137_vm8, %v1084_v57  ;;  %v1490_v57 = vrot.slane %v1488_v44, 4 }
 0x108   : > { %v1504_v8 = vor.u32 %v1503_v56, %v4905_v55  ;;  %v1518_v56 = vor.u32 %v1517_v40, %v1514_v39 }
 0x109   : > { %v1494_v10 = vor.u32 %v1493_v58, %v1490_v57  ;;  %v1549_v57 = vshrl.u32 %v3904_v29, 16 }
 0x10a   : > { %1292 = vrot.lane.b32.xlu1 %v3883_v60, %s4322_s22  ;;  %v1475_v60 = vrot.slane %v1473_v48, 5  ;;  %v1505_v26 = vrot.slane %v1504_v8, 4 }
 0x10b   : > { %1290 = vrot.lane.b32.xlu0 %v3882_v61, %s4322_s22  ;;  %1288 = vrot.lane.b32.xlu2 %v3881_v0, %s4322_s22  ;;  %v3899_v61 = vld [vmem:[%s4372_s19 + $0x38] sm:$0x1]  ;;  %v1457_v0 = vrot.slane %v1456_v50, 4  ;;  %v1495_v28 = vrot.slane %v1494_v10, 4 }
 0x10c   : > { %v1076_v5 = vpop.permute.xlu1 %1075  ;;  %v1476_v14 = vsel %vm4383_vm2, %v1471_v59, %v1475_v60  ;;  %v1480_v23 = vor.u32 %v1479_v6, %v1475_v60  ;;  %v3912_v60 = vld [vmem:[%s4372_s19 + $0x6c] sm:$0xf]  ;;  %v1519_v6 = vrot.slane %v1518_v56, 4 }
 0x10d   : > { %1155 = vst.msk [vmem:[#allocation2 + $0x44] sm:$0xf] %vm1137_vm8, %v1076_v5  ;;  %v1074_v9 = vpop.permute.xlu0 %1073  ;;  %v1090_v13 = vpop.permute.xlu2 %1089  ;;  %v1447_v5 = vrot.slane %v1446_v54, 4  ;;  %v1500_v45 = vsel %vm4383_vm2, %v1495_v28, %v4905_v55  ;;  %v1563_v54 = vshll.u32 %v3906_v38, 16  ;;  %v3908_v55 = vld [vmem:[%s4372_s19 + $0x5c] sm:$0x1] }
 0x10e   : > { %1154 = vst.msk [vmem:[#allocation2 + $0x40] sm:$0xf] %vm1137_vm8, %v1074_v9  ;;  %v1507_v9 = vshll.u32 %v3899_v61, 16  ;;  %v1481_v42 = vrot.slane %v1480_v23, 4  ;;  %v1611_v10 = vshll.u32 %v3912_v60, 16 }
 0x10f   : > { %1162 = vst.msk [vmem:[#allocation2 + $0x60] sm:$0xf] %vm1137_vm8, %v1090_v13  ;;  %v3896_v13 = vld [vmem:[%s4372_s19 + $0x2c] sm:$0x1]  ;;  %v3911_v38 = vld [vmem:[%s4372_s19 + $0x68] sm:$0x1] }
 0x110   : > { %v1483_v24 = vshll.u32 %v3896_v13, 16  ;;  %v1509_v27 = vrot.slane %v1507_v9, 5  ;;  %v1608_v9 = vshrl.u32 %v3912_v60, 16  ;;  %v3905_v13 = vld [vmem:[%s4372_s19 + $0x50] sm:$0x1] }
 0x112   : > { %1298 = vrot.lane.b32.xlu1 %v3886_v15, %s4322_s22  ;;  %v1539_v15 = vshll.u32 %v3903_v62, 16  ;;  %v1485_v43 = vrot.slane %v1483_v24, 5  ;;  %v1510_v44 = vsel %vm4383_vm2, %v1505_v26, %v1509_v27  ;;  %v1555_v24 = vshll.u32 %v3905_v13, 16 }
 0x113   : > { %1296 = vrot.lane.b32.xlu0 %v3885_v18, %s4322_s22  ;;  %1294 = vrot.lane.b32.xlu2 %v3884_v22, %s4322_s22  ;;  %v1462_v18 = vsel %vm4383_vm2, %v1457_v0, %v1461_v2  ;;  %v1452_v22 = vsel %vm4383_vm2, %v1447_v5, %v4891_v35  ;;  %v1573_v35 = vshrl.u32 %v3907_v19, 16  ;;  %v1562_v0 = vrot.slane %v1560_v51, 4 }
 0x114   : > { %v1082_v32 = vpop.permute.xlu1 %1081  ;;  %v1541_v31 = vrot.slane %v1539_v15, 5  ;;  %v1486_v58 = vsel %vm4383_vm2, %v1481_v42, %v1485_v43  ;;  %v1565_v5 = vrot.slane %v1563_v54, 5  ;;  %v1610_v28 = vrot.slane %v1608_v9, 4  ;;  %v3918_v9 = vld [vmem:[%s4372_s19 + $0x84] sm:$0xf] }
 0x115   : > { %1158 = vst.msk [vmem:[#allocation2 + $0x50] sm:$0xf] %vm1137_vm8, %v1082_v32  ;;  %v1080_v37 = vpop.permute.xlu0 %1079  ;;  %v1096_v41 = vpop.permute.xlu2 %1095  ;;  %v3902_v32 = vld [vmem:[%s4372_s19 + $0x44] sm:$0x1] }
 0x116   : > { %1157 = vst.msk [vmem:[#allocation2 + $0x4c] sm:$0xf] %vm1137_vm8, %v1080_v37  ;;  %v1542_v48 = vor.u32 %v1541_v31, %v1538_v30  ;;  %v1531_v50 = vshll.u32 %v3902_v32, 16  ;;  %v1566_v21 = vor.u32 %v1565_v5, %v1562_v0  ;;  %v4968_v30 = vrot.slane %v1593_v17, 5  ;;  %v3916_v32 = vld [vmem:[%s4372_s19 + $0x7c] sm:$0xf] }
 0x117   : > { %1165 = vst.msk [vmem:[#allocation2 + $0x6c] sm:$0xf] %vm1137_vm8, %v1096_v41  ;;  %v3919_v5 = vld [vmem:[%s4372_s19 + $0x88] sm:$0xf] }
 0x118   : > { %v1543_v61 = vrot.slane %v1542_v48, 4 }
 0x11a   : > { %1801 = vrot.lane.b32.xlu1 %v1438_v46, %s4323_s23  ;;  %v1545_v46 = vshll.u32 %v3904_v29, 16  ;;  %v1613_v29 = vrot.slane %v1611_v10, 5 }
 0x11b   : > { %1799 = vrot.lane.b32.xlu0 %v1428_v49, %s4323_s23  ;;  %1300 = vrot.lane.b32.xlu2 %v3887_v53, %s4322_s22  ;;  %v1528_v49 = vor.u32 %v1527_v34, %v4930_v33  ;;  %v1575_v53 = vrot.slane %v1573_v35, 4  ;;  %v3915_v34 = vld [vmem:[%s4372_s19 + $0x78] sm:$0xf]  ;;  %v3913_v35 = vld [vmem:[%s4372_s19 + $0x70] sm:$0xf] }
 0x11c   : > { %v1088_v63 = vpop.permute.xlu1 %1087  ;;  %v1547_v59 = vrot.slane %v1545_v46, 5  ;;  %v1645_v46 = vshrl.u32 %v3916_v32, 16  ;;  %v1635_v48 = vshll.u32 %v3915_v34, 16  ;;  %v1621_v56 = vshrl.u32 %v3913_v35, 16 }
 0x11d   : > { %1161 = vst.msk [vmem:[#allocation2 + $0x5c] sm:$0xf] %vm1137_vm8, %v1088_v63  ;;  %v1086_v4 = vpop.permute.xlu0 %1085  ;;  %v1102_v11 = vpop.permute.xlu2 %1101  ;;  %v1529_v62 = vrot.slane %v1528_v49, 4  ;;  %v1533_v63 = vrot.slane %v1531_v50, 5  ;;  %v1576_v3 = vor.u32 %v1575_v53, %v4943_v52  ;;  %v1614_v49 = vor.u32 %v1613_v29, %v1610_v28 }
 0x11e   : > { %1160 = vst.msk [vmem:[#allocation2 + $0x58] sm:$0xf] %vm1137_vm8, %v1086_v4  ;;  %v1579_v4 = vshll.u32 %v3908_v55, 16  ;;  %v1548_v15 = vsel %vm4383_vm2, %v1543_v61, %v1547_v59  ;;  %v1617_v50 = vshll.u32 %v3913_v35, 16  ;;  %v1603_v53 = vshll.u32 %v3911_v38, 16 }
 0x11f   : > { %1168 = vst.msk [vmem:[#allocation2 + $0x78] sm:$0xf] %vm1137_vm8, %v1102_v11  ;;  %v1551_v11 = vrot.slane %v1549_v57, 4  ;;  %v1534_v16 = vsel %vm4383_vm2, %v1529_v62, %v1533_v63  ;;  %v1577_v19 = vrot.slane %v1576_v3, 4  ;;  %v1637_v61 = vrot.slane %v1635_v48, 5 }
 0x120   : > { %v1581_v20 = vrot.slane %v1579_v4, 5  ;;  %v1615_v62 = vrot.slane %v1614_v49, 4  ;;  %v1619_v63 = vrot.slane %v1617_v50, 5  ;;  %v1605_v0 = vrot.slane %v1603_v53, 5  ;;  %v3921_v4 = vld [vmem:[%s4372_s19 + $0x90] sm:$0xf] }
 0x121   : > { %v1552_v23 = vor.u32 %v1551_v11, %v1547_v59  ;;  %v1647_v59 = vrot.slane %v1645_v46, 4  ;;  %v1680_v17 = vshrl.u32 %v3921_v4, 16 }
 0x122   : > { %1807 = vrot.lane.b32.xlu1 %v1476_v14, %s4323_s23  ;;  %v3909_v14 = vld [vmem:[%s4372_s19 + $0x60] sm:$0xf] }
 0x123   : > { %1805 = vrot.lane.b32.xlu0 %v1462_v18, %s4323_s23  ;;  %1803 = vrot.lane.b32.xlu2 %v1452_v22, %s4323_s23  ;;  %v1597_v18 = vshrl.u32 %v3910_v7, 16  ;;  %v1524_v22 = vsel %vm4383_vm2, %v1519_v6, %v4930_v33  ;;  %v1584_v26 = vshrl.u32 %v3909_v14, 16  ;;  %v1587_v27 = vshll.u32 %v3909_v14, 16  ;;  %v3914_v14 = vld [vmem:[%s4372_s19 + $0x74] sm:$0x1] }
 0x124   : > { %v1094_v37 = vpop.permute.xlu1 %1093  ;;  %v1582_v33 = vsel %vm4383_vm2, %v1577_v19, %v1581_v20  ;;  %v1553_v40 = vrot.slane %v1552_v23, 4  ;;  %v1665_v19 = vshll.u32 %v3919_v5, 16  ;;  %v1669_v20 = vshrl.u32 %v3919_v5, 16 }
 0x125   : > { %1164 = vst.msk [vmem:[#allocation2 + $0x68] sm:$0xf] %vm1137_vm8, %v1094_v37  ;;  %v1092_v41 = vpop.permute.xlu0 %1091  ;;  %v1241_v47 = vpop.permute.xlu2 %1240  ;;  %v1599_v31 = vrot.slane %v1597_v18, 4  ;;  %v1567_v37 = vrot.slane %v1566_v21, 4  ;;  %v1586_v42 = vrot.slane %v1584_v26, 4  ;;  %v1589_v43 = vrot.slane %v1587_v27, 5 }
 0x126   : > { %1163 = vst.msk [vmem:[#allocation2 + $0x64] sm:$0xf] %vm1137_vm8, %v1092_v41  ;;  %v1557_v41 = vrot.slane %v1555_v24, 5  ;;  %v1683_v18 = vshll.u32 %v3921_v4, 16  ;;  %v1656_v21 = vshrl.u32 %v3918_v9, 16  ;;  %v1627_v26 = vshll.u32 %v3914_v14, 16 }
 0x127   : > { %1336 = vst.msk [vmem:[#allocation2 + $0x4] sm:$0xf] %vm1334_vm9, %v1241_v47  ;;  %v1632_v47 = vshrl.u32 %v3915_v34, 16  ;;  %v1600_v51 = vor.u32 %v1599_v31, %v4968_v30  ;;  %v1572_v54 = vsel %vm4383_vm2, %v1567_v37, %v4943_v52  ;;  %v1682_v31 = vrot.slane %v1680_v17, 4  ;;  %v3925_v34 = vld [vmem:[%s4372_s19 + $0xa0] sm:$0xf] }
 0x128   : > { %v1558_v57 = vsel %vm4383_vm2, %v1553_v40, %v1557_v41  ;;  %v3922_v37 = vld [vmem:[%s4372_s19 + $0x94] sm:$0xf]  ;;  %v5013_v35 = vrot.slane %v1665_v19, 5  ;;  %v1658_v38 = vrot.slane %v1656_v21, 4  ;;  %v3920_v41 = vld [vmem:[%s4372_s19 + $0x8c] sm:$0x1] }
 0x129   : > { %v1634_v60 = vrot.slane %v1632_v47, 4  ;;  %v1601_v52 = vrot.slane %v1600_v51, 4  ;;  %v1717_v46 = vshrl.u32 %v3925_v34, 16  ;;  %v1689_v51 = vshll.u32 %v3922_v37, 16  ;;  %v3923_v14 = vld [vmem:[%s4372_s19 + $0x98] sm:$0x1] }
 0x12a   : > { %1813 = vrot.lane.b32.xlu1 %v1510_v44, %s4323_s23 }
 0x12b   : > { %1811 = vrot.lane.b32.xlu0 %v1500_v45, %s4323_s23  ;;  %1809 = vrot.lane.b32.xlu2 %v1486_v58, %s4323_s23  ;;  %v1641_v45 = vshll.u32 %v3916_v32, 16  ;;  %v1590_v58 = vor.u32 %v1589_v43, %v1586_v42  ;;  %v1685_v32 = vrot.slane %v1683_v18, 5  ;;  %v1629_v43 = vrot.slane %v1627_v26, 5 }
 0x12c   : > { %v1100_v2 = vpop.permute.xlu1 %1099 }
 0x12d   : > { %1167 = vst.msk [vmem:[#allocation2 + $0x74] sm:$0xf] %vm1137_vm8, %v1100_v2  ;;  %v1098_v8 = vpop.permute.xlu0 %1097  ;;  %v1247_v12 = vpop.permute.xlu2 %1246  ;;  %v4987_v55 = vrot.slane %v1641_v45, 5  ;;  %v3917_v2 = vld [vmem:[%s4372_s19 + $0x80] sm:$0x1]  ;;  %v1591_v7 = vrot.slane %v1590_v58, 4  ;;  %v1686_v50 = vor.u32 %v1685_v32, %v1682_v31 }
 0x12e   : > { %1166 = vst.msk [vmem:[#allocation2 + $0x70] sm:$0xf] %vm1137_vm8, %v1098_v8  ;;  %v1623_v8 = vrot.slane %v1621_v56, 4  ;;  %v1651_v11 = vshll.u32 %v3917_v2, 16  ;;  %v1713_v45 = vshll.u32 %v3925_v34, 16  ;;  %v1675_v56 = vshll.u32 %v3920_v41, 16 }
 0x12f   : > { %1339 = vst.msk [vmem:[#allocation2 + $0x10] sm:$0xf] %vm1334_vm9, %v1247_v12  ;;  %v1648_v10 = vor.u32 %v1647_v59, %v4987_v55  ;;  %v1638_v12 = vor.u32 %v1637_v61, %v1634_v60  ;;  %v1596_v23 = vsel %vm4383_vm2, %v1591_v7, %v4968_v30  ;;  %v1671_v30 = vrot.slane %v1669_v20, 4  ;;  %v3926_v60 = vld [vmem:[%s4372_s19 + $0xa4] sm:$0x1] }
 0x130   : > { %v1624_v24 = vor.u32 %v1623_v8, %v1619_v63  ;;  %v1653_v28 = vrot.slane %v1651_v11, 5  ;;  %v1693_v58 = vshrl.u32 %v3922_v37, 16  ;;  %v5029_v61 = vrot.slane %v1713_v45, 5  ;;  %v3931_v32 = vld [vmem:[%s4372_s19 + $0xb8] sm:$0xf] }
 0x131   : > { %v1649_v27 = vrot.slane %v1648_v10, 4  ;;  %v1639_v29 = vrot.slane %v1638_v12, 4  ;;  %v1677_v4 = vrot.slane %v1675_v56, 5  ;;  %v1723_v8 = vshll.u32 %v3926_v60, 16 }
 0x132   : > { %1819 = vrot.lane.b32.xlu1 %v1548_v15, %s4323_s23  ;;  %v1620_v15 = vsel %vm4383_vm2, %v1615_v62, %v1619_v63  ;;  %v1625_v42 = vrot.slane %v1624_v24, 4  ;;  %v1719_v62 = vrot.slane %v1717_v46, 4  ;;  %v1695_v10 = vrot.slane %v1693_v58, 4 }
 0x133   : > { %1817 = vrot.lane.b32.xlu0 %v1534_v16, %s4323_s23  ;;  %1815 = vrot.lane.b32.xlu2 %v1524_v22, %s4323_s23  ;;  %v1606_v16 = vsel %vm4383_vm2, %v1601_v52, %v1605_v0  ;;  %v1659_v22 = vshll.u32 %v3918_v9, 16  ;;  %v1654_v49 = vsel %vm4383_vm2, %v1649_v27, %v1653_v28  ;;  %v1644_v53 = vsel %vm4383_vm2, %v1639_v29, %v4987_v55  ;;  %v3928_v9 = vld [vmem:[%s4372_s19 + $0xac] sm:$0xf] }
 0x134   : > { %v1239_v36 = vpop.permute.xlu1 %1238  ;;  %v1630_v59 = vsel %vm4383_vm2, %v1625_v42, %v1629_v43  ;;  %v1687_v55 = vrot.slane %v1686_v50, 4  ;;  %v1691_v0 = vrot.slane %v1689_v51, 5  ;;  %v1720_v11 = vor.u32 %v1719_v62, %v5029_v61 }
 0x135   : > { %1335 = vst.msk [vmem:[#allocation2] sm:$0xf] %vm1334_vm9, %v1239_v36  ;;  %v1104_v39 = vpop.permute.xlu0 %1103  ;;  %v1253_v44 = vpop.permute.xlu2 %1252  ;;  %v3924_v36 = vld [vmem:[%s4372_s19 + $0x9c] sm:$0xf]  ;;  %v1737_v21 = vshll.u32 %v3928_v9, 16  ;;  %v1699_v24 = vshll.u32 %v3923_v14, 16 }
 0x136   : > { %1169 = vst.msk [vmem:[#allocation2 + $0x7c] sm:$0xf] %vm1137_vm8, %v1104_v39  ;;  %v1661_v39 = vrot.slane %v1659_v22, 5  ;;  %v1704_v47 = vshrl.u32 %v3924_v36, 16  ;;  %v1707_v48 = vshll.u32 %v3924_v36, 16  ;;  %v1741_v22 = vshrl.u32 %v3928_v9, 16 }
 0x137   : > { %1342 = vst.msk [vmem:[#allocation2 + $0x1c] sm:$0xf] %vm1334_vm9, %v1253_v44  ;;  %v1721_v28 = vrot.slane %v1720_v11, 4  ;;  %v1725_v29 = vrot.slane %v1723_v8, 5  ;;  %v1701_v42 = vrot.slane %v1699_v24, 5  ;;  %v1765_v58 = vshrl.u32 %v3931_v32, 16 }
 0x138   : > { %v1706_v63 = vrot.slane %v1704_v47, 4  ;;  %v1709_v52 = vrot.slane %v1707_v48, 5  ;;  %v3937_v24 = vld [vmem:[%s4372_s19 + $0x10] sm:$0xf] }
 0x139   : > { %v1726_v45 = vsel %vm4383_vm2, %v1721_v28, %v1725_v29  ;;  %v1767_v8 = vrot.slane %v1765_v58, 4 }
 0x13a   : > { %1825 = vrot.lane.b32.xlu1 %v1582_v33, %s4323_s23  ;;  %v1710_v12 = vor.u32 %v1709_v52, %v1706_v63 }
 0x13b   : > { %1823 = vrot.lane.b32.xlu0 %v1572_v54, %s4323_s23  ;;  %1821 = vrot.lane.b32.xlu2 %v1558_v57, %s4323_s23  ;;  %v1672_v54 = vor.u32 %v1671_v30, %v5013_v35  ;;  %v1662_v57 = vor.u32 %v1661_v39, %v1658_v38  ;;  %v1743_v30 = vrot.slane %v1741_v22, 4  ;;  %v3934_v38 = vld [vmem:[%s4372_s19 + $0xc4] sm:$0xf]  ;;  %v3933_v39 = vld [vmem:[%s4372_s19 + $0xc0] sm:$0xf] }
 0x13c   : > { %v1245_v3 = vpop.permute.xlu1 %1244  ;;  %v1711_v31 = vrot.slane %v1710_v12, 4  ;;  %v1785_v50 = vshll.u32 %v3934_v38, 16  ;;  %v1789_v51 = vshrl.u32 %v3934_v38, 16  ;;  %v1776_v56 = vshrl.u32 %v3933_v39, 16 }
 0x13d   : > { %1338 = vst.msk [vmem:[#allocation2 + $0xc] sm:$0xf] %vm1334_vm9, %v1245_v3  ;;  %v1243_v6 = vpop.permute.xlu0 %1242  ;;  %v1259_v13 = vpop.permute.xlu2 %1258  ;;  %v1673_v3 = vrot.slane %v1672_v54, 4  ;;  %v1663_v5 = vrot.slane %v1662_v57, 4  ;;  %v1779_v57 = vshll.u32 %v3933_v39, 16 }
 0x13e   : > { %1337 = vst.msk [vmem:[#allocation2 + $0x8] sm:$0xf] %vm1334_vm9, %v1243_v6  ;;  %v3930_v6 = vld [vmem:[%s4372_s19 + $0xb4] sm:$0xf]  ;;  %v1716_v46 = vsel %vm4383_vm2, %v1711_v31, %v5029_v61  ;;  %v1787_v63 = vrot.slane %v1785_v50, 5  ;;  %v1791_v52 = vrot.slane %v1789_v51, 4 }
 0x13f   : > { %1345 = vst.msk [vmem:[#allocation2 + $0x28] sm:$0xf] %vm1334_vm9, %v1259_v13  ;;  %v1752_v17 = vshrl.u32 %v3930_v6, 16  ;;  %v1755_v18 = vshll.u32 %v3930_v6, 16  ;;  %v1678_v19 = vsel %vm4383_vm2, %v1673_v3, %v1677_v4  ;;  %v1668_v20 = vsel %vm4383_vm2, %v1663_v5, %v5013_v35  ;;  %v3935_v3 = vld [vmem:[%s4372_s19 + $0xc8] sm:$0x1] }
 0x140   : > { %v1739_v35 = vrot.slane %v1737_v21, 5  ;;  %v1778_v4 = vrot.slane %v1776_v56, 4  ;;  %v1781_v5 = vrot.slane %v1779_v57, 5  ;;  %v1792_v12 = vor.u32 %v1791_v52, %v1787_v63  ;;  %v3942_v50 = vld [vmem:[%s4372_s19 + $0x24] sm:$0xe] }
 0x141   : > { %v1754_v34 = vrot.slane %v1752_v17, 4  ;;  %v1757_v36 = vrot.slane %v1755_v18, 5  ;;  %v3986_v58 = vrot.slane %v3942_v50, 9 }
 0x142   : > { %1831 = vrot.lane.b32.xlu1 %v1620_v15, %s4323_s23  ;;  %v3927_v15 = vld [vmem:[%s4372_s19 + $0xa8] sm:$0xf] }
 0x143   : > { %1829 = vrot.lane.b32.xlu0 %v1606_v16, %s4323_s23  ;;  %1827 = vrot.lane.b32.xlu2 %v1596_v23, %s4323_s23  ;;  %v1692_v16 = vsel %vm4383_vm2, %v1687_v55, %v1691_v0  ;;  %v1696_v23 = vor.u32 %v1695_v10, %v1691_v0  ;;  %v1728_v26 = vshrl.u32 %v3927_v15, 16  ;;  %v1731_v27 = vshll.u32 %v3927_v15, 16  ;;  %v3932_v10 = vld [vmem:[%s4372_s19 + $0xbc] sm:$0x1] }
 0x144   : > { %v1251_v33 = vpop.permute.xlu1 %1250  ;;  %v1758_v48 = vor.u32 %v1757_v36, %v1754_v34  ;;  %v1782_v15 = vor.u32 %v1781_v5, %v1778_v4  ;;  %v1771_v18 = vshll.u32 %v3932_v10, 16  ;;  %v3940_v34 = vld [vmem:[%s4372_s19 + $0x1c] sm:$0xf]  ;;  %v2026_v36 = vrot.slane %v3937_v24, 5  ;;  %v3947_v4 = vld [vmem:[%s4372_s19 + $0x38] sm:$0x1] }
 0x145   : > { %1341 = vst.msk [vmem:[#allocation2 + $0x18] sm:$0xf] %vm1334_vm9, %v1251_v33  ;;  %v1249_v40 = vpop.permute.xlu0 %1248  ;;  %v1265_v44 = vpop.permute.xlu2 %1264  ;;  %v3929_v33 = vld [vmem:[%s4372_s19 + $0xb0] sm:$0x1]  ;;  %v1697_v41 = vrot.slane %v1696_v23, 4  ;;  %v1730_v43 = vrot.slane %v1728_v26, 4 }
 0x146   : > { %1340 = vst.msk [vmem:[#allocation2 + $0x14] sm:$0xf] %vm1334_vm9, %v1249_v40  ;;  %v1747_v54 = vshll.u32 %v3929_v33, 16  ;;  %v1759_v61 = vrot.slane %v1758_v48, 4  ;;  %v1783_v22 = vrot.slane %v1782_v15, 4  ;;  %v2033_v38 = vrot.slane %v3940_v34, 5 }
 0x147   : > { %1348 = vst.msk [vmem:[#allocation2 + $0x34] sm:$0xf] %vm1334_vm9, %v1265_v44  ;;  %v1733_v44 = vrot.slane %v1731_v27, 5  ;;  %v1773_v27 = vrot.slane %v1771_v18, 5  ;;  %v3938_v33 = vld [vmem:[%s4372_s19 + $0x14] sm:$0x1] }
 0x148   : > { %v1788_v31 = vsel %vm4383_vm2, %v1783_v22, %v1787_v63  ;;  %v3950_v22 = vld [vmem:[%s4372_s19 + $0x44] sm:$0x1] }
 0x149   : > { %v1734_v60 = vor.u32 %v1733_v44, %v1730_v43 }
 0x14a   : > { %1837 = vrot.lane.b32.xlu1 %v1654_v49, %s4323_s23  ;;  %v1761_v49 = vshll.u32 %v3931_v32, 16  ;;  %v3939_v32 = vld [vmem:[%s4372_s19 + $0x18] sm:$0xe] }
 0x14b   : > { %1835 = vrot.lane.b32.xlu0 %v1644_v53, %s4323_s23  ;;  %1833 = vrot.lane.b32.xlu2 %v1630_v59, %s4323_s23  ;;  %v1744_v53 = vor.u32 %v1743_v30, %v1739_v35  ;;  %v1702_v59 = vsel %vm4383_vm2, %v1697_v41, %v1701_v42  ;;  %v3985_v30 = vrot.slane %v3939_v32, 9  ;;  %v2029_v41 = vrot.slane %v3938_v33, 5  ;;  %v3943_v42 = vld [vmem:[%s4372_s19 + $0x28] sm:$0xf] }
 0x14c   : > { %v1257_v2 = vpop.permute.xlu1 %1256  ;;  %v1763_v62 = vrot.slane %v1761_v49, 5  ;;  %v3944_v49 = vld [vmem:[%s4372_s19 + $0x2c] sm:$0x1]  ;;  %v2057_v32 = vrot.slane %v3950_v22, 5 }
 0x14d   : > { %1344 = vst.msk [vmem:[#allocation2 + $0x24] sm:$0xf] %vm1334_vm9, %v1257_v2  ;;  %v1255_v7 = vpop.permute.xlu0 %1254  ;;  %v1271_v13 = vpop.permute.xlu2 %1270  ;;  %v1745_v0 = vrot.slane %v1744_v53, 4  ;;  %v1749_v2 = vrot.slane %v1747_v54, 5  ;;  %v3941_v53 = vld [vmem:[%s4372_s19 + $0x20] sm:$0x1] }
 0x14e   : > { %1343 = vst.msk [vmem:[#allocation2 + $0x20] sm:$0xf] %vm1334_vm9, %v1255_v7  ;;  %v1735_v7 = vrot.slane %v1734_v60, 4  ;;  %v1764_v11 = vsel %vm4383_vm2, %v1759_v61, %v1763_v62  ;;  %v1768_v17 = vor.u32 %v1767_v8, %v1763_v62  ;;  %v2043_v56 = vrot.slane %v3944_v49, 5  ;;  %v3946_v60 = vld [vmem:[%s4372_s19 + $0x34] sm:$0xf] }
 0x14f   : > { %1351 = vst.msk [vmem:[#allocation2 + $0x40] sm:$0xf] %vm1334_vm9, %v1271_v13  ;;  %v1795_v13 = vshll.u32 %v3935_v3, 16  ;;  %v1750_v14 = vsel %vm4383_vm2, %v1745_v0, %v1749_v2  ;;  %v2035_v61 = vrot.slane %v2033_v38, 4  ;;  %v2036_v62 = vrot.slane %v3941_v53, 5 }
 0x150   : > { %v1769_v26 = vrot.slane %v1768_v17, 4  ;;  %v3948_v0 = vld [vmem:[%s4372_s19 + $0x3c] sm:$0xe]  ;;  %v3949_v2 = vld [vmem:[%s4372_s19 + $0x40] sm:$0xf]  ;;  %v2047_v3 = vrot.slane %v3946_v60, 5 }
 0x151   : > { %v2037_v5 = vsel %vm4558_vm6, %v2035_v61, %v2036_v62  ;;  %v2054_v8 = vrot.slane %v3949_v2, 5 }
 0x152   : > { %1843 = vrot.lane.b32.xlu1 %v1692_v16, %s4323_s23  ;;  %v1740_v16 = vsel %vm4383_vm2, %v1735_v7, %v1739_v35  ;;  %v3936_v35 = vld [vmem:[%s4372_s19 + $0xc] sm:$0xe]  ;;  %v3988_v7 = vrot.slane %v3948_v0, 9  ;;  %v2049_v10 = vrot.slane %v2047_v3, 4 }
 0x153   : > { %1841 = vrot.lane.b32.xlu0 %v1678_v19, %s4323_s23  ;;  %1839 = vrot.lane.b32.xlu2 %v1668_v20, %s4323_s23  ;;  %v1793_v19 = vrot.slane %v1792_v12, 4  ;;  %v1797_v20 = vrot.slane %v1795_v13, 5  ;;  %v3984_v44 = vrot.slane %v3936_v35, 9  ;;  %v3952_v12 = vld [vmem:[%s4372_s19 + $0x4c] sm:$0xf] }
 0x154   : > { %v1263_v37 = vpop.permute.xlu1 %1262  ;;  %v2061_v17 = vrot.slane %v3952_v12, 5  ;;  %v3958_v35 = vld [vmem:[%s4372_s19 + $0x64] sm:$0xf] }
 0x155   : > { %1347 = vst.msk [vmem:[#allocation2 + $0x30] sm:$0xf] %vm1334_vm9, %v1263_v37  ;;  %v1261_v40 = vpop.permute.xlu0 %1260  ;;  %v1277_v47 = vpop.permute.xlu2 %1276  ;;  %v1798_v29 = vsel %vm4383_vm2, %v1793_v19, %v1797_v20  ;;  %v1774_v37 = vsel %vm4383_vm2, %v1769_v26, %v1773_v27  ;;  %v2027_v51 = vsel %vm4558_vm6, %v3984_v44, %v2026_v36  ;;  %v3953_v19 = vld [vmem:[%s4372_s19 + $0x50] sm:$0x1]  ;;  %v3951_v20 = vld [vmem:[%s4372_s19 + $0x48] sm:$0xe] }
 0x156   : > { %1346 = vst.msk [vmem:[#allocation2 + $0x2c] sm:$0xf] %vm1334_vm9, %v1261_v40  ;;  %v2028_v40 = vrot.slane %v2026_v36, 4  ;;  %v2064_v24 = vrot.slane %v3953_v19, 5  ;;  %v3989_v27 = vrot.slane %v3951_v20, 9 }
 0x157   : > { %1354 = vst.msk [vmem:[#allocation2 + $0x4c] sm:$0xf] %vm1334_vm9, %v1277_v47  ;;  %v2040_v47 = vrot.slane %v3943_v42, 5  ;;  %v2075_v42 = vrot.slane %v3958_v35, 5 }
 0x158   : > { %v2030_v48 = vsel %vm4558_vm6, %v2028_v40, %v2029_v41  ;;  %v2062_v33 = vsel %vm4558_vm6, %v3989_v27, %v2061_v17  ;;  %v3954_v40 = vld [vmem:[%s4372_s19 + $0x54] sm:$0xe]  ;;  %v3968_v27 = vld [vmem:[%s4372_s19 + $0x8c] sm:$0x1] }
 0x159   : > { %v2042_v54 = vrot.slane %v2040_v47, 4 }
 0x15a   : > { %1849 = vrot.lane.b32.xlu1 %v1726_v45, %s4323_s23 }
 0x15b   : > { %1847 = vrot.lane.b32.xlu0 %v1716_v46, %s4323_s23  ;;  %1845 = vrot.lane.b32.xlu2 %v1702_v59, %s4323_s23  ;;  %v2034_v46 = vsel %vm4558_vm6, %v3985_v30, %v2033_v38  ;;  %v2044_v52 = vsel %vm4558_vm6, %v2042_v54, %v2043_v56  ;;  %v3956_v38 = vld [vmem:[%s4372_s19 + $0x5c] sm:$0x1]  ;;  %v3962_v54 = vld [vmem:[%s4372_s19 + $0x74] sm:$0x1] }
 0x15c   : > { %v1269_v55 = vpop.permute.xlu1 %1268  ;;  %v3960_v56 = vld [vmem:[%s4372_s19 + $0x6c] sm:$0xe]  ;;  %v2085_v60 = vrot.slane %v3962_v54, 5 }
 0x15d   : > { %1350 = vst.msk [vmem:[#allocation2 + $0x3c] sm:$0xf] %vm1334_vm9, %v1269_v55  ;;  %v1267_v6 = vpop.permute.xlu0 %1266  ;;  %v1283_v9 = vpop.permute.xlu2 %1282  ;;  %v2041_v55 = vsel %vm4558_vm6, %v3986_v58, %v2040_v47  ;;  %v3959_v58 = vld [vmem:[%s4372_s19 + $0x68] sm:$0x1]  ;;  %v3992_v62 = vrot.slane %v3960_v56, 9 }
 0x15e   : > { %1349 = vst.msk [vmem:[#allocation2 + $0x38] sm:$0xf] %vm1334_vm9, %v1267_v6  ;;  %v3945_v6 = vld [vmem:[%s4372_s19 + $0x30] sm:$0xe]  ;;  %v2078_v0 = vrot.slane %v3959_v58, 5 }
 0x15f   : > { %1357 = vst.msk [vmem:[#allocation2 + $0x58] sm:$0xf] %vm1334_vm9, %v1283_v9 }
 0x162   : > { %1855 = vrot.lane.b32.xlu1 %v1764_v11, %s4323_s23  ;;  %v2050_v11 = vrot.slane %v3947_v4, 5 }
 0x163   : > { %1853 = vrot.lane.b32.xlu0 %v1750_v14, %s4323_s23  ;;  %1851 = vrot.lane.b32.xlu2 %v1740_v16, %s4323_s23  ;;  %v3987_v14 = vrot.slane %v3945_v6, 9  ;;  %v2055_v16 = vsel %vm4558_vm6, %v3988_v7, %v2054_v8  ;;  %v3967_v6 = vld [vmem:[%s4372_s19 + $0x88] sm:$0xf] }
 0x164   : > { %v1275_v21 = vpop.permute.xlu1 %1274  ;;  %v2051_v18 = vsel %vm4558_vm6, %v2049_v10, %v2050_v11  ;;  %v3963_v10 = vld [vmem:[%s4372_s19 + $0x78] sm:$0xe]  ;;  %v2096_v12 = vrot.slane %v3967_v6, 5 }
 0x165   : > { %1353 = vst.msk [vmem:[#allocation2 + $0x48] sm:$0xf] %vm1334_vm9, %v1275_v21  ;;  %v1273_v23 = vpop.permute.xlu0 %1272  ;;  %v1289_v28 = vpop.permute.xlu2 %1288  ;;  %v2048_v21 = vsel %vm4558_vm6, %v3987_v14, %v2047_v3 }
 0x166   : > { %1352 = vst.msk [vmem:[#allocation2 + $0x44] sm:$0xf] %vm1334_vm9, %v1273_v23  ;;  %v2063_v23 = vrot.slane %v2061_v17, 4 }
 0x167   : > { %1360 = vst.msk [vmem:[#allocation2 + $0x64] sm:$0xf] %vm1334_vm9, %v1289_v28 }
 0x168   : > { %v2065_v36 = vsel %vm4558_vm6, %v2063_v23, %v2064_v24  ;;  %v3971_v23 = vld [vmem:[%s4372_s19 + $0x98] sm:$0x1]  ;;  %v3969_v24 = vld [vmem:[%s4372_s19 + $0x90] sm:$0xe] }
 0x16a   : > { %1861 = vrot.lane.b32.xlu1 %v1798_v29, %s4323_s23  ;;  %v3955_v29 = vld [vmem:[%s4372_s19 + $0x58] sm:$0xf] }
 0x16b   : > { %1859 = vrot.lane.b32.xlu0 %v1788_v31, %s4323_s23  ;;  %1857 = vrot.lane.b32.xlu2 %v1774_v37, %s4323_s23  ;;  %v2056_v31 = vrot.slane %v2054_v8, 4  ;;  %v3957_v37 = vld [vmem:[%s4372_s19 + $0x60] sm:$0xe]  ;;  %v2068_v30 = vrot.slane %v3955_v29, 5  ;;  %v3965_v8 = vld [vmem:[%s4372_s19 + $0x80] sm:$0x1] }
 0x16c   : > { %v1281_v39 = vpop.permute.xlu1 %1280  ;;  %v3991_v41 = vrot.slane %v3957_v37, 9  ;;  %v2106_v29 = vrot.slane %v3971_v23, 5  ;;  %v2099_v37 = vrot.slane %v3968_v27, 5  ;;  %v4002_v27 = vld [vmem:[%s4372_s19 + $0x24] sm:$0xf] }
 0x16d   : > { %1356 = vst.msk [vmem:[#allocation2 + $0x54] sm:$0xf] %vm1334_vm9, %v1281_v39  ;;  %v1279_v43 = vpop.permute.xlu0 %1278  ;;  %v1295_v45 = vpop.permute.xlu2 %1294  ;;  %v2058_v39 = vsel %vm4558_vm6, %v2056_v31, %v2057_v32  ;;  %v2070_v44 = vrot.slane %v2068_v30, 4  ;;  %v3995_v32 = vrot.slane %v3969_v24, 9 }
 0x16e   : > { %1355 = vst.msk [vmem:[#allocation2 + $0x50] sm:$0xf] %vm1334_vm9, %v1279_v43  ;;  %v2076_v50 = vsel %vm4558_vm6, %v3991_v41, %v2075_v42 }
 0x16f   : > { %1363 = vst.msk [vmem:[#allocation2 + $0x70] sm:$0xf] %vm1334_vm9, %v1295_v45  ;;  %v2071_v45 = vrot.slane %v3956_v38, 5 }
 0x171   : > { %v2072_v53 = vsel %vm4558_vm6, %v2070_v44, %v2071_v45  ;;  %v3972_v44 = vld [vmem:[%s4372_s19 + $0x9c] sm:$0xe] }
 0x172   : > { %2140 = vrot.lane.b32.xlu1 %v2034_v46, %s4324_s24  ;;  %v3961_v46 = vld [vmem:[%s4372_s19 + $0x70] sm:$0xf] }
 0x173   : > { %2138 = vrot.lane.b32.xlu0 %v2030_v48, %s4324_s24  ;;  %2136 = vrot.lane.b32.xlu2 %v2027_v51, %s4324_s24  ;;  %v3990_v48 = vrot.slane %v3954_v40, 9  ;;  %v2082_v51 = vrot.slane %v3961_v46, 5  ;;  %v3976_v40 = vld [vmem:[%s4372_s19 + $0xac] sm:$0xf] }
 0x174   : > { %v1287_v57 = vpop.permute.xlu1 %1286  ;;  %v2117_v46 = vrot.slane %v3976_v40, 5  ;;  %v4007_v40 = vld [vmem:[%s4372_s19 + $0x40] sm:$0xf] }
 0x175   : > { %1359 = vst.msk [vmem:[#allocation2 + $0x60] sm:$0xf] %vm1334_vm9, %v1287_v57  ;;  %v1285_v59 = vpop.permute.xlu0 %1284  ;;  %v1301_v63 = vpop.permute.xlu2 %1300  ;;  %v2069_v57 = vsel %vm4558_vm6, %v3990_v48, %v2068_v30  ;;  %v2083_v4 = vsel %vm4558_vm6, %v3992_v62, %v2082_v51  ;;  %v3977_v62 = vld [vmem:[%s4372_s19 + $0xb0] sm:$0x1] }
 0x176   : > { %1358 = vst.msk [vmem:[#allocation2 + $0x5c] sm:$0xf] %vm1334_vm9, %v1285_v59  ;;  %v2084_v59 = vrot.slane %v2082_v51, 4 }
 0x177   : > { %1366 = vst.msk [vmem:[#allocation2 + $0x7c] sm:$0xf] %vm1334_vm9, %v1301_v63 }
 0x178   : > { %v2086_v3 = vsel %vm4558_vm6, %v2084_v59, %v2085_v60  ;;  %v3980_v59 = vld [vmem:[%s4372_s19 + $0xbc] sm:$0x1]  ;;  %v3978_v60 = vld [vmem:[%s4372_s19 + $0xb4] sm:$0xe] }
 0x17a   : > { %2146 = vrot.lane.b32.xlu1 %v2044_v52, %s4324_s24  ;;  %v3964_v52 = vld [vmem:[%s4372_s19 + $0x7c] sm:$0xf] }
 0x17b   : > { %2144 = vrot.lane.b32.xlu0 %v2041_v55, %s4324_s24  ;;  %2142 = vrot.lane.b32.xlu2 %v2037_v5, %s4324_s24  ;;  %v2077_v55 = vrot.slane %v2075_v42, 4  ;;  %v3966_v5 = vld [vmem:[%s4372_s19 + $0x84] sm:$0xe]  ;;  %v2089_v7 = vrot.slane %v3964_v52, 5  ;;  %v3974_v42 = vld [vmem:[%s4372_s19 + $0xa4] sm:$0x1] }
 0x17c   : > { %v1293_v9 = vpop.permute.xlu1 %1292  ;;  %v3994_v11 = vrot.slane %v3966_v5, 9  ;;  %v2127_v52 = vrot.slane %v3980_v59, 5  ;;  %v2120_v5 = vrot.slane %v3977_v62, 5 }
 0x17d   : > { %1362 = vst.msk [vmem:[#allocation2 + $0x6c] sm:$0xf] %vm1334_vm9, %v1293_v9  ;;  %v1291_v13 = vpop.permute.xlu0 %1290  ;;  %v1804_v15 = vpop.permute.xlu2 %1803  ;;  %v2079_v9 = vsel %vm4558_vm6, %v2077_v55, %v2078_v0  ;;  %v2091_v14 = vrot.slane %v2089_v7, 4  ;;  %v3998_v0 = vrot.slane %v3978_v60, 9 }
 0x17e   : > { %1361 = vst.msk [vmem:[#allocation2 + $0x68] sm:$0xf] %vm1334_vm9, %v1291_v13  ;;  %v2097_v20 = vsel %vm4558_vm6, %v3994_v11, %v2096_v12 }
 0x17f   : > { %1898 = vst.msk [vmem:[#allocation2 + $0x8] sm:$0xf] %vm1895_vm10, %v1804_v15  ;;  %v2092_v15 = vrot.slane %v3965_v8, 5 }
 0x181   : > { %v2093_v22 = vsel %vm4558_vm6, %v2091_v14, %v2092_v15 }
 0x182   : > { %2152 = vrot.lane.b32.xlu1 %v2055_v16, %s4324_s24  ;;  %v3970_v16 = vld [vmem:[%s4372_s19 + $0x94] sm:$0xf] }
 0x183   : > { %2150 = vrot.lane.b32.xlu0 %v2051_v18, %s4324_s24  ;;  %2148 = vrot.lane.b32.xlu2 %v2048_v21, %s4324_s24  ;;  %v3993_v18 = vrot.slane %v3963_v10, 9  ;;  %v2103_v21 = vrot.slane %v3970_v16, 5  ;;  %v3983_v10 = vld [vmem:[%s4372_s19 + $0xc8] sm:$0x1] }
 0x184   : > { %v1299_v26 = vpop.permute.xlu1 %1298  ;;  %v2134_v15 = vrot.slane %v3983_v10, 5  ;;  %v4025_v10 = vld [vmem:[%s4372_s19 + $0xac] sm:$0xf] }
 0x185   : > { %1365 = vst.msk [vmem:[#allocation2 + $0x78] sm:$0xf] %vm1334_vm9, %v1299_v26  ;;  %v1297_v28 = vpop.permute.xlu0 %1296  ;;  %v1810_v34 = vpop.permute.xlu2 %1809  ;;  %v2090_v26 = vsel %vm4558_vm6, %v3993_v18, %v2089_v7  ;;  %v2104_v38 = vsel %vm4558_vm6, %v3995_v32, %v2103_v21 }
 0x186   : > { %1364 = vst.msk [vmem:[#allocation2 + $0x74] sm:$0xf] %vm1334_vm9, %v1297_v28  ;;  %v2105_v28 = vrot.slane %v2103_v21, 4 }
 0x187   : > { %1901 = vst.msk [vmem:[#allocation2 + $0x14] sm:$0xf] %vm1895_vm10, %v1810_v34 }
 0x188   : > { %v2107_v30 = vsel %vm4558_vm6, %v2105_v28, %v2106_v29  ;;  %v4001_v28 = vld [vmem:[%s4372_s19 + $0x1c] sm:$0xf] }
 0x18a   : > { %2158 = vrot.lane.b32.xlu1 %v2065_v36, %s4324_s24  ;;  %v3973_v36 = vld [vmem:[%s4372_s19 + $0xa0] sm:$0xf] }
 0x18b   : > { %2156 = vrot.lane.b32.xlu0 %v2062_v33, %s4324_s24  ;;  %2154 = vrot.lane.b32.xlu2 %v2058_v39, %s4324_s24  ;;  %v2098_v33 = vrot.slane %v2096_v12, 4  ;;  %v3975_v39 = vld [vmem:[%s4372_s19 + $0xa8] sm:$0xe]  ;;  %v2110_v41 = vrot.slane %v3973_v36, 5  ;;  %v3981_v12 = vld [vmem:[%s4372_s19 + $0xc0] sm:$0xe] }
 0x18c   : > { %v1802_v43 = vpop.permute.xlu1 %1801  ;;  %v3997_v45 = vrot.slane %v3975_v39, 9  ;;  %v4005_v36 = vld [vmem:[%s4372_s19 + $0x34] sm:$0xf]  ;;  %v4008_v39 = vld [vmem:[%s4372_s19 + $0x48] sm:$0xf] }
 0x18d   : > { %1897 = vst.msk [vmem:[#allocation2 + $0x4] sm:$0xf] %vm1895_vm10, %v1802_v43  ;;  %v1800_v47 = vpop.permute.xlu0 %1799  ;;  %v1816_v49 = vpop.permute.xlu2 %1815  ;;  %v2100_v43 = vsel %vm4558_vm6, %v2098_v33, %v2099_v37  ;;  %v2112_v48 = vrot.slane %v2110_v41, 4  ;;  %v4004_v33 = vld [vmem:[%s4372_s19 + $0x30] sm:$0xf] }
 0x18e   : > { %1896 = vst.msk [vmem:[#allocation2] sm:$0xf] %vm1895_vm10, %v1800_v47  ;;  %v2118_v56 = vsel %vm4558_vm6, %v3997_v45, %v2117_v46  ;;  %v4011_v45 = vld [vmem:[%s4372_s19 + $0x58] sm:$0xf] }
 0x18f   : > { %1904 = vst.msk [vmem:[#allocation2 + $0x20] sm:$0xf] %vm1895_vm10, %v1816_v49  ;;  %v2113_v49 = vrot.slane %v3974_v42, 5 }
 0x191   : > { %v2114_v58 = vsel %vm4558_vm6, %v2112_v48, %v2113_v49  ;;  %v4068_v48 = vld [vmem:[%s4372_s19 + $0xa8] sm:$0xf] }
 0x192   : > { %2164 = vrot.lane.b32.xlu1 %v2076_v50, %s4324_s24  ;;  %v3979_v50 = vld [vmem:[%s4372_s19 + $0xb8] sm:$0xf] }
 0x193   : > { %2162 = vrot.lane.b32.xlu0 %v2072_v53, %s4324_s24  ;;  %2160 = vrot.lane.b32.xlu2 %v2069_v57, %s4324_s24  ;;  %v3996_v53 = vrot.slane %v3972_v44, 9  ;;  %v2124_v57 = vrot.slane %v3979_v50, 5  ;;  %v4012_v44 = vld [vmem:[%s4372_s19 + $0x60] sm:$0xf]  ;;  %v4057_v50 = vld [vmem:[%s4372_s19 + $0x7c] sm:$0xf] }
 0x194   : > { %v1808_v61 = vpop.permute.xlu1 %1807  ;;  %v2712_v59 = vshll.u32 %v4057_v50, 16  ;;  %v2716_v60 = vshrl.u32 %v4057_v50, 16  ;;  %v4045_v50 = vld [vmem:[%s4372_s19 + $0x4c] sm:$0xf] }
 0x195   : > { %1900 = vst.msk [vmem:[#allocation2 + $0x10] sm:$0xf] %vm1895_vm10, %v1808_v61  ;;  %v1806_v63 = vpop.permute.xlu0 %1805  ;;  %v1822_v2 = vpop.permute.xlu2 %1821  ;;  %v2111_v61 = vsel %vm4558_vm6, %v3996_v53, %v2110_v41  ;;  %v2125_v8 = vsel %vm4558_vm6, %v3998_v0, %v2124_v57  ;;  %v4056_v53 = vld [vmem:[%s4372_s19 + $0x78] sm:$0xf] }
 0x196   : > { %1899 = vst.msk [vmem:[#allocation2 + $0xc] sm:$0xf] %vm1895_vm10, %v1806_v63  ;;  %v2126_v63 = vrot.slane %v2124_v57, 4  ;;  %v2802_v57 = vshll.u32 %v4068_v48, 16  ;;  %v2703_v62 = vshrl.u32 %v4056_v53, 16 }
 0x197   : > { %1907 = vst.msk [vmem:[#allocation2 + $0x2c] sm:$0xf] %vm1895_vm10, %v1822_v2 }
 0x198   : > { %v2128_v7 = vsel %vm4558_vm6, %v2126_v63, %v2127_v52  ;;  %v2706_v63 = vshll.u32 %v4056_v53, 16 }
 0x19a   : > { %2170 = vrot.lane.b32.xlu1 %v2086_v3, %s4324_s24  ;;  %v3982_v3 = vld [vmem:[%s4372_s19 + $0xc4] sm:$0xf] }
 0x19b   : > { %2168 = vrot.lane.b32.xlu0 %v2083_v4, %s4324_s24  ;;  %2166 = vrot.lane.b32.xlu2 %v2079_v9, %s4324_s24  ;;  %v2119_v4 = vrot.slane %v2117_v46, 4  ;;  %v2131_v9 = vrot.slane %v3982_v3, 5  ;;  %v4010_v46 = vld [vmem:[%s4372_s19 + $0x54] sm:$0xf]  ;;  %v2714_v3 = vrot.slane %v2712_v59, 5 }
 0x19c   : > { %v1814_v13 = vpop.permute.xlu1 %1813 }
 0x19d   : > { %1903 = vst.msk [vmem:[#allocation2 + $0x1c] sm:$0xf] %vm1895_vm10, %v1814_v13  ;;  %v1812_v17 = vpop.permute.xlu0 %1811  ;;  %v1828_v19 = vpop.permute.xlu2 %1827  ;;  %v2121_v11 = vsel %vm4558_vm6, %v2119_v4, %v2120_v5  ;;  %v2133_v14 = vrot.slane %v2131_v9, 4  ;;  %v2718_v4 = vrot.slane %v2716_v60, 4 }
 0x19e   : > { %1902 = vst.msk [vmem:[#allocation2 + $0x18] sm:$0xf] %vm1895_vm10, %v1812_v17  ;;  %v3999_v17 = vrot.slane %v3981_v12, 9 }
 0x19f   : > { %1910 = vst.msk [vmem:[#allocation2 + $0x38] sm:$0xf] %vm1895_vm10, %v1828_v19  ;;  %v4000_v19 = vld [vmem:[%s4372_s19 + $0x18] sm:$0xf] }
 0x1a0   : > { %v2132_v21 = vsel %vm4558_vm6, %v3999_v17, %v2131_v9  ;;  %v4017_v17 = vld [vmem:[%s4372_s19 + $0x7c] sm:$0xf] }
 0x1a2   : > { %2176 = vrot.lane.b32.xlu1 %v2097_v20, %s4324_s24  ;;  %v2135_v20 = vsel %vm4558_vm6, %v2133_v14, %v2134_v15  ;;  %v2719_v14 = vor.u32 %v2718_v4, %v2714_v3 }
 0x1a3   : > { %2174 = vrot.lane.b32.xlu0 %v2093_v22, %s4324_s24  ;;  %2172 = vrot.lane.b32.xlu2 %v2090_v26, %s4324_s24  ;;  %v4003_v26 = vld [vmem:[%s4372_s19 + $0x28] sm:$0xf] }
 0x1a4   : > { %v1820_v31 = vpop.permute.xlu1 %1819 }
 0x1a5   : > { %1906 = vst.msk [vmem:[#allocation2 + $0x28] sm:$0xf] %vm1895_vm10, %v1820_v31  ;;  %v1818_v34 = vpop.permute.xlu0 %1817  ;;  %v1834_v35 = vpop.permute.xlu2 %1833 }
 0x1a6   : > { %1905 = vst.msk [vmem:[#allocation2 + $0x24] sm:$0xf] %vm1895_vm10, %v1818_v34  ;;  %v4006_v34 = vld [vmem:[%s4372_s19 + $0x3c] sm:$0xf] }
 0x1a7   : > { %1913 = vst.msk [vmem:[#allocation2 + $0x44] sm:$0xf] %vm1895_vm10, %v1834_v35 }
 0x1aa   : > { %2182 = vrot.lane.b32.xlu1 %v2107_v30, %s4324_s24 }
 0x1ab   : > { %2180 = vrot.lane.b32.xlu0 %v2104_v38, %s4324_s24  ;;  %2178 = vrot.lane.b32.xlu2 %v2100_v43, %s4324_s24  ;;  %v4009_v38 = vld [vmem:[%s4372_s19 + $0x4c] sm:$0xf] }
 0x1ac   : > { %v1826_v47 = vpop.permute.xlu1 %1825 }
 0x1ad   : > { %1909 = vst.msk [vmem:[#allocation2 + $0x34] sm:$0xf] %vm1895_vm10, %v1826_v47  ;;  %v1824_v51 = vpop.permute.xlu0 %1823  ;;  %v1840_v54 = vpop.permute.xlu2 %1839 }
 0x1ae   : > { %1908 = vst.msk [vmem:[#allocation2 + $0x30] sm:$0xf] %vm1895_vm10, %v1824_v51 }
 0x1af   : > { %1916 = vst.msk [vmem:[#allocation2 + $0x50] sm:$0xf] %vm1895_vm10, %v1840_v54  ;;  %v4016_v54 = vld [vmem:[%s4372_s19 + $0x78] sm:$0xf] }
 0x1b2   : > { %2188 = vrot.lane.b32.xlu1 %v2118_v56, %s4324_s24  ;;  %v2799_v56 = vshrl.u32 %v4068_v48, 16  ;;  %v4033_v48 = vld [vmem:[%s4372_s19 + $0x1c] sm:$0xf] }
 0x1b3   : > { %2186 = vrot.lane.b32.xlu0 %v2114_v58, %s4324_s24  ;;  %2184 = vrot.lane.b32.xlu2 %v2111_v61, %s4324_s24  ;;  %v4014_v58 = vld [vmem:[%s4372_s19 + $0x6c] sm:$0xf]  ;;  %v4013_v61 = vld [vmem:[%s4372_s19 + $0x64] sm:$0xf]  ;;  %v2520_v60 = vshll.u32 %v4033_v48, 16 }
 0x1b4   : > { %v1832_v55 = vpop.permute.xlu1 %1831  ;;  %v2801_v52 = vrot.slane %v2799_v56, 4  ;;  %v4044_v56 = vld [vmem:[%s4372_s19 + $0x48] sm:$0xf] }
 0x1b5   : > { %1912 = vst.msk [vmem:[#allocation2 + $0x40] sm:$0xf] %vm1895_vm10, %v1832_v55  ;;  %v1830_v2 = vpop.permute.xlu0 %1829  ;;  %v1846_v6 = vpop.permute.xlu2 %1845  ;;  %v2804_v55 = vrot.slane %v2802_v57, 5 }
 0x1b6   : > { %1911 = vst.msk [vmem:[#allocation2 + $0x3c] sm:$0xf] %vm1895_vm10, %v1830_v2  ;;  %v4069_v2 = vld [vmem:[%s4372_s19 + $0xac] sm:$0xf] }
 0x1b7   : > { %1919 = vst.msk [vmem:[#allocation2 + $0x5c] sm:$0xf] %vm1895_vm10, %v1846_v6  ;;  %v4058_v6 = vld [vmem:[%s4372_s19 + $0x80] sm:$0x1]  ;;  %v2808_v12 = vshll.u32 %v4069_v2, 16 }
 0x1b8   : > { %v2722_v15 = vshll.u32 %v4058_v6, 16 }
 0x1ba   : > { %2194 = vrot.lane.b32.xlu1 %v2128_v7, %s4324_s24  ;;  %v2705_v7 = vrot.slane %v2703_v62, 4  ;;  %v2620_v62 = vshrl.u32 %v4045_v50, 16 }
 0x1bb   : > { %2192 = vrot.lane.b32.xlu0 %v2125_v8, %s4324_s24  ;;  %2190 = vrot.lane.b32.xlu2 %v2121_v11, %s4324_s24  ;;  %v2708_v8 = vrot.slane %v2706_v63, 5  ;;  %v2805_v11 = vor.u32 %v2804_v55, %v2801_v52  ;;  %v2607_v55 = vshrl.u32 %v4044_v56, 16 }
 0x1bc   : > { %v1838_v13 = vpop.permute.xlu1 %1837 }
 0x1bd   : > { %1915 = vst.msk [vmem:[#allocation2 + $0x4c] sm:$0xf] %vm1895_vm10, %v1838_v13  ;;  %v1836_v16 = vpop.permute.xlu0 %1835  ;;  %v1852_v18 = vpop.permute.xlu2 %1851  ;;  %v4024_v13 = vld [vmem:[%s4372_s19 + $0xa8] sm:$0xf] }
 0x1be   : > { %1914 = vst.msk [vmem:[#allocation2 + $0x48] sm:$0xf] %vm1895_vm10, %v1836_v16  ;;  %v2812_v16 = vshrl.u32 %v4069_v2, 16  ;;  %v2524_v2 = vshrl.u32 %v4033_v48, 16 }
 0x1bf   : > { %1922 = vst.msk [vmem:[#allocation2 + $0x68] sm:$0xf] %vm1895_vm10, %v1852_v18  ;;  %v2709_v18 = vor.u32 %v2708_v8, %v2705_v7  ;;  %v2522_v7 = vrot.slane %v2520_v60, 5 }
 0x1c2   : > { %2333 = vrot.lane.b32.xlu1 %v4000_v19, %s4325_s25  ;;  %v2806_v19 = vrot.slane %v2805_v11, 4 }
 0x1c3   : > { %2198 = vrot.lane.b32.xlu0 %v2135_v20, %s4324_s24  ;;  %2196 = vrot.lane.b32.xlu2 %v2132_v21, %s4324_s24  ;;  %v2810_v20 = vrot.slane %v2808_v12, 5  ;;  %v4105_v21 = vld [vmem:[%s4372_s19 + $0x7c] sm:$0xf] }
 0x1c4   : > { %v1844_v22 = vpop.permute.xlu1 %1843 }
 0x1c5   : > { %1918 = vst.msk [vmem:[#allocation2 + $0x58] sm:$0xf] %vm1895_vm10, %v1844_v22  ;;  %v1842_v23 = vpop.permute.xlu0 %1841  ;;  %v1858_v24 = vpop.permute.xlu2 %1857 }
 0x1c6   : > { %1917 = vst.msk [vmem:[#allocation2 + $0x54] sm:$0xf] %vm1895_vm10, %v1842_v23  ;;  %v2720_v23 = vrot.slane %v2719_v14, 4  ;;  %v2609_v14 = vrot.slane %v2607_v55, 4 }
 0x1c7   : > { %1925 = vst.msk [vmem:[#allocation2 + $0x74] sm:$0xf] %vm1895_vm10, %v1858_v24  ;;  %v2724_v24 = vrot.slane %v2722_v15, 5 }
 0x1ca   : > { %2339 = vrot.lane.b32.xlu1 %v4003_v26, %s4325_s25  ;;  %v4032_v26 = vld [vmem:[%s4372_s19 + $0x18] sm:$0xf] }
 0x1cb   : > { %2337 = vrot.lane.b32.xlu0 %v4002_v27, %s4325_s25  ;;  %2335 = vrot.lane.b32.xlu2 %v4001_v28, %s4325_s25  ;;  %v2710_v28 = vrot.slane %v2709_v18, 4  ;;  %v2526_v18 = vrot.slane %v2524_v2, 4  ;;  %v4060_v2 = vld [vmem:[%s4372_s19 + $0x88] sm:$0xf] }
 0x1cc   : > { %v1850_v29 = vpop.permute.xlu1 %1849 }
 0x1cd   : > { %1921 = vst.msk [vmem:[#allocation2 + $0x64] sm:$0xf] %vm1895_vm10, %v1850_v29  ;;  %v1848_v31 = vpop.permute.xlu0 %1847  ;;  %v2137_v32 = vpop.permute.xlu2 %2136  ;;  %v2814_v29 = vrot.slane %v2812_v16, 4 }
 0x1ce   : > { %1920 = vst.msk [vmem:[#allocation2 + $0x60] sm:$0xf] %vm1895_vm10, %v1848_v31  ;;  %v3177_v31 = vrot.slane %v4105_v21, 5 }
 0x1cf   : > { %2233 = vst.msk [vmem:[#allocation2] sm:$0xf] %vm2232_vm11, %v2137_v32 }
 0x1d2   : > { %2345 = vrot.lane.b32.xlu1 %v4006_v34, %s4325_s25  ;;  %v4070_v34 = vld [vmem:[%s4372_s19 + $0xb0] sm:$0x1] }
 0x1d3   : > { %2343 = vrot.lane.b32.xlu0 %v4005_v36, %s4325_s25  ;;  %2341 = vrot.lane.b32.xlu2 %v4004_v33, %s4325_s25  ;;  %v2811_v36 = vsel %vm4383_vm2, %v2806_v19, %v2810_v20  ;;  %v4106_v33 = vld [vmem:[%s4372_s19 + $0x80] sm:$0x1] }
 0x1d4   : > { %v1856_v37 = vpop.permute.xlu1 %1855 }
 0x1d5   : > { %1924 = vst.msk [vmem:[#allocation2 + $0x70] sm:$0xf] %vm1895_vm10, %v1856_v37  ;;  %v1854_v35 = vpop.permute.xlu0 %1853  ;;  %v2143_v30 = vpop.permute.xlu2 %2142  ;;  %v2511_v37 = vshrl.u32 %v4032_v26, 16 }
 0x1d6   : > { %1923 = vst.msk [vmem:[#allocation2 + $0x6c] sm:$0xf] %vm1895_vm10, %v1854_v35  ;;  %v2514_v35 = vshll.u32 %v4032_v26, 16 }
 0x1d7   : > { %2236 = vst.msk [vmem:[#allocation2 + $0xc] sm:$0xf] %vm2232_vm11, %v2143_v30  ;;  %v2725_v30 = vsel %vm4383_vm2, %v2720_v23, %v2724_v24 }
 0x1da   : > { %2351 = vrot.lane.b32.xlu1 %v4009_v38, %s4325_s25  ;;  %v4104_v38 = vld [vmem:[%s4372_s19 + $0x78] sm:$0xe] }
 0x1db   : > { %2349 = vrot.lane.b32.xlu0 %v4008_v39, %s4325_s25  ;;  %2347 = vrot.lane.b32.xlu2 %v4007_v40, %s4325_s25  ;;  %v2715_v39 = vsel %vm4383_vm2, %v2710_v28, %v2714_v3  ;;  %v2815_v40 = vor.u32 %v2814_v29, %v2810_v20  ;;  %v4118_v3 = vld [vmem:[%s4372_s19 + $0xb0] sm:$0x1]  ;;  %v4034_v20 = vld [vmem:[%s4372_s19 + $0x20] sm:$0x1]  ;;  %v2527_v28 = vor.u32 %v2526_v18, %v2522_v7 }
 0x1dc   : > { %v1862_v41 = vpop.permute.xlu1 %1861  ;;  %v3208_v12 = vrot.slane %v4118_v3, 5  ;;  %v2530_v29 = vshll.u32 %v4034_v20, 16  ;;  %v4072_v3 = vld [vmem:[%s4372_s19 + $0xb8] sm:$0xf] }
 0x1dd   : > { %1927 = vst.msk [vmem:[#allocation2 + $0x7c] sm:$0xf] %vm1895_vm10, %v1862_v41  ;;  %v1860_v42 = vpop.permute.xlu0 %1859  ;;  %v2149_v43 = vpop.permute.xlu2 %2148  ;;  %v2818_v41 = vshll.u32 %v4070_v34, 16  ;;  %v2816_v53 = vrot.slane %v2815_v40, 4 }
 0x1de   : > { %1926 = vst.msk [vmem:[#allocation2 + $0x78] sm:$0xf] %vm1895_vm10, %v1860_v42  ;;  %v3179_v42 = vrot.slane %v3177_v31, 4 }
 0x1df   : > { %2239 = vst.msk [vmem:[#allocation2 + $0x18] sm:$0xf] %vm2232_vm11, %v2149_v43  ;;  %v3180_v43 = vrot.slane %v4106_v33, 5 }
 0x1e1   : > { %v3181_v57 = vsel %vm4558_vm6, %v3179_v42, %v3180_v43  ;;  %v4093_v42 = vld [vmem:[%s4372_s19 + $0x4c] sm:$0xf] }
 0x1e2   : > { %2357 = vrot.lane.b32.xlu1 %v4012_v44, %s4325_s25  ;;  %v4136_v44 = vrot.slane %v4104_v38, 9  ;;  %v3149_v48 = vrot.slane %v4093_v42, 5 }
 0x1e3   : > { %2355 = vrot.lane.b32.xlu0 %v4011_v45, %s4325_s25  ;;  %2353 = vrot.lane.b32.xlu2 %v4010_v46, %s4325_s25  ;;  %v2513_v45 = vrot.slane %v2511_v37, 4  ;;  %v2516_v46 = vrot.slane %v2514_v35, 5  ;;  %v4081_v37 = vld [vmem:[%s4372_s19 + $0x1c] sm:$0xf]  ;;  %v2528_v35 = vrot.slane %v2527_v28, 4 }
 0x1e4   : > { %v2141_v47 = vpop.permute.xlu1 %2140  ;;  %v3178_v63 = vsel %vm4558_vm6, %v4136_v44, %v3177_v31  ;;  %v3121_v43 = vrot.slane %v4081_v37, 5  ;;  %v4082_v44 = vld [vmem:[%s4372_s19 + $0x20] sm:$0x1]  ;;  %v4027_v37 = vld [vmem:[%s4372_s19 + $0xb8] sm:$0xf] }
 0x1e5   : > { %2235 = vst.msk [vmem:[#allocation2 + $0x8] sm:$0xf] %vm2232_vm11, %v2141_v47  ;;  %v2139_v49 = vpop.permute.xlu0 %2138  ;;  %v2155_v51 = vpop.permute.xlu2 %2154  ;;  %v2517_v59 = vor.u32 %v2516_v46, %v2513_v45  ;;  %v4080_v46 = vld [vmem:[%s4372_s19 + $0x18] sm:$0xe] }
 0x1e6   : > { %2234 = vst.msk [vmem:[#allocation2 + $0x4] sm:$0xf] %vm2232_vm11, %v2139_v49  ;;  %v4117_v49 = vld [vmem:[%s4372_s19 + $0xac] sm:$0xf] }
 0x1e7   : > { %2242 = vst.msk [vmem:[#allocation2 + $0x24] sm:$0xf] %vm2232_vm11, %v2155_v51  ;;  %v3205_v52 = vrot.slane %v4117_v49, 5  ;;  %v2518_v6 = vrot.slane %v2517_v59, 4 }
 0x1e9   : > { %v3207_v11 = vrot.slane %v3205_v52, 4  ;;  %v2523_v21 = vsel %vm4383_vm2, %v2518_v6, %v2522_v7  ;;  %v4071_v7 = vld [vmem:[%s4372_s19 + $0xb4] sm:$0xf] }
 0x1ea   : > { %2365 = vrot.lane.b32.xlu1 %v4016_v54, %s4325_s25  ;;  %v2820_v54 = vrot.slane %v2818_v41, 5  ;;  %v4092_v41 = vld [vmem:[%s4372_s19 + $0x48] sm:$0xe] }
 0x1eb   : > { %2361 = vrot.lane.b32.xlu0 %v4014_v58, %s4325_s25  ;;  %2359 = vrot.lane.b32.xlu2 %v4013_v61, %s4325_s25  ;;  %v2616_v61 = vshll.u32 %v4045_v50, 16  ;;  %v3209_v24 = vsel %vm4558_vm6, %v3207_v11, %v3208_v12  ;;  %v3123_v50 = vrot.slane %v3121_v43, 4  ;;  %v2736_v11 = vshll.u32 %v4060_v2, 16 }
 0x1ec   : > { %v2147_v0 = vpop.permute.xlu1 %2146  ;;  %v2821_v4 = vsel %vm4383_vm2, %v2816_v53, %v2820_v54  ;;  %v4059_v53 = vld [vmem:[%s4372_s19 + $0x84] sm:$0xf]  ;;  %v2832_v12 = vshll.u32 %v4072_v3, 16 }
 0x1ed   : > { %2238 = vst.msk [vmem:[#allocation2 + $0x14] sm:$0xf] %vm2232_vm11, %v2147_v0  ;;  %v2145_v5 = vpop.permute.xlu0 %2144  ;;  %v2161_v9 = vpop.permute.xlu2 %2160  ;;  %v2610_v0 = vshll.u32 %v4044_v56, 16  ;;  %v2618_v8 = vrot.slane %v2616_v61, 5  ;;  %v4128_v56 = vrot.slane %v4080_v46, 9  ;;  %v2727_v59 = vshrl.u32 %v4059_v53, 16 }
 0x1ee   : > { %2237 = vst.msk [vmem:[#allocation2 + $0x10] sm:$0xf] %vm2232_vm11, %v2145_v5  ;;  %v4116_v5 = vld [vmem:[%s4372_s19 + $0xa8] sm:$0xe]  ;;  %v2730_v60 = vshll.u32 %v4059_v53, 16  ;;  %v2738_v20 = vrot.slane %v2736_v11, 5 }
 0x1ef   : > { %2245 = vst.msk [vmem:[#allocation2 + $0x30] sm:$0xf] %vm2232_vm11, %v2161_v9  ;;  %v2622_v9 = vrot.slane %v2620_v62, 4  ;;  %v2612_v15 = vrot.slane %v2610_v0, 5  ;;  %v3122_v62 = vsel %vm4558_vm6, %v4128_v56, %v3121_v43  ;;  %v4119_v53 = vld [vmem:[%s4372_s19 + $0xb4] sm:$0xe] }
 0x1f0   : > { %v2732_v55 = vrot.slane %v2730_v60, 5 }
 0x1f1   : > { %v2613_v26 = vor.u32 %v2612_v15, %v2609_v14  ;;  %v4018_v14 = vld [vmem:[%s4372_s19 + $0x84] sm:$0xf]  ;;  %v2823_v15 = vshrl.u32 %v4071_v7, 16 }
 0x1f2   : > { %2383 = vrot.lane.b32.xlu1 %v4025_v10, %s4325_s25 }
 0x1f3   : > { %2381 = vrot.lane.b32.xlu0 %v4024_v13, %s4325_s25  ;;  %2367 = vrot.lane.b32.xlu2 %v4017_v17, %s4325_s25  ;;  %v4046_v13 = vld [vmem:[%s4372_s19 + $0x50] sm:$0x1]  ;;  %v4140_v17 = vrot.slane %v4116_v5, 9  ;;  %v3151_v5 = vrot.slane %v3149_v48, 4 }
 0x1f4   : > { %v2153_v22 = vpop.permute.xlu1 %2152  ;;  %v2626_v23 = vshll.u32 %v4046_v13, 16  ;;  %v2836_v13 = vshrl.u32 %v4072_v3, 16 }
 0x1f5   : > { %2241 = vst.msk [vmem:[#allocation2 + $0x20] sm:$0xf] %vm2232_vm11, %v2153_v22  ;;  %v2151_v27 = vpop.permute.xlu0 %2150  ;;  %v2167_v32 = vpop.permute.xlu2 %2166  ;;  %v2623_v22 = vor.u32 %v2622_v9, %v2618_v8 }
 0x1f6   : > { %2240 = vst.msk [vmem:[#allocation2 + $0x1c] sm:$0xf] %vm2232_vm11, %v2151_v27  ;;  %v3206_v27 = vsel %vm4558_vm6, %v4140_v17, %v3205_v52  ;;  %v2729_v52 = vrot.slane %v2727_v59, 4  ;;  %v2740_v17 = vshrl.u32 %v4060_v2, 16 }
 0x1f7   : > { %2248 = vst.msk [vmem:[#allocation2 + $0x3c] sm:$0xf] %vm2232_vm11, %v2167_v32  ;;  %v2624_v31 = vrot.slane %v2623_v22, 4  ;;  %v2628_v32 = vrot.slane %v2626_v23, 5  ;;  %v2838_v22 = vrot.slane %v2836_v13, 4 }
 0x1fa   : > { %2942 = vrot.lane.b32.xlu1 %v2811_v36, %s4326_s26  ;;  %v2614_v36 = vrot.slane %v2613_v26, 4  ;;  %v2825_v26 = vrot.slane %v2823_v15, 4 }
 0x1fb   : > { %2928 = vrot.lane.b32.xlu0 %v2725_v30, %s4326_s26  ;;  %2926 = vrot.lane.b32.xlu2 %v2715_v39, %s4326_s26  ;;  %v2532_v30 = vrot.slane %v2530_v29, 5  ;;  %v2629_v39 = vsel %vm4383_vm2, %v2624_v31, %v2628_v32  ;;  %v2742_v29 = vrot.slane %v2740_v17, 4  ;;  %v4061_v32 = vld [vmem:[%s4372_s19 + $0x8c] sm:$0x1] }
 0x1fc   : > { %v2159_v47 = vpop.permute.xlu1 %2158  ;;  %v2619_v40 = vsel %vm4383_vm2, %v2614_v36, %v2618_v8  ;;  %v4019_v8 = vld [vmem:[%s4372_s19 + $0x88] sm:$0xf] }
 0x1fd   : > { %2244 = vst.msk [vmem:[#allocation2 + $0x2c] sm:$0xf] %vm2232_vm11, %v2159_v47  ;;  %v2157_v51 = vpop.permute.xlu0 %2156  ;;  %v2173_v58 = vpop.permute.xlu2 %2172  ;;  %v2533_v45 = vsel %vm4383_vm2, %v2528_v35, %v2532_v30  ;;  %v4132_v47 = vrot.slane %v4092_v41, 9  ;;  %v4026_v30 = vld [vmem:[%s4372_s19 + $0xb4] sm:$0xf] }
 0x1fe   : > { %2243 = vst.msk [vmem:[#allocation2 + $0x28] sm:$0xf] %vm2232_vm11, %v2157_v51  ;;  %v3124_v51 = vrot.slane %v4082_v44, 5  ;;  %v4108_v44 = vld [vmem:[%s4372_s19 + $0x88] sm:$0xf] }
 0x1ff   : > { %2251 = vst.msk [vmem:[#allocation2 + $0x48] sm:$0xf] %vm2232_vm11, %v2173_v58  ;;  %v3150_v58 = vsel %vm4558_vm6, %v4132_v47, %v3149_v48  ;;  %v3184_v59 = vrot.slane %v4108_v44, 5 }
 0x200   : > { %v3125_v61 = vsel %vm4558_vm6, %v3123_v50, %v3124_v51 }
 0x202   : > { %3265 = vrot.lane.b32.xlu1 %v3181_v57, %s4327_s27 }
 0x203   : > { %3263 = vrot.lane.b32.xlu0 %v3178_v63, %s4327_s27  ;;  %2944 = vrot.lane.b32.xlu2 %v2821_v4, %s4326_s26  ;;  %v4094_v63 = vld [vmem:[%s4372_s19 + $0x50] sm:$0x1] }
 0x204   : > { %v2165_v10 = vpop.permute.xlu1 %2164  ;;  %v3152_v6 = vrot.slane %v4094_v63, 5 }
 0x205   : > { %2247 = vst.msk [vmem:[#allocation2 + $0x38] sm:$0xf] %vm2232_vm11, %v2165_v10  ;;  %v2163_v16 = vpop.permute.xlu0 %2162  ;;  %v2179_v19 = vpop.permute.xlu2 %2178  ;;  %v2733_v10 = vor.u32 %v2732_v55, %v2729_v52  ;;  %v4107_v52 = vld [vmem:[%s4372_s19 + $0x84] sm:$0xe]  ;;  %v4141_v55 = vrot.slane %v4119_v53, 9 }
 0x206   : > { %2246 = vst.msk [vmem:[#allocation2 + $0x34] sm:$0xf] %vm2232_vm11, %v2163_v16  ;;  %v2826_v16 = vshll.u32 %v4071_v7, 16  ;;  %v3153_v18 = vsel %vm4558_vm6, %v3151_v5, %v3152_v6  ;;  %v3186_v5 = vrot.slane %v3184_v59, 4  ;;  %v4037_v7 = vld [vmem:[%s4372_s19 + $0x2c] sm:$0x1] }
 0x207   : > { %2254 = vst.msk [vmem:[#allocation2 + $0x54] sm:$0xf] %vm2232_vm11, %v2179_v19  ;;  %v2734_v19 = vrot.slane %v2733_v10, 4  ;;  %v4137_v11 = vrot.slane %v4107_v52, 9  ;;  %v2554_v17 = vshll.u32 %v4037_v7, 16 }
 0x20a   : > { %2894 = vrot.lane.b32.xlu1 %v2523_v21, %s4326_s26  ;;  %v2834_v21 = vrot.slane %v2832_v12, 5  ;;  %v4048_v12 = vld [vmem:[%s4372_s19 + $0x58] sm:$0xf] }
 0x20b   : > { %3281 = vrot.lane.b32.xlu0 %v3209_v24, %s4327_s27  ;;  %3279 = vrot.lane.b32.xlu2 %v3206_v27, %s4327_s27  ;;  %v4073_v24 = vld [vmem:[%s4372_s19 + $0xbc] sm:$0x1]  ;;  %v2828_v27 = vrot.slane %v2826_v16, 5 }
 0x20c   : > { %v2171_v34 = vpop.permute.xlu1 %2170  ;;  %v2839_v36 = vor.u32 %v2838_v22, %v2834_v21  ;;  %v3185_v22 = vsel %vm4558_vm6, %v4137_v11, %v3184_v59 }
 0x20d   : > { %2250 = vst.msk [vmem:[#allocation2 + $0x44] sm:$0xf] %vm2232_vm11, %v2171_v34  ;;  %v2169_v33 = vpop.permute.xlu0 %2168  ;;  %v2185_v38 = vpop.permute.xlu2 %2184  ;;  %v2739_v34 = vsel %vm4383_vm2, %v2734_v19, %v2738_v20  ;;  %v2829_v35 = vor.u32 %v2828_v27, %v2825_v26  ;;  %v4121_v26 = vld [vmem:[%s4372_s19 + $0xbc] sm:$0x1] }
 0x20e   : > { %2249 = vst.msk [vmem:[#allocation2 + $0x40] sm:$0xf] %vm2232_vm11, %v2169_v33  ;;  %v2842_v33 = vshll.u32 %v4073_v24, 16 }
 0x20f   : > { %2257 = vst.msk [vmem:[#allocation2 + $0x60] sm:$0xf] %vm2232_vm11, %v2185_v38  ;;  %v2743_v38 = vor.u32 %v2742_v29, %v2738_v20  ;;  %v2830_v43 = vrot.slane %v2829_v35, 4  ;;  %v2640_v20 = vshll.u32 %v4048_v12, 16  ;;  %v3215_v35 = vrot.slane %v4121_v26, 5 }
 0x210   : > { %v2844_v41 = vrot.slane %v2842_v33, 5 }
 0x211   : > { %v2744_v47 = vrot.slane %v2743_v38, 4 }
 0x212   : > { %2912 = vrot.lane.b32.xlu1 %v2629_v39, %s4326_s26  ;;  %v2746_v39 = vshll.u32 %v4061_v32, 16  ;;  %v4049_v32 = vld [vmem:[%s4372_s19 + $0x5c] sm:$0x1] }
 0x213   : > { %2910 = vrot.lane.b32.xlu0 %v2619_v40, %s4326_s26  ;;  %2896 = vrot.lane.b32.xlu2 %v2533_v45, %s4326_s26  ;;  %v2840_v40 = vrot.slane %v2839_v36, 4  ;;  %v4036_v45 = vld [vmem:[%s4372_s19 + $0x28] sm:$0xf] }
 0x214   : > { %v2177_v49 = vpop.permute.xlu1 %2176  ;;  %v2748_v48 = vrot.slane %v2746_v39, 5  ;;  %v2548_v56 = vshrl.u32 %v4036_v45, 16 }
 0x215   : > { %2253 = vst.msk [vmem:[#allocation2 + $0x50] sm:$0xf] %vm2232_vm11, %v2177_v49  ;;  %v2175_v54 = vpop.permute.xlu0 %2174  ;;  %v2191_v57 = vpop.permute.xlu2 %2190  ;;  %v4035_v49 = vld [vmem:[%s4372_s19 + $0x24] sm:$0xf]  ;;  %v2845_v51 = vsel %vm4383_vm2, %v2840_v40, %v2844_v41 }
 0x216   : > { %2252 = vst.msk [vmem:[#allocation2 + $0x4c] sm:$0xf] %vm2232_vm11, %v2175_v54  ;;  %v2544_v54 = vshll.u32 %v4036_v45, 16  ;;  %v2535_v60 = vshrl.u32 %v4035_v49, 16  ;;  %v2749_v63 = vsel %vm4383_vm2, %v2744_v47, %v2748_v48  ;;  %v2550_v3 = vrot.slane %v2548_v56, 4 }
 0x217   : > { %2260 = vst.msk [vmem:[#allocation2 + $0x6c] sm:$0xf] %vm2232_vm11, %v2191_v57  ;;  %v2835_v57 = vsel %vm4383_vm2, %v2830_v43, %v2834_v21  ;;  %v2644_v21 = vshrl.u32 %v4048_v12, 16  ;;  %v4084_v43 = vld [vmem:[%s4372_s19 + $0x28] sm:$0xf]  ;;  %v2650_v45 = vshll.u32 %v4049_v32, 16 }
 0x218   : > { %v2546_v2 = vrot.slane %v2544_v54, 5  ;;  %v4096_v54 = vld [vmem:[%s4372_s19 + $0x58] sm:$0xf] }
 0x219   : > { %v2646_v36 = vrot.slane %v2644_v21, 4  ;;  %v2652_v53 = vrot.slane %v2650_v45, 5 }
 0x21a   : > { %3247 = vrot.lane.b32.xlu1 %v3150_v58, %s4327_s27  ;;  %v4120_v58 = vld [vmem:[%s4372_s19 + $0xb8] sm:$0xf]  ;;  %v2551_v16 = vor.u32 %v2550_v3, %v2546_v2 }
 0x21b   : > { %3233 = vrot.lane.b32.xlu0 %v3125_v61, %s4327_s27  ;;  %3231 = vrot.lane.b32.xlu2 %v3122_v62, %s4327_s27  ;;  %v2538_v61 = vshll.u32 %v4035_v49, 16  ;;  %v4109_v62 = vld [vmem:[%s4372_s19 + $0x8c] sm:$0x1]  ;;  %v3128_v49 = vrot.slane %v4084_v43, 5 }
 0x21c   : > { %v2183_v0 = vpop.permute.xlu1 %2182  ;;  %v3187_v6 = vrot.slane %v4109_v62, 5  ;;  %v2552_v27 = vrot.slane %v2551_v16, 4  ;;  %v4097_v62 = vld [vmem:[%s4372_s19 + $0x5c] sm:$0x1] }
 0x21d   : > { %2256 = vst.msk [vmem:[#allocation2 + $0x5c] sm:$0xf] %vm2232_vm11, %v2183_v0  ;;  %v2181_v4 = vpop.permute.xlu0 %2180  ;;  %v2197_v9 = vpop.permute.xlu2 %2196  ;;  %v3212_v0 = vrot.slane %v4120_v58, 5  ;;  %v3130_v7 = vrot.slane %v3128_v49, 4 }
 0x21e   : > { %2255 = vst.msk [vmem:[#allocation2 + $0x58] sm:$0xf] %vm2232_vm11, %v2181_v4 }
 0x21f   : > { %2263 = vst.msk [vmem:[#allocation2 + $0x78] sm:$0xf] %vm2232_vm11, %v2197_v9  ;;  %v2540_v9 = vrot.slane %v2538_v61, 5  ;;  %v3213_v15 = vsel %vm4558_vm6, %v4141_v55, %v3212_v0  ;;  %v4085_v55 = vld [vmem:[%s4372_s19 + $0x2c] sm:$0x1] }
 0x222   : > { %2371 = vrot.lane.b32.xlu1 %v4019_v8, %s4325_s25  ;;  %v2537_v8 = vrot.slane %v2535_v60, 4  ;;  %v3156_v60 = vrot.slane %v4096_v54, 5 }
 0x223   : > { %2369 = vrot.lane.b32.xlu0 %v4018_v14, %s4325_s25  ;;  %3249 = vrot.lane.b32.xlu2 %v3153_v18, %s4327_s27  ;;  %v4047_v14 = vld [vmem:[%s4372_s19 + $0x54] sm:$0xf]  ;;  %v3188_v18 = vsel %vm4558_vm6, %v3186_v5, %v3187_v6 }
 0x224   : > { %v2189_v23 = vpop.permute.xlu1 %2188  ;;  %v2541_v19 = vor.u32 %v2540_v9, %v2537_v8  ;;  %v2634_v24 = vshll.u32 %v4047_v14, 16  ;;  %v4063_v5 = vld [vmem:[%s4372_s19 + $0x94] sm:$0xf]  ;;  %v3131_v8 = vrot.slane %v4085_v55, 5  ;;  %v4062_v9 = vld [vmem:[%s4372_s19 + $0x90] sm:$0xf] }
 0x225   : > { %2259 = vst.msk [vmem:[#allocation2 + $0x68] sm:$0xf] %vm2232_vm11, %v2189_v23  ;;  %v2187_v28 = vpop.permute.xlu0 %2186  ;;  %v2336_v31 = vpop.permute.xlu2 %2335  ;;  %v2631_v23 = vshrl.u32 %v4047_v14, 16  ;;  %v2760_v12 = vshll.u32 %v4063_v5, 16  ;;  %v2754_v16 = vshll.u32 %v4062_v9, 16 }
 0x226   : > { %2258 = vst.msk [vmem:[#allocation2 + $0x64] sm:$0xf] %vm2232_vm11, %v2187_v28  ;;  %v2556_v28 = vrot.slane %v2554_v17, 5  ;;  %v2636_v38 = vrot.slane %v2634_v24, 5  ;;  %v3396_v17 = vld [vmem:[%s5910_s1 + $0x10] sm:$0x3] }
 0x227   : > { %2431 = vst.msk [vmem:[#allocation2 + $0x4] sm:$0xf] %vm2429_vm12, %v2336_v31  ;;  %v2542_v31 = vrot.slane %v2541_v19, 4  ;;  %v3490_v19 = vunpack.c.l.b16 %v3396_v17  ;;  %v4064_v24 = vld [vmem:[%s4372_s19 + $0x98] sm:$0x1] }
 0x228   : > { %v2557_v40 = vsel %vm4383_vm2, %v2552_v27, %v2556_v28  ;;  %v2756_v27 = vrot.slane %v2754_v16, 5 }
 0x229   : > { %v2547_v41 = vsel %vm4383_vm2, %v2542_v31, %v2546_v2  ;;  %v3159_v2 = vrot.slane %v4097_v62, 5 }
 0x22a   : > { %2930 = vrot.lane.b32.xlu1 %v2739_v34, %s4326_s26  ;;  %v2642_v34 = vrot.slane %v2640_v20, 5  ;;  %v5519_v20 = vrot.slane %v2760_v12, 5 }
 0x22b   : > { %2387 = vrot.lane.b32.xlu0 %v4027_v37, %s4325_s25  ;;  %2385 = vrot.lane.b32.xlu2 %v4026_v30, %s4325_s25  ;;  %v3214_v37 = vrot.slane %v3212_v0, 4  ;;  %v2633_v30 = vrot.slane %v2631_v23, 4  ;;  %v3158_v0 = vrot.slane %v3156_v60, 4 }
 0x22c   : > { %v2195_v42 = vpop.permute.xlu1 %2194  ;;  %v2647_v44 = vor.u32 %v2646_v36, %v2642_v34  ;;  %v4074_v36 = vld [vmem:[%s4372_s19 + $0xc0] sm:$0xf] }
 0x22d   : > { %2262 = vst.msk [vmem:[#allocation2 + $0x74] sm:$0xf] %vm2232_vm11, %v2195_v42  ;;  %v2193_v46 = vpop.permute.xlu0 %2192  ;;  %v2342_v50 = vpop.permute.xlu2 %2341  ;;  %v4083_v42 = vld [vmem:[%s4372_s19 + $0x24] sm:$0xe]  ;;  %v2637_v47 = vor.u32 %v2636_v38, %v2633_v30  ;;  %v3160_v11 = vsel %vm4558_vm6, %v3158_v0, %v3159_v2  ;;  %v4021_v30 = vld [vmem:[%s4372_s19 + $0x94] sm:$0xf] }
 0x22e   : > { %2261 = vst.msk [vmem:[#allocation2 + $0x70] sm:$0xf] %vm2232_vm11, %v2193_v46  ;;  %v3216_v46 = vsel %vm4558_vm6, %v3214_v37, %v3215_v35  ;;  %v4129_v48 = vrot.slane %v4083_v42, 9  ;;  %v2770_v35 = vshll.u32 %v4064_v24, 16  ;;  %v2847_v42 = vshrl.u32 %v4074_v36, 16 }
 0x22f   : > { %2434 = vst.msk [vmem:[#allocation2 + $0x10] sm:$0xf] %vm2429_vm12, %v2342_v50  ;;  %v2850_v43 = vshll.u32 %v4074_v36, 16  ;;  %v4112_v24 = vld [vmem:[%s4372_s19 + $0x98] sm:$0x1] }
 0x230   : > { %v3129_v59 = vsel %vm4558_vm6, %v4129_v48, %v3128_v49  ;;  %v2849_v54 = vrot.slane %v2847_v42, 4  ;;  %v4051_v36 = vld [vmem:[%s4372_s19 + $0x64] sm:$0xf] }
 0x232   : > { %2948 = vrot.lane.b32.xlu1 %v2845_v51, %s4326_s26  ;;  %v2648_v51 = vrot.slane %v2647_v44, 4  ;;  %v4251_v44 = vld [vmem:[%s5910_s1] sm:$0xff] }
 0x233   : > { %2946 = vrot.lane.b32.xlu0 %v2835_v57, %s4326_s26  ;;  %2932 = vrot.lane.b32.xlu2 %v2749_v63, %s4326_s26  ;;  %v2638_v57 = vrot.slane %v2637_v47, 4  ;;  %v4095_v63 = vld [vmem:[%s4372_s19 + $0x54] sm:$0xe] }
 0x234   : > { %v2334_v4 = vpop.permute.xlu1 %2333  ;;  %v2653_v61 = vsel %vm4383_vm2, %v2648_v51, %v2652_v53  ;;  %v4076_v53 = vld [vmem:[%s4372_s19 + $0xc8] sm:$0x1] }
 0x235   : > { %2430 = vst.msk [vmem:[#allocation2] sm:$0xf] %vm2429_vm12, %v2334_v4  ;;  %v2199_v10 = vpop.permute.xlu0 %2198  ;;  %v2348_v13 = vpop.permute.xlu2 %2347  ;;  %v2643_v52 = vsel %vm4383_vm2, %v2638_v57, %v2642_v34  ;;  %v4133_v4 = vrot.slane %v4095_v63, 9  ;;  %v4252_v34 = vld [vmem:[%s5910_s1 + $0x8] sm:$0xff]  ;;  %v2866_v63 = vshll.u32 %v4076_v53, 16 }
 0x236   : > { %2264 = vst.msk [vmem:[#allocation2 + $0x7c] sm:$0xf] %vm2232_vm11, %v2199_v10 }
 0x237   : > { %2437 = vst.msk [vmem:[#allocation2 + $0x1c] sm:$0xf] %vm2429_vm12, %v2348_v13  ;;  %v2764_v13 = vshrl.u32 %v4063_v5, 16  ;;  %v3157_v14 = vsel %vm4558_vm6, %v4133_v4, %v3156_v60  ;;  %v4110_v60 = vld [vmem:[%s4372_s19 + $0x90] sm:$0xe]  ;;  %v2868_v5 = vrot.slane %v2866_v63, 5 }
 0x238   : > { %v4138_v0 = vrot.slane %v4110_v60, 9 }
 0x239   : > { %v2766_v21 = vrot.slane %v2764_v13, 4 }
 0x23a   : > { %3283 = vrot.lane.b32.xlu1 %v3213_v15, %s4327_s27  ;;  %v2751_v15 = vshrl.u32 %v4062_v9, 16 }
 0x23b   : > { %3269 = vrot.lane.b32.xlu0 %v3188_v18, %s4327_s27  ;;  %3267 = vrot.lane.b32.xlu2 %v3185_v22, %s4327_s27  ;;  %v3132_v18 = vsel %vm4558_vm6, %v3130_v7, %v3131_v8  ;;  %v3493_v22 = vpack.c.b16 %v3490_v19, %v3490_v19  ;;  %v2767_v37 = vor.u32 %v2766_v21, %v5519_v20  ;;  %v4050_v7 = vld [vmem:[%s4372_s19 + $0x60] sm:$0xf] }
 0x23c   : > { %v2340_v29 = vpop.permute.xlu1 %2339  ;;  %v2753_v26 = vrot.slane %v2751_v15, 4  ;;  %v2655_v15 = vshrl.u32 %v4050_v7, 16  ;;  %v2658_v16 = vshll.u32 %v4050_v7, 16 }
 0x23d   : > { %2433 = vst.msk [vmem:[#allocation2 + $0xc] sm:$0xf] %vm2429_vm12, %v2340_v29  ;;  %v2338_v33 = vpop.permute.xlu0 %2337  ;;  %v2354_v39 = vpop.permute.xlu2 %2353  ;;  %v4075_v29 = vld [vmem:[%s4372_s19 + $0xc4] sm:$0xf]  ;;  %v3547_v31 = vsel %vm3545_vm13, %v3493_v22, 0  ;;  %v2768_v45 = vrot.slane %v2767_v37, 4 }
 0x23e   : > { %2432 = vst.msk [vmem:[#allocation2 + $0x8] sm:$0xf] %vm2429_vm12, %v2338_v33  ;;  %4254 = vmatpush.bf16.msra.mxu2 %v3547_v31  ;;  %4255 = vmatpush.bf16.msra.mxu3 %v3547_v31  ;;  %v4028_v33 = vld [vmem:[%s4372_s19 + $0xc0] sm:$0xf]  ;;  %v2757_v38 = vor.u32 %v2756_v27, %v2753_v26  ;;  %v4038_v22 = vld [vmem:[%s4372_s19 + $0x30] sm:$0xf] }
 0x23f   : > { %2440 = vst.msk [vmem:[#allocation2 + $0x28] sm:$0xf] %vm2429_vm12, %v2354_v39  ;;  %3554 = vmatpush.bf16.msra.mxu0 %v3547_v31  ;;  %4253 = vmatpush.bf16.msra.mxu1 %v3547_v31  ;;  %v2856_v39 = vshll.u32 %v4075_v29, 16  ;;  %v2559_v26 = vshrl.u32 %v4038_v22, 16  ;;  %v2562_v27 = vshll.u32 %v4038_v22, 16  ;;  %v2657_v31 = vrot.slane %v2655_v15, 4 }
 0x240   : > { %v2758_v48 = vrot.slane %v2757_v38, 4 }
 0x241   : > { %v5540_v49 = vrot.slane %v2856_v39, 5  ;;  %v3194_v39 = vrot.slane %v4112_v24, 5 }
 0x242   : > { %2900 = vrot.lane.b32.xlu1 %v2557_v40, %s4326_s26  ;;  %v2860_v40 = vshrl.u32 %v4075_v29, 16  ;;  %4257 = vmatpush.bf16.msra.mxu2 %v4252_v34 }
 0x243   : > { %2898 = vrot.lane.b32.xlu0 %v2547_v41, %s4326_s26  ;;  %3285 = vrot.lane.b32.xlu2 %v3216_v46, %s4327_s27  ;;  %v4020_v41 = vld [vmem:[%s4372_s19 + $0x90] sm:$0xf]  ;;  %v2772_v46 = vrot.slane %v2770_v35, 5 }
 0x244   : > { %v2346_v50 = vpop.permute.xlu1 %2345  ;;  %4258 = vmatpush.bf16.msra.mxu3 %v4252_v34  ;;  %3555 = vmatpush.bf16.msra.mxu0 %v4252_v34 }
 0x245   : > { %2436 = vst.msk [vmem:[#allocation2 + $0x18] sm:$0xf] %vm2429_vm12, %v2346_v50  ;;  %v2344_v56 = vpop.permute.xlu0 %2343  ;;  %v2360_v58 = vpop.permute.xlu2 %2359  ;;  %v2862_v50 = vrot.slane %v2860_v40, 4  ;;  %4256 = vmatpush.bf16.msra.mxu1 %v4252_v34  ;;  %v2561_v40 = vrot.slane %v2559_v26, 4 }
 0x246   : > { %2435 = vst.msk [vmem:[#allocation2 + $0x14] sm:$0xf] %vm2429_vm12, %v2344_v56  ;;  %v2852_v56 = vrot.slane %v2850_v43, 5  ;;  %4260 = vmatpush.bf16.msra.mxu2 %v4251_v44 }
 0x247   : > { %2443 = vst.msk [vmem:[#allocation2 + $0x34] sm:$0xf] %vm2429_vm12, %v2360_v58  ;;  %v2773_v58 = vsel %vm4383_vm2, %v2768_v45, %v2772_v46  ;;  %v2863_v62 = vor.u32 %v2862_v50, %v5540_v49  ;;  %v2664_v45 = vshll.u32 %v4051_v36, 16 }
 0x248   : > { %4261 = vmatpush.bf16.msra.mxu3 %v4251_v44  ;;  %3556 = vmatpush.bf16.msra.mxu0 %v4251_v44  ;;  %v2853_v55 = vor.u32 %v2852_v56, %v2849_v54 }
 0x249   : > { %4259 = vmatpush.bf16.msra.mxu1 %v4251_v44  ;;  %v2864_v4 = vrot.slane %v2863_v62, 4  ;;  %v2666_v54 = vrot.slane %v2664_v45, 5 }
 0x24a   : > { %3235 = vrot.lane.b32.xlu1 %v3129_v59, %s4327_s27  ;;  %v2763_v59 = vsel %vm4383_vm2, %v2758_v48, %v5519_v20  ;;  %v2854_v9 = vrot.slane %v2853_v55, 4 }
 0x24b   : > { %2916 = vrot.lane.b32.xlu0 %v2653_v61, %s4326_s26  ;;  %2914 = vrot.lane.b32.xlu2 %v2643_v52, %s4326_s26  ;;  %v4111_v61 = vld [vmem:[%s4372_s19 + $0x94] sm:$0xf]  ;;  %v4029_v52 = vld [vmem:[%s4372_s19 + $0xc4] sm:$0xf]  ;;  %v2869_v17 = vsel %vm4383_vm2, %v2864_v4, %v2868_v5 }
 0x24c   : > { %v2352_v3 = vpop.permute.xlu1 %2351  ;;  %v3191_v2 = vrot.slane %v4111_v61, 5  ;;  %v2859_v21 = vsel %vm4383_vm2, %v2854_v9, %v5540_v49  ;;  %v2668_v49 = vshrl.u32 %v4051_v36, 16  ;;  %v4086_v4 = vld [vmem:[%s4372_s19 + $0x30] sm:$0xe] }
 0x24d   : > { %2439 = vst.msk [vmem:[#allocation2 + $0x24] sm:$0xf] %vm2429_vm12, %v2352_v3  ;;  %v2350_v6 = vpop.permute.xlu0 %2349  ;;  %v2368_v10 = vpop.permute.xlu2 %2367 }
 0x24e   : > { %2438 = vst.msk [vmem:[#allocation2 + $0x20] sm:$0xf] %vm2429_vm12, %v2350_v6  ;;  %v4123_v6 = vld [vmem:[%s4372_s19 + $0xc4] sm:$0xf]  ;;  %v3192_v13 = vsel %vm4558_vm6, %v4138_v0, %v3191_v2  ;;  %v3193_v38 = vrot.slane %v3191_v2, 4  ;;  %v2670_v62 = vrot.slane %v2668_v49, 4 }
 0x24f   : > { %2447 = vst.msk [vmem:[#allocation2 + $0x44] sm:$0xf] %vm2429_vm12, %v2368_v10  ;;  %v4039_v10 = vld [vmem:[%s4372_s19 + $0x34] sm:$0xf] }
 0x250   : > { %v2568_v19 = vshll.u32 %v4039_v10, 16  ;;  %v2572_v20 = vshrl.u32 %v4039_v10, 16  ;;  %v3195_v50 = vsel %vm4558_vm6, %v3193_v38, %v3194_v39 }
 0x252   : > { %3253 = vrot.lane.b32.xlu1 %v3160_v11, %s4327_s27  ;;  %v4124_v11 = vld [vmem:[%s4372_s19 + $0xc8] sm:$0x1]  ;;  %v2570_v37 = vrot.slane %v2568_v19, 5  ;;  %v2574_v35 = vrot.slane %v2572_v20, 4 }
 0x253   : > { %3251 = vrot.lane.b32.xlu0 %v3157_v14, %s4327_s27  ;;  %3237 = vrot.lane.b32.xlu2 %v3132_v18, %s4327_s27  ;;  %v3219_v14 = vrot.slane %v4123_v6, 5  ;;  %v4122_v18 = vld [vmem:[%s4372_s19 + $0xc0] sm:$0xe]  ;;  %v2671_v6 = vor.u32 %v2670_v62, %v2666_v54 }
 0x254   : > { %v2358_v23 = vpop.permute.xlu1 %2357  ;;  %v4142_v29 = vrot.slane %v4122_v18, 9 }
 0x255   : > { %2442 = vst.msk [vmem:[#allocation2 + $0x30] sm:$0xf] %vm2429_vm12, %v2358_v23  ;;  %v2356_v28 = vpop.permute.xlu0 %2355  ;;  %v2927_v32 = vpop.permute.xlu2 %2926  ;;  %v3222_v23 = vrot.slane %v4124_v11, 5  ;;  %v4130_v11 = vrot.slane %v4086_v4, 9  ;;  %v2672_v15 = vrot.slane %v2671_v6, 4 }
 0x256   : > { %2441 = vst.msk [vmem:[#allocation2 + $0x2c] sm:$0xf] %vm2429_vm12, %v2356_v28  ;;  %v3221_v28 = vrot.slane %v3219_v14, 4  ;;  %v3220_v46 = vsel %vm4558_vm6, %v4142_v29, %v3219_v14 }
 0x258   : > { %v3223_v43 = vsel %vm4558_vm6, %v3221_v28, %v3222_v23  ;;  %v4098_v23 = vld [vmem:[%s4372_s19 + $0x60] sm:$0xe]  ;;  %v4077_v28 = vld [vmem:[%s4372_s19 + $0xcc] sm:$0xf] }
 0x25a   : > { %2389 = vrot.lane.b32.xlu1 %v4028_v33, %s4325_s25  ;;  %v4040_v33 = vld [vmem:[%s4372_s19 + $0x38] sm:$0x1] }
 0x25b   : > { %2375 = vrot.lane.b32.xlu0 %v4021_v30, %s4325_s25  ;;  %2373 = vrot.lane.b32.xlu2 %v4020_v41, %s4325_s25  ;;  %v2564_v41 = vrot.slane %v2562_v27, 5  ;;  %v2578_v48 = vshll.u32 %v4040_v33, 16  ;;  %v4022_v33 = vld [vmem:[%s4372_s19 + $0x9c] sm:$0xf] }
 0x25c   : > { %v2366_v47 = vpop.permute.xlu1 %2365 }
 0x25d   : > { %2446 = vst.msk [vmem:[#allocation2 + $0x40] sm:$0xf] %vm2429_vm12, %v2366_v47  ;;  %v2362_v51 = vpop.permute.xlu0 %2361  ;;  %v2945_v57 = vpop.permute.xlu2 %2944  ;;  %v2575_v47 = vor.u32 %v2574_v35, %v2570_v37  ;;  %v2874_v35 = vshll.u32 %v4077_v28, 16 }
 0x25e   : > { %2444 = vst.msk [vmem:[#allocation2 + $0x38] sm:$0xf] %vm2429_vm12, %v2362_v51  ;;  %v2565_v51 = vor.u32 %v2564_v41, %v2561_v40  ;;  %v4065_v41 = vld [vmem:[%s4372_s19 + $0x9c] sm:$0xf] }
 0x25f   : > { %3007 = vst.msk [vmem:[#allocation2 + $0x40] sm:$0xf] %vm2990_vm14, %v2927_v32  ;;  %v2660_v32 = vrot.slane %v2658_v16, 5  ;;  %v2876_v45 = vrot.slane %v2874_v35, 5 }
 0x260   : > { %v2566_v61 = vrot.slane %v2565_v51, 4  ;;  %v4067_v51 = vld [vmem:[%s4372_s19 + $0xa4] sm:$0x1] }
 0x261   : > { %v2661_v44 = vor.u32 %v2660_v32, %v2657_v31  ;;  %v4066_v32 = vld [vmem:[%s4372_s19 + $0xa0] sm:$0xf]  ;;  %v2794_v62 = vshll.u32 %v4067_v51, 16 }
 0x262   : > { %2936 = vrot.lane.b32.xlu1 %v2773_v58, %s4326_s26  ;;  %v2580_v58 = vrot.slane %v2578_v48, 5  ;;  %v2571_v5 = vsel %vm4383_vm2, %v2566_v61, %v2570_v37  ;;  %v2871_v37 = vshrl.u32 %v4077_v28, 16  ;;  %v2784_v38 = vshll.u32 %v4066_v32, 16  ;;  %v4053_v28 = vld [vmem:[%s4372_s19 + $0x6c] sm:$0xf] }
 0x263   : > { %2934 = vrot.lane.b32.xlu0 %v2763_v59, %s4326_s26  ;;  %2391 = vrot.lane.b32.xlu2 %v4029_v52, %s4325_s25  ;;  %v2662_v53 = vrot.slane %v2661_v44, 4  ;;  %v4087_v59 = vld [vmem:[%s4372_s19 + $0x34] sm:$0xf]  ;;  %v4052_v52 = vld [vmem:[%s4372_s19 + $0x68] sm:$0x1]  ;;  %v2788_v39 = vshrl.u32 %v4066_v32, 16 }
 0x264   : > { %v2384_v3 = vpop.permute.xlu1 %2383  ;;  %v3135_v0 = vrot.slane %v4087_v59, 5  ;;  %v2674_v7 = vshll.u32 %v4052_v52, 16  ;;  %v2873_v44 = vrot.slane %v2871_v37, 4  ;;  %v2786_v48 = vrot.slane %v2784_v38, 5  ;;  %v4023_v52 = vld [vmem:[%s4372_s19 + $0xa0] sm:$0xf] }
 0x265   : > { %2455 = vst.msk [vmem:[#allocation2 + $0x64] sm:$0xf] %vm2429_vm12, %v2384_v3  ;;  %v2382_v8 = vpop.permute.xlu0 %2381  ;;  %v3280_v12 = vpop.permute.xlu2 %3279  ;;  %v2667_v55 = vsel %vm4383_vm2, %v2662_v53, %v2666_v54  ;;  %v4088_v3 = vld [vmem:[%s4372_s19 + $0x38] sm:$0x1]  ;;  %v2790_v49 = vrot.slane %v2788_v39, 4  ;;  %v2796_v6 = vrot.slane %v2794_v62, 5 }
 0x266   : > { %2454 = vst.msk [vmem:[#allocation2 + $0x60] sm:$0xf] %vm2429_vm12, %v2382_v8  ;;  %v3137_v8 = vrot.slane %v3135_v0, 4  ;;  %v3138_v9 = vrot.slane %v4088_v3, 5  ;;  %v2676_v16 = vrot.slane %v2674_v7, 5  ;;  %v3136_v19 = vsel %vm4558_vm6, %v4130_v11, %v3135_v0 }
 0x267   : > { %3016 = vst.msk [vmem:[#allocation2 + $0x64] sm:$0xf] %vm2990_vm14, %v2945_v57  ;;  %v2576_v57 = vrot.slane %v2575_v47, 4  ;;  %v4078_v47 = vld [vmem:[%s4372_s19 + $0xd0] sm:$0xf]  ;;  %v2791_v61 = vor.u32 %v2790_v49, %v2786_v48  ;;  %v2679_v35 = vshrl.u32 %v4053_v28, 16 }
 0x268   : > { %v3139_v18 = vsel %vm4558_vm6, %v3137_v8, %v3138_v9  ;;  %v2677_v22 = vsel %vm4383_vm2, %v2672_v15, %v2676_v16  ;;  %v2880_v59 = vshll.u32 %v4078_v47, 16  ;;  %v4114_v7 = vld [vmem:[%s4372_s19 + $0xa0] sm:$0xf]  ;;  %v4127_v39 = vld [vmem:[%s4372_s19 + $0xd4] sm:$0x1] }
 0x269   : > { %v2581_v2 = vsel %vm4383_vm2, %v2576_v57, %v2580_v58  ;;  %v4031_v57 = vld [vmem:[%s4372_s19 + $0xd0] sm:$0xf]  ;;  %v2877_v58 = vor.u32 %v2876_v45, %v2873_v44  ;;  %v3198_v15 = vrot.slane %v4114_v7, 5  ;;  %v4125_v44 = vld [vmem:[%s4372_s19 + $0xcc] sm:$0xe]  ;;  %v2681_v49 = vrot.slane %v2679_v35, 4 }
 0x26a   : > { %3271 = vrot.lane.b32.xlu1 %v3192_v13, %s4327_s27 }
 0x26b   : > { %2952 = vrot.lane.b32.xlu0 %v2869_v17, %s4326_s26  ;;  %2950 = vrot.lane.b32.xlu2 %v2859_v21, %s4326_s26  ;;  %v4100_v21 = vld [vmem:[%s4372_s19 + $0x68] sm:$0x1]  ;;  %v2878_v0 = vrot.slane %v2877_v58, 4 }
 0x26c   : > { %v2943_v34 = vpop.permute.xlu1 %2942  ;;  %v3166_v27 = vrot.slane %v4100_v21, 5 }
 0x26d   : > { %3015 = vst.msk [vmem:[#allocation2 + $0x60] sm:$0xf] %vm2990_vm14, %v2943_v34  ;;  %v2929_v30 = vpop.permute.xlu0 %2928  ;;  %v2897_v42 = vpop.permute.xlu2 %2896  ;;  %v4134_v34 = vrot.slane %v4098_v23, 9 }
 0x26e   : > { %3008 = vst.msk [vmem:[#allocation2 + $0x44] sm:$0xf] %vm2990_vm14, %v2929_v30 }
 0x26f   : > { %3352 = vst.msk [vmem:[#allocation2 + $0x60] sm:$0xf] %vm3327_vm15, %v3280_v12  ;;  %v4099_v12 = vld [vmem:[%s4372_s19 + $0x64] sm:$0xf] }
 0x270   : > { %2992 = vst.msk [vmem:[#allocation2 + $0x4] sm:$0xf] %vm2990_vm14, %v2897_v42  ;;  %v3163_v20 = vrot.slane %v4099_v12, 5  ;;  %v2775_v42 = vshrl.u32 %v4065_v41, 16 }
 0x272   : > { %3289 = vrot.lane.b32.xlu1 %v3223_v43, %s4327_s27  ;;  %v3165_v26 = vrot.slane %v3163_v20, 4  ;;  %v3164_v40 = vsel %vm4558_vm6, %v4134_v34, %v3163_v20  ;;  %v2778_v43 = vshll.u32 %v4065_v41, 16  ;;  %v2777_v53 = vrot.slane %v2775_v42, 4 }
 0x273   : > { %3287 = vrot.lane.b32.xlu0 %v3220_v46, %s4327_s27  ;;  %3273 = vrot.lane.b32.xlu2 %v3195_v50, %s4327_s27 }
 0x274   : > { %v3266_v56 = vpop.permute.xlu1 %3265  ;;  %v3167_v30 = vsel %vm4558_vm6, %v3165_v26, %v3166_v27  ;;  %v2780_v54 = vrot.slane %v2778_v43, 5  ;;  %v4126_v27 = vld [vmem:[%s4372_s19 + $0xd0] sm:$0xf]  ;;  %v4041_v43 = vld [vmem:[%s4372_s19 + $0x3c] sm:$0xf] }
 0x275   : > { %3345 = vst.msk [vmem:[#allocation2 + $0x44] sm:$0xf] %vm3327_vm15, %v3266_v56  ;;  %v3264_v60 = vpop.permute.xlu0 %3263  ;;  %v3232_v63 = vpop.permute.xlu2 %3231  ;;  %v3226_v37 = vrot.slane %v4126_v27, 5  ;;  %v2583_v45 = vshrl.u32 %v4041_v43, 16 }
 0x276   : > { %3344 = vst.msk [vmem:[#allocation2 + $0x40] sm:$0xf] %vm3327_vm15, %v3264_v60  ;;  %v4030_v60 = vld [vmem:[%s4372_s19 + $0xcc] sm:$0xf] }
 0x27a   : > { %2918 = vrot.lane.b32.xlu1 %v2667_v55, %s4326_s26  ;;  %v2781_v55 = vor.u32 %v2780_v54, %v2777_v53  ;;  %v4054_v53 = vld [vmem:[%s4372_s19 + $0x70] sm:$0xf]  ;;  %v4043_v54 = vld [vmem:[%s4372_s19 + $0x44] sm:$0x1] }
 0x27b   : > { %2904 = vrot.lane.b32.xlu0 %v2581_v2, %s4326_s26  ;;  %2902 = vrot.lane.b32.xlu2 %v2571_v5, %s4326_s26  ;;  %v2882_v2 = vrot.slane %v2880_v59, 5  ;;  %v2792_v5 = vrot.slane %v2791_v61, 4  ;;  %v4143_v59 = vrot.slane %v4125_v44, 9 }
 0x27c   : > { %v2895_v10 = vpop.permute.xlu1 %2894 }
 0x27d   : > { %2991 = vst.msk [vmem:[#allocation2] sm:$0xf] %vm2990_vm14, %v2895_v10  ;;  %v3282_v13 = vpop.permute.xlu0 %3281  ;;  %v4243_v14 = vld [vmem:[#allocation2 + $0x40] sm:$0xff]  ;;  %v3250_v17 = vpop.permute.xlu2 %3249  ;;  %v2782_v10 = vrot.slane %v2781_v55, 4  ;;  %v2797_v16 = vsel %vm4383_vm2, %v2792_v5, %v2796_v6  ;;  %v2688_v55 = vshll.u32 %v4054_v53, 16  ;;  %v3227_v5 = vsel %vm4558_vm6, %v4143_v59, %v3226_v37 }
 0x27e   : > { %3353 = vst.msk [vmem:[#allocation2 + $0x64] sm:$0xf] %vm3327_vm15, %v3282_v13  ;;  %4224 = vmatmul.msk.bf16.vlgmr.msra.gmra.mxu2 %vm3496_vm0, %v4243_v14  ;;  %v4079_v13 = vld [vmem:[%s4372_s19 + $0xd4] sm:$0x1]  ;;  %v2883_v14 = vsel %vm4383_vm2, %v2878_v0, %v2882_v2 }
 0x27f   : > { %3328 = vst.msk [vmem:[#allocation2] sm:$0xf] %vm3327_vm15, %v3232_v63  ;;  %v2884_v63 = vshrl.u32 %v4078_v47, 16  ;;  %v2890_v21 = vshll.u32 %v4079_v13, 16  ;;  %v3228_v47 = vrot.slane %v3226_v37, 4 }
 0x281   : > { %v2886_v11 = vrot.slane %v2884_v63, 4  ;;  %v2892_v34 = vrot.slane %v2890_v21, 5  ;;  %v4015_v63 = vld [vmem:[%s4372_s19 + $0x70] sm:$0xf]  ;;  %v4091_v21 = vld [vmem:[%s4372_s19 + $0x44] sm:$0x1] }
 0x282   : > { %3241 = vrot.lane.b32.xlu1 %v3139_v18, %s4327_s27  ;;  %v4113_v18 = vld [vmem:[%s4372_s19 + $0x9c] sm:$0xe] }
 0x283   : > { %3239 = vrot.lane.b32.xlu0 %v3136_v19, %s4327_s27  ;;  %2920 = vrot.lane.b32.xlu2 %v2677_v22, %s4326_s26  ;;  %v2787_v19 = vsel %vm4383_vm2, %v2782_v10, %v2786_v48  ;;  %v2887_v20 = vor.u32 %v2886_v11, %v2882_v2  ;;  %v3200_v22 = vrot.slane %v3198_v15, 4  ;;  %v4139_v26 = vrot.slane %v4113_v18, 9 }
 0x284   : > { %v2913_v24 = vpop.permute.xlu1 %2912  ;;  %v3229_v48 = vrot.slane %v4127_v39, 5 }
 0x285   : > { %3000 = vst.msk [vmem:[#allocation2 + $0x24] sm:$0xf] %vm2990_vm14, %v2913_v24  ;;  %v2911_v29 = vpop.permute.xlu0 %2910  ;;  %v4247_v31 = vld [vmem:[#allocation2 + $0x60] sm:$0xff]  ;;  %v2386_v36 = vpop.permute.xlu2 %2385  ;;  %v2888_v32 = vrot.slane %v2887_v20, 4  ;;  %v3199_v38 = vsel %vm4558_vm6, %v4139_v26, %v3198_v15 }
 0x286   : > { %2999 = vst.msk [vmem:[#allocation2 + $0x20] sm:$0xf] %vm2990_vm14, %v2911_v29  ;;  %4228 = vmatmul.msk.bf16.vlgmr.msra.gmra.mxu3 %vm3496_vm0, %v4247_v31  ;;  %v4042_v31 = vld [vmem:[%s4372_s19 + $0x40] sm:$0xf]  ;;  %v3230_v0 = vsel %vm4558_vm6, %v3228_v47, %v3229_v48 }
 0x287   : > { %3337 = vst.msk [vmem:[#allocation2 + $0x24] sm:$0xf] %vm3327_vm15, %v3250_v17  ;;  %v4115_v17 = vld [vmem:[%s4372_s19 + $0xa4] sm:$0x1]  ;;  %v2596_v41 = vshrl.u32 %v4042_v31, 16  ;;  %v2893_v42 = vsel %vm4383_vm2, %v2888_v32, %v2892_v34 }
 0x288   : > { %2456 = vst.msk [vmem:[#allocation2 + $0x68] sm:$0xf] %vm2429_vm12, %v2386_v36  ;;  %v3201_v23 = vrot.slane %v4115_v17, 5  ;;  %v4055_v17 = vld [vmem:[%s4372_s19 + $0x74] sm:$0x1] }
 0x289   : > { %v2698_v26 = vshll.u32 %v4055_v17, 16  ;;  %v4102_v34 = vld [vmem:[%s4372_s19 + $0x70] sm:$0xf] }
 0x28a   : > { %2377 = vrot.lane.b32.xlu1 %v4022_v33, %s4325_s25  ;;  %v3202_v33 = vsel %vm4558_vm6, %v3200_v22, %v3201_v23  ;;  %v4089_v22 = vld [vmem:[%s4372_s19 + $0x3c] sm:$0xe] }
 0x28b   : > { %3257 = vrot.lane.b32.xlu0 %v3167_v30, %s4327_s27  ;;  %3255 = vrot.lane.b32.xlu2 %v3164_v40, %s4327_s27  ;;  %v2682_v30 = vshll.u32 %v4053_v28, 16  ;;  %v2592_v40 = vshll.u32 %v4042_v31, 16  ;;  %v3145_v28 = vrot.slane %v4091_v21, 5  ;;  %v4131_v32 = vrot.slane %v4089_v22, 9 }
 0x28c   : > { %v3248_v46 = vpop.permute.xlu1 %3247  ;;  %v2700_v35 = vrot.slane %v2698_v26, 5 }
 0x28d   : > { %3336 = vst.msk [vmem:[#allocation2 + $0x20] sm:$0xf] %vm3327_vm15, %v3248_v46  ;;  %v3234_v50 = vpop.permute.xlu0 %3233  ;;  %v2933_v56 = vpop.permute.xlu2 %2932  ;;  %v2586_v46 = vshll.u32 %v4041_v43, 16  ;;  %v4101_v43 = vld [vmem:[%s4372_s19 + $0x6c] sm:$0xe] }
 0x28e   : > { %3329 = vst.msk [vmem:[#allocation2 + $0x4] sm:$0xf] %vm3327_vm15, %v3234_v50  ;;  %v2684_v50 = vrot.slane %v2682_v30, 5  ;;  %v4135_v48 = vrot.slane %v4101_v43, 9 }
 0x28f   : > { %v2588_v61 = vrot.slane %v2586_v46, 5 }
 0x292   : > { %2395 = vrot.lane.b32.xlu1 %v4031_v57, %s4325_s25  ;;  %v2598_v57 = vrot.slane %v2596_v41, 4  ;;  %v4103_v41 = vld [vmem:[%s4372_s19 + $0x74] sm:$0x1] }
 0x293   : > { %2393 = vrot.lane.b32.xlu0 %v4030_v60, %s4325_s25  ;;  %2379 = vrot.lane.b32.xlu2 %v4023_v52, %s4325_s25  ;;  %v2585_v60 = vrot.slane %v2583_v45, 4  ;;  %v2685_v52 = vor.u32 %v2684_v50, %v2681_v49  ;;  %v3173_v46 = vrot.slane %v4103_v41, 5 }
 0x294   : > { %v2372_v3 = vpop.permute.xlu1 %2371  ;;  %v4239_v4 = vld [vmem:[#allocation2 + $0x20] sm:$0xff] }
 0x295   : > { %2449 = vst.msk [vmem:[#allocation2 + $0x4c] sm:$0xf] %vm2429_vm12, %v2372_v3  ;;  %v2370_v8 = vpop.permute.xlu0 %2369  ;;  %v4235_v9 = vld [vmem:[#allocation2] sm:$0xff]  ;;  %4220 = vmatmul.msk.bf16.vlgmr.msra.gmra.mxu1 %vm3496_vm0, %v4239_v4  ;;  %v3268_v12 = vpop.permute.xlu2 %3267  ;;  %v2602_v3 = vshll.u32 %v4043_v54, 16  ;;  %v2692_v4 = vshrl.u32 %v4054_v53, 16  ;;  %v2589_v6 = vor.u32 %v2588_v61, %v2585_v60  ;;  %v2686_v7 = vrot.slane %v2685_v52, 4 }
 0x296   : > { %2448 = vst.msk [vmem:[#allocation2 + $0x48] sm:$0xf] %vm2429_vm12, %v2370_v8  ;;  %4216 = vmatmul.msk.bf16.vlgmr.msra.gmra.mxu0 %vm3496_vm0, %v4235_v9  ;;  %v2690_v8 = vrot.slane %v2688_v55, 5 }
 0x297   : > { %3010 = vst.msk [vmem:[#allocation2 + $0x4c] sm:$0xf] %vm2990_vm14, %v2933_v56  ;;  %v2594_v56 = vrot.slane %v2592_v40, 5  ;;  %v2604_v11 = vrot.slane %v2602_v3, 5  ;;  %v2694_v15 = vrot.slane %v2692_v4, 4  ;;  %v3170_v40 = vrot.slane %v4102_v34, 5 }
 0x298   : > { %v2691_v18 = vsel %vm4383_vm2, %v2686_v7, %v2690_v8 }
 0x299   : > { %v2599_v2 = vor.u32 %v2598_v57, %v2594_v56  ;;  %v3172_v45 = vrot.slane %v3170_v40, 4  ;;  %v3171_v50 = vsel %vm4558_vm6, %v4135_v48, %v3170_v40 }
 0x29a   : > { %2954 = vrot.lane.b32.xlu1 %v2883_v14, %s4326_s26  ;;  %v2590_v14 = vrot.slane %v2589_v6, 4 }
 0x29b   : > { %2940 = vrot.lane.b32.xlu0 %v2797_v16, %s4326_s26  ;;  %2938 = vrot.lane.b32.xlu2 %v2787_v19, %s4326_s26  ;;  %v2600_v10 = vrot.slane %v2599_v2, 4  ;;  %v3174_v25 = vsel %vm4558_vm6, %v3172_v45, %v3173_v46 }
 0x29c   : > { %v2931_v24 = vpop.permute.xlu1 %2930  ;;  %v2595_v23 = vsel %vm4383_vm2, %v2590_v14, %v2594_v56 }
 0x29d   : > { %3009 = vst.msk [vmem:[#allocation2 + $0x48] sm:$0xf] %vm2990_vm14, %v2931_v24  ;;  %v2388_v29 = vpop.permute.xlu0 %2387  ;;  %v3286_v36 = vpop.permute.xlu2 %3285  ;;  %v2605_v20 = vsel %vm4383_vm2, %v2600_v10, %v2604_v11  ;;  %v2695_v24 = vor.u32 %v2694_v15, %v2690_v8 }
 0x29e   : > { %2457 = vst.msk [vmem:[#allocation2 + $0x6c] sm:$0xf] %vm2429_vm12, %v2388_v29 }
 0x29f   : > { %3346 = vst.msk [vmem:[#allocation2 + $0x48] sm:$0xf] %vm3327_vm15, %v3268_v12  ;;  %v4090_v12 = vld [vmem:[%s4372_s19 + $0x40] sm:$0xf]  ;;  %v2696_v37 = vrot.slane %v2695_v24, 4 }
 0x2a0   : > { %v3142_v19 = vrot.slane %v4090_v12, 5 }
 0x2a2   : > { %3277 = vrot.lane.b32.xlu1 %v3202_v33, %s4327_s27  ;;  %v3144_v27 = vrot.slane %v3142_v19, 4  ;;  %v3143_v39 = vsel %vm4558_vm6, %v4131_v32, %v3142_v19 }
 0x2a3   : > { %3275 = vrot.lane.b32.xlu0 %v3199_v38, %s4327_s27  ;;  %2956 = vrot.lane.b32.xlu2 %v2893_v42, %s4326_s26  ;;  %v2701_v42 = vsel %vm4383_vm2, %v2696_v37, %v2700_v35 }
 0x2a4   : > { %v2949_v51 = vpop.permute.xlu1 %2948  ;;  %v3146_v38 = vsel %vm4558_vm6, %v3144_v27, %v3145_v28 }
 0x2a5   : > { %3018 = vst.msk [vmem:[#allocation2 + $0x6c] sm:$0xf] %vm2990_vm14, %v2949_v51  ;;  %v2947_v58 = vpop.permute.xlu0 %2946  ;;  %v2915_v62 = vpop.permute.xlu2 %2914 }
 0x2a6   : > { %3017 = vst.msk [vmem:[#allocation2 + $0x68] sm:$0xf] %vm2990_vm14, %v2947_v58 }
 0x2a7   : > { %3355 = vst.msk [vmem:[#allocation2 + $0x6c] sm:$0xf] %vm3327_vm15, %v3286_v36 }
 0x2a8   : > { %3001 = vst.msk [vmem:[#allocation2 + $0x28] sm:$0xf] %vm2990_vm14, %v2915_v62 }
 0x2aa   : > { %2363 = vrot.lane.b32.xlu1 %v4015_v63, %s4325_s25 }
 0x2ab   : > { %3293 = vrot.lane.b32.xlu0 %v3230_v0, %s4327_s27  ;;  %3291 = vrot.lane.b32.xlu2 %v3227_v5, %s4327_s27 }
 0x2ac   : > { %v3284_v9 = vpop.permute.xlu1 %3283 }
 0x2ad   : > { %3354 = vst.msk [vmem:[#allocation2 + $0x68] sm:$0xf] %vm3327_vm15, %v3284_v9  ;;  %v3270_v13 = vpop.permute.xlu0 %3269  ;;  %v3238_v16 = vpop.permute.xlu2 %3237 }
 0x2ae   : > { %3347 = vst.msk [vmem:[#allocation2 + $0x4c] sm:$0xf] %vm3327_vm15, %v3270_v13 }
 0x2b2   : > { %2922 = vrot.lane.b32.xlu1 %v2691_v18, %s4326_s26 }
 0x2b3   : > { %2908 = vrot.lane.b32.xlu0 %v2605_v20, %s4326_s26  ;;  %2906 = vrot.lane.b32.xlu2 %v2595_v23, %s4326_s26 }
 0x2b4   : > { %v2901_v29 = vpop.permute.xlu1 %2900  ;;  %v4248_v31 = vld [vmem:[#allocation2 + $0x68] sm:$0xff] }
 0x2b5   : > { %2994 = vst.msk [vmem:[#allocation2 + $0xc] sm:$0xf] %vm2990_vm14, %v2901_v29  ;;  %v2899_v36 = vpop.permute.xlu0 %2898  ;;  %v4244_v33 = vld [vmem:[#allocation2 + $0x48] sm:$0xff]  ;;  %4229 = vmatmul.msk.bf16.gmra.mxu3 %vm3496_vm0, %v4248_v31  ;;  %v2374_v30 = vpop.permute.xlu2 %2373 }
 0x2b6   : > { %2993 = vst.msk [vmem:[#allocation2 + $0x8] sm:$0xf] %vm2990_vm14, %v2899_v36  ;;  %4225 = vmatmul.msk.bf16.gmra.mxu2 %vm3496_vm0, %v4244_v33 }
 0x2b7   : > { %3331 = vst.msk [vmem:[#allocation2 + $0xc] sm:$0xf] %vm3327_vm15, %v3238_v16  ;;  %v5772_v16 = vld [vmem:[%s5911_s2] ss:$0 sm:$0xff] }
 0x2b8   : > { %2450 = vst.msk [vmem:[#allocation2 + $0x50] sm:$0xf] %vm2429_vm12, %v2374_v30 }
 0x2ba   : > { %3245 = vrot.lane.b32.xlu1 %v3146_v38, %s4327_s27 }
 0x2bb   : > { %3243 = vrot.lane.b32.xlu0 %v3143_v39, %s4327_s27  ;;  %2924 = vrot.lane.b32.xlu2 %v2701_v42, %s4326_s26 }
 0x2bc   : > { %v3236_v44 = vpop.permute.xlu1 %3235 }
 0x2bd   : > { %3330 = vst.msk [vmem:[#allocation2 + $0x8] sm:$0xf] %vm3327_vm15, %v3236_v44  ;;  %v2917_v47 = vpop.permute.xlu0 %2916  ;;  %v2392_v49 = vpop.permute.xlu2 %2391 }
 0x2be   : > { %3002 = vst.msk [vmem:[#allocation2 + $0x2c] sm:$0xf] %vm2990_vm14, %v2917_v47 }
 0x2bf   : > { %2459 = vst.msk [vmem:[#allocation2 + $0x74] sm:$0xf] %vm2429_vm12, %v2392_v49 }
 0x2c3   : > { %3261 = vrot.lane.b32.xlu0 %v3174_v25, %s4327_s27  ;;  %3259 = vrot.lane.b32.xlu2 %v3171_v50, %s4327_s27 }
 0x2c4   : > { %v3254_v51 = vpop.permute.xlu1 %3253  ;;  %v4236_v53 = vld [vmem:[#allocation2 + $0x8] sm:$0xff] }
 0x2c5   : > { %3339 = vst.msk [vmem:[#allocation2 + $0x2c] sm:$0xf] %vm3327_vm15, %v3254_v51  ;;  %v3252_v54 = vpop.permute.xlu0 %3251  ;;  %4217 = vmatmul.msk.bf16.gmra.mxu0 %vm3496_vm0, %v4236_v53  ;;  %v2951_v56 = vpop.permute.xlu2 %2950 }
 0x2c6   : > { %3338 = vst.msk [vmem:[#allocation2 + $0x28] sm:$0xf] %vm3327_vm15, %v3252_v54 }
 0x2cc   : > { %v2390_v57 = vpop.permute.xlu1 %2389 }
 0x2cd   : > { %2458 = vst.msk [vmem:[#allocation2 + $0x70] sm:$0xf] %vm2429_vm12, %v2390_v57  ;;  %v2376_v58 = vpop.permute.xlu0 %2375  ;;  %v4240_v1 = vld [vmem:[#allocation2 + $0x28] sm:$0xff]  ;;  %v3274_v59 = vpop.permute.xlu2 %3273 }
 0x2ce   : > { %2451 = vst.msk [vmem:[#allocation2 + $0x54] sm:$0xf] %vm2429_vm12, %v2376_v58  ;;  %4221 = vmatmul.msk.bf16.gmra.mxu1 %vm3496_vm0, %v4240_v1 }
 0x2cf   : > { %3019 = vst.msk [vmem:[#allocation2 + $0x70] sm:$0xf] %vm2990_vm14, %v2951_v56 }
 0x2d4   : > { %v2937_v60 = vpop.permute.xlu1 %2936 }
 0x2d5   : > { %3012 = vst.msk [vmem:[#allocation2 + $0x54] sm:$0xf] %vm2990_vm14, %v2937_v60  ;;  %v2935_v61 = vpop.permute.xlu0 %2934  ;;  %v2903_v62 = vpop.permute.xlu2 %2902 }
 0x2d6   : > { %3011 = vst.msk [vmem:[#allocation2 + $0x50] sm:$0xf] %vm2990_vm14, %v2935_v61 }
 0x2d7   : > { %3349 = vst.msk [vmem:[#allocation2 + $0x54] sm:$0xf] %vm3327_vm15, %v3274_v59 }
 0x2d8   : > { %2995 = vst.msk [vmem:[#allocation2 + $0x10] sm:$0xf] %vm2990_vm14, %v2903_v62 }
 0x2dc   : > { %v3272_v63 = vpop.permute.xlu1 %3271 }
 0x2dd   : > { %3348 = vst.msk [vmem:[#allocation2 + $0x50] sm:$0xf] %vm3327_vm15, %v3272_v63  ;;  %v2953_v52 = vpop.permute.xlu0 %2952  ;;  %v2921_v55 = vpop.permute.xlu2 %2920 }
 0x2de   : > { %3020 = vst.msk [vmem:[#allocation2 + $0x74] sm:$0xf] %vm2990_vm14, %v2953_v52 }
 0x2df   : > { %3004 = vst.msk [vmem:[#allocation2 + $0x34] sm:$0xf] %vm2990_vm14, %v2921_v55 }
 0x2e4   : > { %v3290_v0 = vpop.permute.xlu1 %3289  ;;  %v4245_v2 = vld [vmem:[#allocation2 + $0x50] sm:$0xff] }
 0x2e5   : > { %3357 = vst.msk [vmem:[#allocation2 + $0x74] sm:$0xf] %vm3327_vm15, %v3290_v0  ;;  %v3288_v3 = vpop.permute.xlu0 %3287  ;;  %4226 = vmatmul.msk.bf16.gmra.mxu2 %vm3496_vm0, %v4245_v2  ;;  %v3256_v4 = vpop.permute.xlu2 %3255 }
 0x2e6   : > { %3356 = vst.msk [vmem:[#allocation2 + $0x70] sm:$0xf] %vm3327_vm15, %v3288_v3 }
 0x2ec   : > { %v2919_v5 = vpop.permute.xlu1 %2918 }
 0x2ed   : > { %3003 = vst.msk [vmem:[#allocation2 + $0x30] sm:$0xf] %vm2990_vm14, %v2919_v5  ;;  %v2905_v6 = vpop.permute.xlu0 %2904  ;;  %v4249_v7 = vld [vmem:[#allocation2 + $0x70] sm:$0xff]  ;;  %v2380_v8 = vpop.permute.xlu2 %2379 }
 0x2ee   : > { %2996 = vst.msk [vmem:[#allocation2 + $0x14] sm:$0xf] %vm2990_vm14, %v2905_v6  ;;  %4230 = vmatmul.msk.bf16.gmra.mxu3 %vm3496_vm0, %v4249_v7 }
 0x2ef   : > { %3340 = vst.msk [vmem:[#allocation2 + $0x30] sm:$0xf] %vm3327_vm15, %v3256_v4 }
 0x2f0   : > { %2453 = vst.msk [vmem:[#allocation2 + $0x5c] sm:$0xf] %vm2429_vm12, %v2380_v8 }
 0x2f4   : > { %v3242_v9 = vpop.permute.xlu1 %3241 }
 0x2f5   : > { %3333 = vst.msk [vmem:[#allocation2 + $0x14] sm:$0xf] %vm3327_vm15, %v3242_v9  ;;  %v3240_v10 = vpop.permute.xlu0 %3239  ;;  %v2939_v11 = vpop.permute.xlu2 %2938 }
 0x2f6   : > { %3332 = vst.msk [vmem:[#allocation2 + $0x10] sm:$0xf] %vm3327_vm15, %v3240_v10 }
 0x2fc   : > { %v2378_v12 = vpop.permute.xlu1 %2377 }
 0x2fd   : > { %2452 = vst.msk [vmem:[#allocation2 + $0x58] sm:$0xf] %vm2429_vm12, %v2378_v12  ;;  %v3258_v13 = vpop.permute.xlu0 %3257  ;;  %v4237_v14 = vld [vmem:[#allocation2 + $0x10] sm:$0xff]  ;;  %v2957_v15 = vpop.permute.xlu2 %2956 }
 0x2fe   : > { %3341 = vst.msk [vmem:[#allocation2 + $0x34] sm:$0xf] %vm3327_vm15, %v3258_v13  ;;  %4218 = vmatmul.msk.bf16.gmra.mxu0 %vm3496_vm0, %v4237_v14 }
 0x2ff   : > { %3013 = vst.msk [vmem:[#allocation2 + $0x58] sm:$0xf] %vm2990_vm14, %v2939_v11 }
 0x301   : > { %v3598_v17 = vpop.f32.mrf.mxu2 }
 0x302   : > { %v3599_v18 = vadd.f32 %v5772_v16, %v3598_v17 }
 0x304   : > { %v2396_v19 = vpop.permute.xlu1 %2395  ;;  %v3654_v20 = vmax.f32 %v3599_v18, 0.0 }
 0x305   : > { %2461 = vst.msk [vmem:[#allocation2 + $0x7c] sm:$0xf] %vm2429_vm12, %v2396_v19  ;;  %v2394_v21 = vpop.permute.xlu0 %2393  ;;  %v4241_v22 = vld [vmem:[#allocation2 + $0x30] sm:$0xff]  ;;  %v3292_v23 = vpop.permute.xlu2 %3291 }
 0x306   : > { %2460 = vst.msk [vmem:[#allocation2 + $0x78] sm:$0xf] %vm2429_vm12, %v2394_v21  ;;  %v3686_v24 = vmin.f32 %v3654_v20, 6.0  ;;  %4222 = vmatmul.msk.bf16.gmra.mxu1 %vm3496_vm0, %v4241_v22 }
 0x307   : > { %3022 = vst.msk [vmem:[#allocation2 + $0x7c] sm:$0xf] %vm2990_vm14, %v2957_v15 }
 0x308   : > { %3719 = vst.msk [vmem:[%s5781_s16 + $0x80] sm:$0xff] %vm3702_vm1, %v3686_v24 }
 0x309   : > { %v3600_v26 = vpop.f32.mrf.mxu2  ;;  %v3618_v27 = vpop.f32.mrf.mxu3 }
 0x30a   : > { %v3601_v28 = vadd.f32 %v5772_v16, %v3600_v26  ;;  %v3619_v29 = vadd.f32 %v5772_v16, %v3618_v27 }
 0x30c   : > { %v2955_v31 = vpop.permute.xlu1 %2954  ;;  %v3655_v32 = vmax.f32 %v3601_v28, 0.0  ;;  %v3662_v34 = vmax.f32 %v3619_v29, 0.0 }
 0x30d   : > { %3021 = vst.msk [vmem:[#allocation2 + $0x78] sm:$0xf] %vm2990_vm14, %v2955_v31  ;;  %v2941_v36 = vpop.permute.xlu0 %2940  ;;  %v2907_v33 = vpop.permute.xlu2 %2906 }
 0x30e   : > { %3014 = vst.msk [vmem:[#allocation2 + $0x5c] sm:$0xf] %vm2990_vm14, %v2941_v36  ;;  %v3687_v37 = vmin.f32 %v3655_v32, 6.0  ;;  %v3694_v35 = vmin.f32 %v3662_v34, 6.0 }
 0x30f   : > { %3358 = vst.msk [vmem:[#allocation2 + $0x78] sm:$0xf] %vm3327_vm15, %v3292_v23 }
 0x310   : > { %2997 = vst.msk [vmem:[#allocation2 + $0x18] sm:$0xf] %vm2990_vm14, %v2907_v33 }
 0x311   : > { %3720 = vst.msk [vmem:[%s5781_s16 + $0x88] sm:$0xff] %vm3702_vm1, %v3687_v37  ;;  %v3620_v30 = vpop.f32.mrf.mxu3 }
 0x312   : > { %3727 = vst.msk [vmem:[%s5781_s16 + $0xc0] sm:$0xff] %vm3702_vm1, %v3694_v35  ;;  %v3621_v38 = vadd.f32 %v5772_v16, %v3620_v30  ;;  %v3578_v39 = vpop.f32.mrf.mxu1 }
 0x313   : > { %v3558_v41 = vpop.f32.mrf.mxu0  ;;  %v3579_v42 = vadd.f32 %v5772_v16, %v3578_v39 }
 0x314   : > { %v3278_v40 = vpop.permute.xlu1 %3277  ;;  %v3663_v43 = vmax.f32 %v3621_v38, 0.0  ;;  %v3559_v45 = vadd.f32 %v5772_v16, %v3558_v41 }
 0x315   : > { %3351 = vst.msk [vmem:[#allocation2 + $0x5c] sm:$0xf] %vm3327_vm15, %v3278_v40  ;;  %v3276_v44 = vpop.permute.xlu0 %3275  ;;  %v3646_v46 = vmax.f32 %v3579_v42, 0.0  ;;  %v2925_v50 = vpop.permute.xlu2 %2924 }
 0x316   : > { %3350 = vst.msk [vmem:[#allocation2 + $0x58] sm:$0xf] %vm3327_vm15, %v3276_v44  ;;  %v3695_v47 = vmin.f32 %v3663_v43, 6.0  ;;  %v3638_v48 = vmax.f32 %v3559_v45, 0.0 }
 0x317   : > { %v3678_v49 = vmin.f32 %v3646_v46, 6.0 }
 0x318   : > { %3728 = vst.msk [vmem:[%s5781_s16 + $0xc8] sm:$0xff] %vm3702_vm1, %v3695_v47  ;;  %v3670_v25 = vmin.f32 %v3638_v48, 6.0 }
 0x319   : > { %3711 = vst.msk [vmem:[%s5781_s16 + $0x40] sm:$0xff] %vm3702_vm1, %v3678_v49 }
 0x31a   : > { %3703 = vst.msk [vmem:[%s5781_s16] sm:$0xff] %vm3702_vm1, %v3670_v25  ;;  %v3580_v51 = vpop.f32.mrf.mxu1 }
 0x31b   : > { %v3560_v54 = vpop.f32.mrf.mxu0  ;;  %v3581_v56 = vadd.f32 %v5772_v16, %v3580_v51 }
 0x31c   : > { %v2364_v53 = vpop.permute.xlu1 %2363  ;;  %v3561_v58 = vadd.f32 %v5772_v16, %v3560_v54 }
 0x31d   : > { %2445 = vst.msk [vmem:[#allocation2 + $0x3c] sm:$0xf] %vm2429_vm12, %v2364_v53  ;;  %v3294_v57 = vpop.permute.xlu0 %3293  ;;  %v4246_v1 = vld [vmem:[#allocation2 + $0x58] sm:$0xff]  ;;  %v3647_v59 = vmax.f32 %v3581_v56, 0.0  ;;  %v3260_v52 = vpop.permute.xlu2 %3259 }
 0x31e   : > { %3359 = vst.msk [vmem:[#allocation2 + $0x7c] sm:$0xf] %vm3327_vm15, %v3294_v57  ;;  %v3639_v60 = vmax.f32 %v3561_v58, 0.0  ;;  %4227 = vmatmul.msk.bf16.gmra.mxu2 %vm3496_vm0, %v4246_v1 }
 0x31f   : > { %3006 = vst.msk [vmem:[#allocation2 + $0x3c] sm:$0xf] %vm2990_vm14, %v2925_v50  ;;  %v3679_v61 = vmin.f32 %v3647_v59, 6.0 }
 0x320   : > { %v3671_v62 = vmin.f32 %v3639_v60, 6.0 }
 0x321   : > { %3712 = vst.msk [vmem:[%s5781_s16 + $0x48] sm:$0xff] %vm3702_vm1, %v3679_v61 }
 0x322   : > { %3704 = vst.msk [vmem:[%s5781_s16 + $0x8] sm:$0xff] %vm3702_vm1, %v3671_v62 }
 0x324   : > { %v2923_v63 = vpop.permute.xlu1 %2922 }
 0x325   : > { %3005 = vst.msk [vmem:[#allocation2 + $0x38] sm:$0xf] %vm2990_vm14, %v2923_v63  ;;  %v2909_v55 = vpop.permute.xlu0 %2908  ;;  %v4250_v0 = vld [vmem:[#allocation2 + $0x78] sm:$0xff] }
 0x326   : > { %2998 = vst.msk [vmem:[#allocation2 + $0x1c] sm:$0xf] %vm2990_vm14, %v2909_v55  ;;  %4231 = vmatmul.msk.bf16.gmra.mxu3 %vm3496_vm0, %v4250_v0 }
 0x327   : > { %3342 = vst.msk [vmem:[#allocation2 + $0x38] sm:$0xf] %vm3327_vm15, %v3260_v52 }
 0x32c   : > { %v3246_v2 = vpop.permute.xlu1 %3245 }
 0x32d   : > { %3335 = vst.msk [vmem:[#allocation2 + $0x1c] sm:$0xf] %vm3327_vm15, %v3246_v2  ;;  %v3244_v3 = vpop.permute.xlu0 %3243 }
 0x32e   : > { %3334 = vst.msk [vmem:[#allocation2 + $0x18] sm:$0xf] %vm3327_vm15, %v3244_v3 }
 0x335   : > { %v3262_v4 = vpop.permute.xlu0 %3261  ;;  %v4238_v5 = vld [vmem:[#allocation2 + $0x18] sm:$0xff] }
 0x336   : > { %3343 = vst.msk [vmem:[#allocation2 + $0x3c] sm:$0xf] %vm3327_vm15, %v3262_v4  ;;  %4219 = vmatmul.msk.bf16.gmra.mxu0 %vm3496_vm0, %v4238_v5 }
 0x338   : > { %v3623_v6 = vpop.f32.mrf.mxu3 }
 0x339   : > { %v3603_v7 = vpop.f32.mrf.mxu2  ;;  %v3624_v8 = vadd.f32 %v5772_v16, %v3623_v6 }
 0x33a   : > { %v3604_v9 = vadd.f32 %v5772_v16, %v3603_v7 }
 0x33b   : > { %v3664_v10 = vmax.f32 %v3624_v8, 0.0 }
 0x33c   : > { %v3656_v11 = vmax.f32 %v3604_v9, 0.0 }
 0x33d   : > { %v4242_v12 = vld [vmem:[#allocation2 + $0x38] sm:$0xff]  ;;  %v3696_v13 = vmin.f32 %v3664_v10, 6.0 }
 0x33e   : > { %v3688_v14 = vmin.f32 %v3656_v11, 6.0  ;;  %4223 = vmatmul.msk.bf16.gmra.mxu1 %vm3496_vm0, %v4242_v12 }
 0x33f   : > { %3729 = vst.msk [vmem:[%s5781_s16 + $0xd0] sm:$0xff] %vm3702_vm1, %v3696_v13 }
 0x340   : > { %3721 = vst.msk [vmem:[%s5781_s16 + $0x90] sm:$0xff] %vm3702_vm1, %v3688_v14  ;;  %v3625_v15 = vpop.f32.mrf.mxu3 }
 0x341   : > { %v3605_v17 = vpop.f32.mrf.mxu2  ;;  %v3626_v18 = vadd.f32 %v5772_v16, %v3625_v15 }
 0x342   : > { %v3606_v19 = vadd.f32 %v5772_v16, %v3605_v17  ;;  %v3563_v20 = vpop.f32.mrf.mxu0 }
 0x343   : > { %v3665_v21 = vmax.f32 %v3626_v18, 0.0  ;;  %v3564_v22 = vadd.f32 %v5772_v16, %v3563_v20 }
 0x344   : > { %v3657_v23 = vmax.f32 %v3606_v19, 0.0 }
 0x345   : > { %v3697_v24 = vmin.f32 %v3665_v21, 6.0  ;;  %v3640_v26 = vmax.f32 %v3564_v22, 0.0 }
 0x346   : > { %v3689_v27 = vmin.f32 %v3657_v23, 6.0 }
 0x347   : > { %3730 = vst.msk [vmem:[%s5781_s16 + $0xd8] sm:$0xff] %vm3702_vm1, %v3697_v24  ;;  %v3672_v28 = vmin.f32 %v3640_v26, 6.0 }
 0x348   : > { %3722 = vst.msk [vmem:[%s5781_s16 + $0x98] sm:$0xff] %vm3702_vm1, %v3689_v27 }
 0x349   : > { %3705 = vst.msk [vmem:[%s5781_s16 + $0x10] sm:$0xff] %vm3702_vm1, %v3672_v28 }
 0x34a   : > { %v3565_v29 = vpop.f32.mrf.mxu0 }
 0x34b   : > { %v3566_v31 = vadd.f32 %v5772_v16, %v3565_v29  ;;  %v3583_v32 = vpop.f32.mrf.mxu1 }
 0x34c   : > { %v3584_v34 = vadd.f32 %v5772_v16, %v3583_v32 }
 0x34d   : > { %v3641_v36 = vmax.f32 %v3566_v31, 0.0 }
 0x34e   : > { %v3648_v33 = vmax.f32 %v3584_v34, 0.0 }
 0x34f   : > { %v3673_v37 = vmin.f32 %v3641_v36, 6.0 }
 0x350   : > { %v3680_v35 = vmin.f32 %v3648_v33, 6.0 }
 0x351   : > { %3706 = vst.msk [vmem:[%s5781_s16 + $0x18] sm:$0xff] %vm3702_vm1, %v3673_v37 }
 0x352   : > { %3713 = vst.msk [vmem:[%s5781_s16 + $0x50] sm:$0xff] %vm3702_vm1, %v3680_v35 }
 0x353   : > { %v3585_v30 = vpop.f32.mrf.mxu1 }
 0x354   : > { %v3586_v38 = vadd.f32 %v5772_v16, %v3585_v30 }
 0x356   : > { %v3649_v39 = vmax.f32 %v3586_v38, 0.0 }
 0x358   : > { %v3681_v40 = vmin.f32 %v3649_v39, 6.0 }
 0x35a   : > { %3714 = vst.msk [vmem:[%s5781_s16 + $0x58] sm:$0xff] %vm3702_vm1, %v3681_v40 }
 0x368   : > { %v3608_v41 = vpop.f32.mrf.mxu2 }
 0x369   : > { %v3609_v42 = vadd.f32 %v5772_v16, %v3608_v41 }
 0x36b   : > { %v3658_v43 = vmax.f32 %v3609_v42, 0.0 }
 0x36d   : > { %v3690_v44 = vmin.f32 %v3658_v43, 6.0 }
 0x36f   : > { %3723 = vst.msk [vmem:[%s5781_s16 + $0xa0] sm:$0xff] %vm3702_vm1, %v3690_v44 }
 0x370   : > { %v3610_v45 = vpop.f32.mrf.mxu2 }
 0x371   : > { %v3611_v46 = vadd.f32 %v5772_v16, %v3610_v45  ;;  %v3628_v47 = vpop.f32.mrf.mxu3 }
 0x372   : > { %v3629_v48 = vadd.f32 %v5772_v16, %v3628_v47 }
 0x373   : > { %v3659_v49 = vmax.f32 %v3611_v46, 0.0 }
 0x374   : > { %v3666_v25 = vmax.f32 %v3629_v48, 0.0 }
 0x375   : > { %v3691_v50 = vmin.f32 %v3659_v49, 6.0 }
 0x376   : > { %v3698_v51 = vmin.f32 %v3666_v25, 6.0 }
 0x377   : > { %3724 = vst.msk [vmem:[%s5781_s16 + $0xa8] sm:$0xff] %vm3702_vm1, %v3691_v50 }
 0x378   : > { %3731 = vst.msk [vmem:[%s5781_s16 + $0xe0] sm:$0xff] %vm3702_vm1, %v3698_v51 }
 0x379   : > { %v3630_v53 = vpop.f32.mrf.mxu3 }
 0x37a   : > { %v3631_v54 = vadd.f32 %v5772_v16, %v3630_v53 }
 0x37b   : > { %v3568_v56 = vpop.f32.mrf.mxu0 }
 0x37c   : > { %v3667_v57 = vmax.f32 %v3631_v54, 0.0  ;;  %v3569_v58 = vadd.f32 %v5772_v16, %v3568_v56 }
 0x37e   : > { %v3699_v1 = vmin.f32 %v3667_v57, 6.0  ;;  %v3642_v59 = vmax.f32 %v3569_v58, 0.0 }
 0x380   : > { %3732 = vst.msk [vmem:[%s5781_s16 + $0xe8] sm:$0xff] %vm3702_vm1, %v3699_v1  ;;  %v3674_v60 = vmin.f32 %v3642_v59, 6.0 }
 0x382   : > { %3707 = vst.msk [vmem:[%s5781_s16 + $0x20] sm:$0xff] %vm3702_vm1, %v3674_v60 }
 0x383   : > { %v3570_v61 = vpop.f32.mrf.mxu0  ;;  %v3588_v62 = vpop.f32.mrf.mxu1 }
 0x384   : > { %v3571_v63 = vadd.f32 %v5772_v16, %v3570_v61  ;;  %v3589_v52 = vadd.f32 %v5772_v16, %v3588_v62 }
 0x386   : > { %v3643_v55 = vmax.f32 %v3571_v63, 0.0  ;;  %v3650_v0 = vmax.f32 %v3589_v52, 0.0 }
 0x388   : > { %v3675_v2 = vmin.f32 %v3643_v55, 6.0  ;;  %v3682_v3 = vmin.f32 %v3650_v0, 6.0 }
 0x38a   : > { %3708 = vst.msk [vmem:[%s5781_s16 + $0x28] sm:$0xff] %vm3702_vm1, %v3675_v2 }
 0x38b   : > { %3715 = vst.msk [vmem:[%s5781_s16 + $0x60] sm:$0xff] %vm3702_vm1, %v3682_v3  ;;  %v3590_v4 = vpop.f32.mrf.mxu1 }
 0x38c   : > { %v3591_v5 = vadd.f32 %v5772_v16, %v3590_v4 }
 0x38e   : > { %v3651_v6 = vmax.f32 %v3591_v5, 0.0 }
 0x390   : > { %v3683_v7 = vmin.f32 %v3651_v6, 6.0 }
 0x392   : > { %3716 = vst.msk [vmem:[%s5781_s16 + $0x68] sm:$0xff] %vm3702_vm1, %v3683_v7 }
 0x3a1   : > { %v3613_v8 = vpop.f32.mrf.mxu2 }
 0x3a2   : > { %v3614_v9 = vadd.f32 %v5772_v16, %v3613_v8 }
 0x3a4   : > { %v3660_v10 = vmax.f32 %v3614_v9, 0.0 }
 0x3a6   : > { %v3692_v11 = vmin.f32 %v3660_v10, 6.0 }
 0x3a8   : > { %3725 = vst.msk [vmem:[%s5781_s16 + $0xb0] sm:$0xff] %vm3702_vm1, %v3692_v11 }
 0x3a9   : > { %v3615_v12 = vpop.f32.mrf.mxu2  ;;  %v3633_v13 = vpop.f32.mrf.mxu3 }
 0x3aa   : > { %v3616_v14 = vadd.f32 %v5772_v16, %v3615_v12  ;;  %v3634_v15 = vadd.f32 %v5772_v16, %v3633_v13 }
 0x3ac   : > { %v3661_v17 = vmax.f32 %v3616_v14, 0.0  ;;  %v3668_v18 = vmax.f32 %v3634_v15, 0.0 }
 0x3ae   : > { %v3693_v19 = vmin.f32 %v3661_v17, 6.0  ;;  %v3700_v20 = vmin.f32 %v3668_v18, 6.0 }
 0x3b0   : > { %3726 = vst.msk [vmem:[%s5781_s16 + $0xb8] sm:$0xff] %vm3702_vm1, %v3693_v19 }
 0x3b1   : > { %3733 = vst.msk [vmem:[%s5781_s16 + $0xf0] sm:$0xff] %vm3702_vm1, %v3700_v20  ;;  %v3635_v21 = vpop.f32.mrf.mxu3 }
 0x3b2   : > { %v3636_v22 = vadd.f32 %v5772_v16, %v3635_v21 }
 0x3b3   : > { %v3573_v23 = vpop.f32.mrf.mxu0 }
 0x3b4   : > { %v3669_v24 = vmax.f32 %v3636_v22, 0.0  ;;  %v3574_v26 = vadd.f32 %v5772_v16, %v3573_v23 }
 0x3b6   : > { %v3701_v27 = vmin.f32 %v3669_v24, 6.0  ;;  %v3644_v28 = vmax.f32 %v3574_v26, 0.0 }
 0x3b8   : > { %3734 = vst.msk [vmem:[%s5781_s16 + $0xf8] sm:$0xff] %vm3702_vm1, %v3701_v27  ;;  %v3676_v29 = vmin.f32 %v3644_v28, 6.0 }
 0x3ba   : > { %3709 = vst.msk [vmem:[%s5781_s16 + $0x30] sm:$0xff] %vm3702_vm1, %v3676_v29 }
 0x3bb   : > { %v3575_v31 = vpop.f32.mrf.mxu0  ;;  %v3593_v32 = vpop.f32.mrf.mxu1 }
 0x3bc   : > { %v3576_v34 = vadd.f32 %v5772_v16, %v3575_v31  ;;  %v3594_v36 = vadd.f32 %v5772_v16, %v3593_v32 }
 0x3be   : > { %v3645_v33 = vmax.f32 %v3576_v34, 0.0  ;;  %v3652_v37 = vmax.f32 %v3594_v36, 0.0 }
 0x3c0   : > { %v3677_v35 = vmin.f32 %v3645_v33, 6.0  ;;  %v3684_v30 = vmin.f32 %v3652_v37, 6.0 }
 0x3c2   : > { %3710 = vst.msk [vmem:[%s5781_s16 + $0x38] sm:$0xff] %vm3702_vm1, %v3677_v35 }
 0x3c3   : > { %3717 = vst.msk [vmem:[%s5781_s16 + $0x70] sm:$0xff] %vm3702_vm1, %v3684_v30  ;;  %v3595_v38 = vpop.f32.mrf.mxu1 }
 0x3c4   : > { %v3596_v39 = vadd.f32 %v5772_v16, %v3595_v38 }
 0x3c6   : > { %v3653_v40 = vmax.f32 %v3596_v39, 0.0 }
 0x3c8   : > { %v3685_v41 = vmin.f32 %v3653_v40, 6.0 }
 0x3ca   : > { %3718 = vst.msk [vmem:[%s5781_s16 + $0x78] sm:$0xff] %vm3702_vm1, %v3685_v41 }
 0x3cb PF: > { %s13_s14 = sadd.s32 1, %s4318_s14   ;;  %s5917_s12 = smov %s4314_s13 }
 0x3cc   : > { %p10_p5 = scmp.ge.s32.totalorder %s13_s14, 4   ;;  %s5918_s13 = smov %s5920_s15 }
 0x3ce   :  { %12 = sbr.rel (!%p10_p5) target bundleno = 2 (0x2), region = 65 }

</bundles_post_ra>
